<compile_context>
chip_gen: v7x
topology: tpu7x:2x2x1
jax: 0.10.0
libtpu: 0.0.40
codegen_flags: <defaults>
</compile_context>

<pallas_src>
import functools

import jax
import jax.numpy as jnp
from jax import lax
from jax.experimental import pallas as pl
from jax.experimental.pallas import tpu as pltpu

_BN_EPS = 1e-5                      # nn.BatchNorm2d default eps


def _derive_vmem_limit():
    """Per-generation VMEM budget: capacity minus headroom for Mosaic scratch."""
    try:
        cap = int(pltpu.get_tpu_info().vmem_capacity_bytes)
        if cap <= 0:
            raise ValueError("bad vmem capacity")
    except Exception:
        cap = 64 * 1024 * 1024      # conservative fallback (v7x-sized)
    # ~40 MiB on v7x (64 MiB), ~104 MiB on v5e/v6e (128 MiB).
    return max(cap - 24 * 1024 * 1024, cap // 2)


_VMEM_LIMIT = _derive_vmem_limit()


def _buffered_one():
    # Single-buffer pipeline mode for operands whose block index never changes.
    # Guarded so the script still builds if this JAX lacks pl.Buffered.
    try:
        return pl.Buffered(1)
    except Exception:
        return None


_BUF1 = _buffered_one()


def _fold_scale_shift(sum1, sum2, count, gamma, beta):
    """Fold batch stats (sum, sumsq) + affine params into per-channel scale/shift."""
    mean = sum1 / count
    # Single-pass variance; clamp at 0 to guard against f32 cancellation.
    var = jnp.maximum(sum2 / count - mean * mean, 0.0)
    scale = gamma * lax.rsqrt(var + _BN_EPS)
    shift = beta - mean * scale
    c = gamma.shape[0]
    return scale.reshape(1, c), shift.reshape(1, c)


# ----------------------------------------------------------------------------
# Kernel 1: per-channel batch statistics (sum, sum of squares), reduced over N.
# (Only needed for bn1 -- bn2 stats come out of conv1's epilogue.)
# ----------------------------------------------------------------------------
def _bn_stats_kernel(x_ref, o_ref):
    n = pl.program_id(0)
    C = x_ref.shape[-1]
    x = x_ref[...].astype(jnp.float32).reshape(-1, C)
    s1 = jnp.sum(x, axis=0, keepdims=True)
    s2 = jnp.sum(x * x, axis=0, keepdims=True)

    @pl.when(n == 0)
    def _():
        o_ref[0:1, :] = s1
        o_ref[1:2, :] = s2

    @pl.when(n != 0)
    def _():
        o_ref[0:1, :] = o_ref[0:1, :] + s1
        o_ref[1:2, :] = o_ref[1:2, :] + s2


def bn_scale_shift(x, gamma, beta):
    """BatchNorm2d (train mode, batch stats) folded into per-channel scale/shift."""
    N, H, W, C = x.shape
    sums = pl.pallas_call(
        _bn_stats_kernel,
        out_shape=jax.ShapeDtypeStruct((2, C), jnp.float32),
        grid_spec=pltpu.PrefetchScalarGridSpec(
            num_scalar_prefetch=0,
            grid=(N,),
            in_specs=[pl.BlockSpec((1, H, W, C), lambda n: (n, 0, 0, 0))],
            out_specs=pl.BlockSpec((2, C), lambda n: (0, 0)),
        ),
        compiler_params=pltpu.CompilerParams(
            dimension_semantics=("arbitrary",),    # reduction over the batch axis
            vmem_limit_bytes=_VMEM_LIMIT),
    )(x)
    return _fold_scale_shift(sums[0], sums[1], float(N * H * W), gamma, beta)


# ----------------------------------------------------------------------------
# Kernel 2: fused scale/shift (BN) -> ReLU -> 3x3 conv (pad=1, optional stride)
#           + bias, optional fused residual / 1x1-projection shortcut, optional
#           per-image (sum, sumsq) epilogue for the *next* BatchNorm.
# ----------------------------------------------------------------------------
def _bn_relu_conv3x3_kernel(*refs, stride, mode, want_stats, im2col,
                            rows_chunk, cdt):
    it = iter(refs)
    scale_ref = next(it)
    shift_ref = next(it)
    w_ref = next(it)
    b_ref = next(it)
    x_ref = next(it)
    xsc_ref = wsc_ref = bsc_ref = None
    if mode != "none":
        xsc_ref = next(it)
        if mode == "proj":
            wsc_ref = next(it)
            bsc_ref = next(it)
    o_ref = next(it)
    stats_ref = next(it) if want_stats else None
    pad_ref = next(it)

    _, H, W, Cin = x_ref.shape
    _, Ho, Wo, Cout = o_ref.shape            # Cout here is the per-step Cout tile

    # --- BN (folded scale/shift) + ReLU on the VPU in f32, single cast to the
    #     MXU compute dtype.  Zero column halos are concatenated in registers so
    #     the interior store starts at sublane offset 0 (aligned, unmasked). ---
    act = jnp.maximum(
        x_ref[0].astype(jnp.float32) * scale_ref[...] + shift_ref[...],
        0.0).astype(cdt)                                       # (H, W, Cin)
    zcol = jnp.zeros((H, 1, Cin), cdt)
    zrow = jnp.zeros((1, W + 2, Cin), cdt)
    pad_ref[0:1, :, :] = zrow                                  # cheap aligned row
    pad_ref[H + 1:H + 2, :, :] = zrow
    pad_ref[1:H + 1, :, :] = jnp.concatenate([zcol, act, zcol], axis=1)

    if want_stats:
        s1 = jnp.zeros((1, Cout), jnp.float32)
        s2 = jnp.zeros((1, Cout), jnp.float32)

    # --- 3x3 conv, row-tiled so each chunk's f32 accumulator stays in vregs. ---
    for r0 in range(0, Ho, rows_chunk):
        rows = min(rows_chunk, Ho - r0)

        def win(dy, dx, _r0=r0, _rows=rows):
            if stride == 1:
                return pad_ref[dy + _r0:dy + _r0 + _rows, dx:dx + Wo, :]
            # TODO(synk): for stride==2 the W-axis strided reads could be
            # de-interleaved once into even/odd column buffers instead of 9x.
            return pad_ref[pl.ds(dy + stride * _r0, _rows, stride=stride),
                           pl.ds(dx, Wo, stride=stride), :]

        acc = jnp.zeros((rows * Wo, Cout), jnp.float32)
        if im2col:
            # Small Cin: fuse the 3 dx taps along the contraction axis so each
            # MXU pass sees K = 3*Cin instead of K = Cin.
            for dy in range(3):
                patch = jnp.concatenate(
                    [win(dy, 0), win(dy, 1), win(dy, 2)], axis=-1)
                acc = acc + jnp.dot(patch.reshape(rows * Wo, 3 * Cin),
                                    w_ref[dy, :, :],
                                    preferred_element_type=jnp.float32)
        else:
            for dy in range(3):
                for dx in range(3):
                    acc = acc + jnp.dot(
                        win(dy, dx).reshape(rows * Wo, Cin),
                        w_ref[dy, dx * Cin:(dx + 1) * Cin, :],
                        preferred_element_type=jnp.float32)

        out = acc + b_ref[...]

        # --- fused residual / 1x1 projection-shortcut epilogue ---
        if mode == "proj":
            Cs = xsc_ref.shape[3]
            xs = xsc_ref[0, r0:r0 + rows, :, :].astype(cdt).reshape(rows * Wo, Cs)
            out = out + jnp.dot(xs, wsc_ref[...],
                                preferred_element_type=jnp.float32) + bsc_ref[...]
        elif mode == "identity":
            out = out + xsc_ref[0, r0:r0 + rows, :, :].reshape(
                rows * Wo, Cout).astype(jnp.float32)

        if want_stats:
            # f32 stats of the conv output (pre output-dtype cast) for bn2.
            s1 = s1 + jnp.sum(out, axis=0, keepdims=True)
            s2 = s2 + jnp.sum(out * out, axis=0, keepdims=True)

        o_ref[0, r0:r0 + rows, :, :] = out.reshape(rows, Wo, Cout).astype(o_ref.dtype)

    if want_stats:
        stats_ref[0, :, :] = jnp.concatenate([s1, s2], axis=0)


def _pick_cout_tile(cout):
    for t in (256, 128):
        if cout % t == 0:
            return t
    return cout


def bn_relu_conv3x3(x, scale, shift, w, b, *, stride=1, x_sc=None, wsc=None,
                    bsc=None, want_stats=False, out_dtype=jnp.float32,
                    compute_dtype=jnp.bfloat16):
    N, H, W, Cin = x.shape
    Cout = w.shape[-1]
    Ho, Wo = H // stride, W // stride
    tco = _pick_cout_tile(Cout)
    n_co = Cout // tco
    rows_chunk = max(1, min(Ho, max(1, 128 // Wo)))
    im2col = Cin < 256

    mode = "none"
    if x_sc is not None:
        mode = "proj" if wsc is not None else "identity"

    resident = _BUF1                            # constant across the whole grid
    wpipe = _BUF1 if n_co == 1 else None        # weights move only when Cout tiled

    def _spec(shape, index_map, pmode=None):
        if pmode is not None:
            try:
                return pl.BlockSpec(shape, index_map, pipeline_mode=pmode)
            except TypeError:
                pass
        return pl.BlockSpec(shape, index_map)

    # Per-image x per-Cout-tile grid; activations stay untiled on lanes and are
    # constant across the Cout axis (their DMA is skipped on repeated blocks).
    # TODO(synk): on single-core v5e/v6e, multi-image blocks would amortize the
    #             per-step overhead for small-channel layers.
    in_specs = [
        _spec((1, Cin), lambda n, c: (0, 0), resident),              # scale
        _spec((1, Cin), lambda n, c: (0, 0), resident),              # shift
        _spec((3, 3 * Cin, tco), lambda n, c: (0, 0, c), wpipe),     # conv weights
        _spec((1, tco), lambda n, c: (0, c), wpipe),                 # conv bias
        pl.BlockSpec((1, H, W, Cin), lambda n, c: (n, 0, 0, 0)),     # activations
    ]
    args = [scale, shift,
            w.reshape(3, 3 * Cin, Cout).astype(compute_dtype),
            b.reshape(1, Cout).astype(jnp.float32), x]

    if mode == "proj":
        Cs = x_sc.shape[-1]
        in_specs += [
            pl.BlockSpec((1, Ho, Wo, Cs), lambda n, c: (n, 0, 0, 0)),  # residual in
            _spec((Cs, tco), lambda n, c: (0, c), wpipe),              # 1x1 shortcut w
            _spec((1, tco), lambda n, c: (0, c), wpipe),               # shortcut bias
        ]
        args += [x_sc, wsc.astype(compute_dtype),
                 bsc.reshape(1, Cout).astype(jnp.float32)]
    elif mode == "identity":
        in_specs += [pl.BlockSpec((1, Ho, Wo, tco), lambda n, c: (n, 0, 0, c))]
        args += [x_sc]

    out_shapes = [jax.ShapeDtypeStruct((N, Ho, Wo, Cout), out_dtype)]
    out_specs = [pl.BlockSpec((1, Ho, Wo, tco), lambda n, c: (n, 0, 0, c))]
    if want_stats:
        out_shapes.append(jax.ShapeDtypeStruct((N, 2, Cout), jnp.float32))
        out_specs.append(pl.BlockSpec((1, 2, tco), lambda n, c: (n, 0, c)))

    flops = 2 * 9 * N * Ho * Wo * Cin * Cout
    bytes_accessed = (N * H * W * Cin * x.dtype.itemsize
                      + 9 * Cin * Cout * jnp.dtype(compute_dtype).itemsize
                      + N * Ho * Wo * Cout * jnp.dtype(out_dtype).itemsize)
    if x_sc is not None:
        bytes_accessed += x_sc.size * x_sc.dtype.itemsize
    if mode == "proj":
        flops += 2 * N * Ho * Wo * x_sc.shape[-1] * Cout

    kernel = functools.partial(
        _bn_relu_conv3x3_kernel, stride=stride, mode=mode, want_stats=want_stats,
        im2col=im2col, rows_chunk=rows_chunk, cdt=compute_dtype)

    results = pl.pallas_call(
        kernel,
        out_shape=tuple(out_shapes),
        grid_spec=pltpu.PrefetchScalarGridSpec(
            num_scalar_prefetch=0,
            grid=(N, n_co),
            in_specs=in_specs,
            out_specs=tuple(out_specs),
            scratch_shapes=[pltpu.VMEM((H + 2, W + 2, Cin), compute_dtype)]),
        compiler_params=pltpu.CompilerParams(
            dimension_semantics=("parallel", "parallel"),   # megacore over (N, Cout)
            vmem_limit_bytes=_VMEM_LIMIT),
        cost_estimate=pl.CostEstimate(flops=flops, transcendentals=0,
                                      bytes_accessed=bytes_accessed),
    )(*args)

    if want_stats:
        return results[0], results[1]
    return results[0]


# ----------------------------------------------------------------------------
# Full wide_basic forward
# ----------------------------------------------------------------------------
@functools.partial(jax.jit,
                   static_argnames=("stride", "in_planes", "planes",
                                    "compute_dtype"))
def wide_basic_forward(x_nchw, params, *, stride, in_planes, planes,
                       compute_dtype=jnp.bfloat16):
    # NCHW -> NHWC (channels on lanes).
    # TODO(synk): when chaining wide_basic blocks, keep activations NHWC
    #             end-to-end to avoid these two extra HBM passes per block.
    x = jnp.transpose(x_nchw, (0, 2, 3, 1)).astype(jnp.float32)
    N, H, W, _ = x.shape

    # bn1 batch stats (x comes from outside -> separate tiny reduction kernel).
    s1, t1 = bn_scale_shift(x, params["bn1_g"], params["bn1_b"])

    # conv1( relu( bn1(x) ) ); bn2's (sum, sumsq) are produced in the same
    # kernel's epilogue so the intermediate h is never re-read for statistics.
    # h itself is stored in the compute dtype (bf16 by default).
    h, h_stats = bn_relu_conv3x3(
        x, s1, t1, params["w1"], params["b1"], stride=1, want_stats=True,
        out_dtype=compute_dtype, compute_dtype=compute_dtype)
    # dropout_rate == 0 -> nn.Identity()
    # TODO(synk): dropout_rate > 0 would need pltpu.prng_seed + stateful_bernoulli
    #             fused into conv1's epilogue.

    tot = jnp.sum(h_stats, axis=0)                      # (2, planes)
    s2, t2 = _fold_scale_shift(tot[0], tot[1], float(N * H * W),
                               params["bn2_g"], params["bn2_b"])

    # conv2( relu( bn2(h) ) ) with fused residual / 1x1 shortcut epilogue.
    has_proj = (stride != 1) or (in_planes != planes)
    x_sc = x[:, ::stride, ::stride, :] if stride != 1 else x
    if has_proj:
        wsc = params["wsc"].reshape(in_planes, planes)   # (1,1,Cin,Cout)->(Cin,Cout)
        out = bn_relu_conv3x3(h, s2, t2, params["w2"], params["b2"],
                              stride=stride, x_sc=x_sc, wsc=wsc,
                              bsc=params["bsc"], out_dtype=jnp.float32,
                              compute_dtype=compute_dtype)
    else:
        out = bn_relu_conv3x3(h, s2, t2, params["w2"], params["b2"],
                              stride=stride, x_sc=x_sc, out_dtype=jnp.float32,
                              compute_dtype=compute_dtype)

    return jnp.transpose(out, (0, 3, 1, 2))              # NHWC -> NCHW


# ----------------------------------------------------------------------------
# Pure-JAX reference (for correctness checks)
# ----------------------------------------------------------------------------
def _reference_forward(x_nhwc, p, stride, in_planes, planes):
    def bn(x, g, b):
        m = x.mean(axis=(0, 1, 2), keepdims=True)
        v = ((x - m) ** 2).mean(axis=(0, 1, 2), keepdims=True)
        return (x - m) * lax.rsqrt(v + _BN_EPS) * g + b

    dn = ("NHWC", "HWIO", "NHWC")
    out = jnp.maximum(bn(x_nhwc, p["bn1_g"], p["bn1_b"]), 0.0)
    out = lax.conv_general_dilated(out, p["w1"], (1, 1), ((1, 1), (1, 1)),
                                   dimension_numbers=dn) + p["b1"]
    out = jnp.maximum(bn(out, p["bn2_g"], p["bn2_b"]), 0.0)
    out = lax.conv_general_dilated(out, p["w2"], (stride, stride), ((1, 1), (1, 1)),
                                   dimension_numbers=dn) + p["b2"]
    if stride != 1 or in_planes != planes:
        sc = lax.conv_general_dilated(x_nhwc, p["wsc"], (stride, stride),
                                      ((0, 0), (0, 0)),
                                      dimension_numbers=dn) + p["bsc"]
    else:
        sc = x_nhwc
    return out + sc


def _make_params(key, in_planes, planes, with_shortcut):
    ks = jax.random.split(key, 10)
    p = {
        "bn1_g": 1.0 + 0.1 * jax.random.normal(ks[0], (in_planes,), jnp.float32),
        "bn1_b": 0.1 * jax.random.normal(ks[1], (in_planes,), jnp.float32),
        "w1":    0.1 * jax.random.normal(ks[2], (3, 3, in_planes, planes), jnp.float32),
        "b1":    0.1 * jax.random.normal(ks[3], (planes,), jnp.float32),
        "bn2_g": 1.0 + 0.1 * jax.random.normal(ks[4], (planes,), jnp.float32),
        "bn2_b": 0.1 * jax.random.normal(ks[5], (planes,), jnp.float32),
        "w2":    0.1 * jax.random.normal(ks[6], (3, 3, planes, planes), jnp.float32),
        "b2":    0.1 * jax.random.normal(ks[7], (planes,), jnp.float32),
    }
    if with_shortcut:
        p["wsc"] = 0.1 * jax.random.normal(ks[8], (1, 1, in_planes, planes), jnp.float32)
        p["bsc"] = 0.1 * jax.random.normal(ks[9], (planes,), jnp.float32)
    return p


if __name__ == "__main__":
    key = jax.random.PRNGKey(0)
    k_p1, k_p2, k_x1, k_x2 = jax.random.split(key, 4)

    # --- config A: projection shortcut (in_planes != planes), stride=1 ---
    N, in_planes, planes, H, W = 2, 4, 8, 16, 16
    params_a = _make_params(k_p1, in_planes, planes, with_shortcut=True)
    x_a = jax.random.normal(k_x1, (N, in_planes, H, W), jnp.float32)

    ref_a = jnp.transpose(
        _reference_forward(jnp.transpose(x_a, (0, 2, 3, 1)), params_a,
                           1, in_planes, planes), (0, 3, 1, 2))

    # f32 MXU operands + f32 intermediate: tight check against the reference.
    out_a32 = jax.block_until_ready(
        wide_basic_forward(x_a, params_a, stride=1, in_planes=in_planes,
                           planes=planes, compute_dtype=jnp.float32))
    assert out_a32.shape == (N, planes, H, W)
    assert jnp.allclose(out_a32, ref_a, rtol=2e-3, atol=2e-3), \
        f"f32 max abs err {jnp.max(jnp.abs(out_a32 - ref_a))}"

    # bf16 MXU operands + bf16 intermediate h (default perf path): looser check.
    out_a16 = jax.block_until_ready(
        wide_basic_forward(x_a, params_a, stride=1, in_planes=in_planes,
                           planes=planes))
    assert jnp.allclose(out_a16, ref_a, rtol=5e-2, atol=5e-2), \
        f"bf16 max abs err {jnp.max(jnp.abs(out_a16 - ref_a))}"

    # --- config B: identity shortcut (in_planes == planes), stride=1 ---
    params_b = _make_params(k_p2, planes, planes, with_shortcut=False)
    x_b = jax.random.normal(k_x2, (N, planes, H, W), jnp.float32)

    ref_b = jnp.transpose(
        _reference_forward(jnp.transpose(x_b, (0, 2, 3, 1)), params_b,
                           1, planes, planes), (0, 3, 1, 2))
    out_b32 = jax.block_until_ready(
        wide_basic_forward(x_b, params_b, stride=1, in_planes=planes,
                           planes=planes, compute_dtype=jnp.float32))
    assert out_b32.shape == (N, planes, H, W)
    assert jnp.allclose(out_b32, ref_b, rtol=2e-3, atol=2e-3), \
        f"f32 (identity shortcut) max abs err {jnp.max(jnp.abs(out_b32 - ref_b))}"

    print("KERNEL_OK")
</pallas_src>

<mosaic_0001>
module attributes {stable_mosaic.version = 11 : i64} {
  func.func @_bn_stats_kernel(%arg0: i32, %arg1: memref<1x16x16x4xf32, #tpu.memory_space<vmem>>, %arg2: memref<2x4xf32, #tpu.memory_space<vmem>>) attributes {dimension_semantics = [#tpu.dimension_semantics<arbitrary>], iteration_bounds = array<i64: 2>, scalar_prefetch = 0 : i64, scratch_operands = 0 : i64, tpu.core_type = #tpu.core_type<tc>, window_params = [{transform_indices = @transform_0, window_bounds = array<i64: 1, 16, 16, 4>}, {pipeline_mode = #tpu.pipeline_mode<synchronous>, transform_indices = @transform_1, window_bounds = array<i64: 2, 4>}]} {
    %c0 = arith.constant 0 : index
    %c0_0 = arith.constant 0 : index
    %c0_1 = arith.constant 0 : index
    %c0_2 = arith.constant 0 : index
    %0 = vector.load %arg1[%c0, %c0_0, %c0_1, %c0_2] : memref<1x16x16x4xf32, #tpu.memory_space<vmem>>, vector<1x16x16x4xf32>
    %1 = vector.shape_cast %0 : vector<1x16x16x4xf32> to vector<256x4xf32>
    %cst = arith.constant dense<0.000000e+00> : vector<4xf32>
    %2 = vector.multi_reduction <add>, %1, %cst [0] : vector<256x4xf32> to vector<4xf32>
    %3 = vector.shape_cast %2 : vector<4xf32> to vector<1x4xf32>
    %4 = arith.mulf %1, %1 : vector<256x4xf32>
    %cst_3 = arith.constant dense<0.000000e+00> : vector<4xf32>
    %5 = vector.multi_reduction <add>, %4, %cst_3 [0] : vector<256x4xf32> to vector<4xf32>
    %6 = vector.shape_cast %5 : vector<4xf32> to vector<1x4xf32>
    %c0_i32 = arith.constant 0 : i32
    %7 = arith.cmpi eq, %arg0, %c0_i32 : i32
    %8 = arith.extui %7 : i1 to i32
    %c0_i32_4 = arith.constant 0 : i32
    %9 = arith.cmpi ne, %8, %c0_i32_4 : i32
    scf.if %9 {
      %c0_7 = arith.constant 0 : index
      %c0_8 = arith.constant 0 : index
      %13 = vector.load %arg2[%c0_7, %c0_8] : memref<2x4xf32, #tpu.memory_space<vmem>>, vector<1x4xf32>
      tpu.vector_store %arg2[%c0_7, %c0_8], %3 {strides = array<i32>} : memref<2x4xf32, #tpu.memory_space<vmem>>, vector<1x4xf32>,
      %c1 = arith.constant 1 : index
      %c0_9 = arith.constant 0 : index
      %14 = vector.load %arg2[%c1, %c0_9] : memref<2x4xf32, #tpu.memory_space<vmem>>, vector<1x4xf32>
      tpu.vector_store %arg2[%c1, %c0_9], %6 {strides = array<i32>} : memref<2x4xf32, #tpu.memory_space<vmem>>, vector<1x4xf32>,
    } else {
    }
    %c0_i32_5 = arith.constant 0 : i32
    %10 = arith.cmpi ne, %arg0, %c0_i32_5 : i32
    %11 = arith.extui %10 : i1 to i32
    %c0_i32_6 = arith.constant 0 : i32
    %12 = arith.cmpi ne, %11, %c0_i32_6 : i32
    scf.if %12 {
      %c0_7 = arith.constant 0 : index
      %c0_8 = arith.constant 0 : index
      %13 = vector.load %arg2[%c0_7, %c0_8] : memref<2x4xf32, #tpu.memory_space<vmem>>, vector<1x4xf32>
      %14 = arith.addf %13, %3 : vector<1x4xf32>
      %c0_9 = arith.constant 0 : index
      %c0_10 = arith.constant 0 : index
      %15 = vector.load %arg2[%c0_9, %c0_10] : memref<2x4xf32, #tpu.memory_space<vmem>>, vector<1x4xf32>
      tpu.vector_store %arg2[%c0_9, %c0_10], %14 {strides = array<i32>} : memref<2x4xf32, #tpu.memory_space<vmem>>, vector<1x4xf32>,
      %c1 = arith.constant 1 : index
      %c0_11 = arith.constant 0 : index
      %16 = vector.load %arg2[%c1, %c0_11] : memref<2x4xf32, #tpu.memory_space<vmem>>, vector<1x4xf32>
      %17 = arith.addf %16, %6 : vector<1x4xf32>
      %c1_12 = arith.constant 1 : index
      %c0_13 = arith.constant 0 : index
      %18 = vector.load %arg2[%c1_12, %c0_13] : memref<2x4xf32, #tpu.memory_space<vmem>>, vector<1x4xf32>
      tpu.vector_store %arg2[%c1_12, %c0_13], %17 {strides = array<i32>} : memref<2x4xf32, #tpu.memory_space<vmem>>, vector<1x4xf32>,
    } else {
    }
    return
  }
  func.func @transform_0(%arg0: i32) -> (i32, i32, i32, i32) {
    %c0_i32 = arith.constant 0 : i32
    %c0_i32_0 = arith.constant 0 : i32
    %c0_i32_1 = arith.constant 0 : i32
    %c0_i32_2 = arith.constant 0 : i32
    return %arg0, %c0_i32, %c0_i32_0, %c0_i32_1 : i32, i32, i32, i32
  }
  func.func @transform_1(%arg0: i32) -> (i32, i32) {
    %c0_i32 = arith.constant 0 : i32
    %c0_i32_0 = arith.constant 0 : i32
    %c0_i32_1 = arith.constant 0 : i32
    return %c0_i32, %c0_i32_0 : i32, i32
  }
}

module attributes {stable_mosaic.version = 11 : i64} {
  func.func @_bn_relu_conv3x3_kernel(%arg0: i32, %arg1: i32, %arg2: memref<1x4xf32, #tpu.memory_space<vmem>>, %arg3: memref<1x4xf32, #tpu.memory_space<vmem>>, %arg4: memref<3x12x8xf32, #tpu.memory_space<vmem>>, %arg5: memref<1x8xf32, #tpu.memory_space<vmem>>, %arg6: memref<1x16x16x4xf32, #tpu.memory_space<vmem>>, %arg7: memref<1x16x16x8xf32, #tpu.memory_space<vmem>>, %arg8: memref<1x2x8xf32, #tpu.memory_space<vmem>>, %arg9: memref<18x18x4xf32, #tpu.memory_space<vmem>>) attributes {dimension_semantics = [#tpu.dimension_semantics<parallel>, #tpu.dimension_semantics<parallel>], iteration_bounds = array<i64: 2, 1>, scalar_prefetch = 0 : i64, scratch_operands = 1 : i64, tpu.core_type = #tpu.core_type<tc>, window_params = [{pipeline_mode = #tpu.pipeline_mode<synchronous>, transform_indices = @transform_0, window_bounds = array<i64: 1, 4>}, {pipeline_mode = #tpu.pipeline_mode<synchronous>, transform_indices = @transform_1, window_bounds = array<i64: 1, 4>}, {pipeline_mode = #tpu.pipeline_mode<synchronous>, transform_indices = @transform_2, window_bounds = array<i64: 3, 12, 8>}, {pipeline_mode = #tpu.pipeline_mode<synchronous>, transform_indices = @transform_3, window_bounds = array<i64: 1, 8>}, {transform_indices = @transform_4, window_bounds = array<i64: 1, 16, 16, 4>}, {transform_indices = @transform_5, window_bounds = array<i64: 1, 16, 16, 8>}, {transform_indices = @transform_6, window_bounds = array<i64: 1, 2, 8>}]} {
    %c0 = arith.constant 0 : index
    %c0_0 = arith.constant 0 : index
    %c0_1 = arith.constant 0 : index
    %c0_2 = arith.constant 0 : index
    %0 = vector.load %arg6[%c0, %c0_0, %c0_1, %c0_2] : memref<1x16x16x4xf32, #tpu.memory_space<vmem>>, vector<1x16x16x4xf32>
    %1 = vector.shape_cast %0 : vector<1x16x16x4xf32> to vector<16x16x4xf32>
    %c0_3 = arith.constant 0 : index
    %c0_4 = arith.constant 0 : index
    %2 = vector.load %arg2[%c0_3, %c0_4] : memref<1x4xf32, #tpu.memory_space<vmem>>, vector<1x4xf32>
    %3 = vector.shape_cast %2 : vector<1x4xf32> to vector<1x1x4xf32>
    %4 = vector.broadcast %3 : vector<1x1x4xf32> to vector<16x16x4xf32>
    %5 = arith.mulf %1, %4 : vector<16x16x4xf32>
    %c0_5 = arith.constant 0 : index
    %c0_6 = arith.constant 0 : index
    %6 = vector.load %arg3[%c0_5, %c0_6] : memref<1x4xf32, #tpu.memory_space<vmem>>, vector<1x4xf32>
    %7 = vector.shape_cast %6 : vector<1x4xf32> to vector<1x1x4xf32>
    %8 = vector.broadcast %7 : vector<1x1x4xf32> to vector<16x16x4xf32>
    %9 = arith.addf %5, %8 : vector<16x16x4xf32>
    %cst = arith.constant 0.000000e+00 : f32
    %10 = vector.broadcast %cst : f32 to vector<16x16x4xf32>
    %11 = arith.maximumf %9, %10 : vector<16x16x4xf32>
    %cst_7 = arith.constant 0.000000e+00 : f32
    %12 = vector.broadcast %cst_7 : f32 to vector<16x1x4xf32>
    %cst_8 = arith.constant 0.000000e+00 : f32
    %13 = vector.broadcast %cst_8 : f32 to vector<1x18x4xf32>
    %c0_9 = arith.constant 0 : index
    %c0_10 = arith.constant 0 : index
    %c0_11 = arith.constant 0 : index
    %14 = vector.load %arg9[%c0_9, %c0_10, %c0_11] : memref<18x18x4xf32, #tpu.memory_space<vmem>>, vector<1x18x4xf32>
    tpu.vector_store %arg9[%c0_9, %c0_10, %c0_11], %13 {strides = array<i32>} : memref<18x18x4xf32, #tpu.memory_space<vmem>>, vector<1x18x4xf32>,
    %c17 = arith.constant 17 : index
    %c0_12 = arith.constant 0 : index
    %c0_13 = arith.constant 0 : index
    %15 = vector.load %arg9[%c17, %c0_12, %c0_13] : memref<18x18x4xf32, #tpu.memory_space<vmem>>, vector<1x18x4xf32>
    tpu.vector_store %arg9[%c17, %c0_12, %c0_13], %13 {strides = array<i32>} : memref<18x18x4xf32, #tpu.memory_space<vmem>>, vector<1x18x4xf32>,
    %16 = tpu.concatenate %12, %11, %12 in 1 : vector<16x1x4xf32>, vector<16x16x4xf32>, vector<16x1x4xf32> -> vector<16x18x4xf32>
    %c1 = arith.constant 1 : index
    %c0_14 = arith.constant 0 : index
    %c0_15 = arith.constant 0 : index
    %17 = vector.load %arg9[%c1, %c0_14, %c0_15] : memref<18x18x4xf32, #tpu.memory_space<vmem>>, vector<16x18x4xf32>
    tpu.vector_store %arg9[%c1, %c0_14, %c0_15], %16 {strides = array<i32>} : memref<18x18x4xf32, #tpu.memory_space<vmem>>, vector<16x18x4xf32>,
    %cst_16 = arith.constant 0.000000e+00 : f32
    %18 = vector.broadcast %cst_16 : f32 to vector<1x8xf32>
    %cst_17 = arith.constant 0.000000e+00 : f32
    %19 = vector.broadcast %cst_17 : f32 to vector<1x8xf32>
    %cst_18 = arith.constant 0.000000e+00 : f32
    %20 = vector.broadcast %cst_18 : f32 to vector<128x8xf32>
    %c0_19 = arith.constant 0 : index
    %c0_20 = arith.constant 0 : index
    %c0_21 = arith.constant 0 : index
    %21 = vector.load %arg9[%c0_19, %c0_20, %c0_21] : memref<18x18x4xf32, #tpu.memory_space<vmem>>, vector<8x16x4xf32>
    %c0_22 = arith.constant 0 : index
    %c1_23 = arith.constant 1 : index
    %c0_24 = arith.constant 0 : index
    %22 = vector.load %arg9[%c0_22, %c1_23, %c0_24] : memref<18x18x4xf32, #tpu.memory_space<vmem>>, vector<8x16x4xf32>
    %c0_25 = arith.constant 0 : index
    %c2 = arith.constant 2 : index
    %c0_26 = arith.constant 0 : index
    %23 = vector.load %arg9[%c0_25, %c2, %c0_26] : memref<18x18x4xf32, #tpu.memory_space<vmem>>, vector<8x16x4xf32>
    %24 = tpu.concatenate %21, %22, %23 in 2 : vector<8x16x4xf32>, vector<8x16x4xf32>, vector<8x16x4xf32> -> vector<8x16x12xf32>
    %25 = vector.shape_cast %24 : vector<8x16x12xf32> to vector<128x12xf32>
    %c0_27 = arith.constant 0 : index
    %c0_28 = arith.constant 0 : index
    %c0_29 = arith.constant 0 : index
    %26 = vector.load %arg4[%c0_27, %c0_28, %c0_29] : memref<3x12x8xf32, #tpu.memory_space<vmem>>, vector<1x12x8xf32>
    %27 = vector.shape_cast %26 : vector<1x12x8xf32> to vector<12x8xf32>
    %cst_30 = arith.constant dense<0.000000e+00> : vector<128x8xf32>
    %28 = tpu.matmul %25, %27, %cst_30 {dimension_numbers = #tpu.dot_dimension_numbers<[1], [0], [0], [1], [0, 0, 1, 1], [], []>} : vector<128x12xf32>, vector<12x8xf32>, vector<128x8xf32> -> vector<128x8xf32>
    %29 = arith.addf %20, %28 : vector<128x8xf32>
    %c1_31 = arith.constant 1 : index
    %c0_32 = arith.constant 0 : index
    %c0_33 = arith.constant 0 : index
    %30 = vector.load %arg9[%c1_31, %c0_32, %c0_33] : memref<18x18x4xf32, #tpu.memory_space<vmem>>, vector<8x16x4xf32>
    %c1_34 = arith.constant 1 : index
    %c1_35 = arith.constant 1 : index
    %c0_36 = arith.constant 0 : index
    %31 = vector.load %arg9[%c1_34, %c1_35, %c0_36] : memref<18x18x4xf32, #tpu.memory_space<vmem>>, vector<8x16x4xf32>
    %c1_37 = arith.constant 1 : index
    %c2_38 = arith.constant 2 : index
    %c0_39 = arith.constant 0 : index
    %32 = vector.load %arg9[%c1_37, %c2_38, %c0_39] : memref<18x18x4xf32, #tpu.memory_space<vmem>>, vector<8x16x4xf32>
    %33 = tpu.concatenate %30, %31, %32 in 2 : vector<8x16x4xf32>, vector<8x16x4xf32>, vector<8x16x4xf32> -> vector<8x16x12xf32>
    %34 = vector.shape_cast %33 : vector<8x16x12xf32> to vector<128x12xf32>
    %c1_40 = arith.constant 1 : index
    %c0_41 = arith.constant 0 : index
    %c0_42 = arith.constant 0 : index
    %35 = vector.load %arg4[%c1_40, %c0_41, %c0_42] : memref<3x12x8xf32, #tpu.memory_space<vmem>>, vector<1x12x8xf32>
    %36 = vector.shape_cast %35 : vector<1x12x8xf32> to vector<12x8xf32>
    %cst_43 = arith.constant dense<0.000000e+00> : vector<128x8xf32>
    %37 = tpu.matmul %34, %36, %cst_43 {dimension_numbers = #tpu.dot_dimension_numbers<[1], [0], [0], [1], [0, 0, 1, 1], [], []>} : vector<128x12xf32>, vector<12x8xf32>, vector<128x8xf32> -> vector<128x8xf32>
    %38 = arith.addf %29, %37 : vector<128x8xf32>
    %c2_44 = arith.constant 2 : index
    %c0_45 = arith.constant 0 : index
    %c0_46 = arith.constant 0 : index
    %39 = vector.load %arg9[%c2_44, %c0_45, %c0_46] : memref<18x18x4xf32, #tpu.memory_space<vmem>>, vector<8x16x4xf32>
    %c2_47 = arith.constant 2 : index
    %c1_48 = arith.constant 1 : index
    %c0_49 = arith.constant 0 : index
    %40 = vector.load %arg9[%c2_47, %c1_48, %c0_49] : memref<18x18x4xf32, #tpu.memory_space<vmem>>, vector<8x16x4xf32>
    %c2_50 = arith.constant 2 : index
    %c2_51 = arith.constant 2 : index
    %c0_52 = arith.constant 0 : index
    %41 = vector.load %arg9[%c2_50, %c2_51, %c0_52] : memref<18x18x4xf32, #tpu.memory_space<vmem>>, vector<8x16x4xf32>
    %42 = tpu.concatenate %39, %40, %41 in 2 : vector<8x16x4xf32>, vector<8x16x4xf32>, vector<8x16x4xf32> -> vector<8x16x12xf32>
    %43 = vector.shape_cast %42 : vector<8x16x12xf32> to vector<128x12xf32>
    %c2_53 = arith.constant 2 : index
    %c0_54 = arith.constant 0 : index
    %c0_55 = arith.constant 0 : index
    %44 = vector.load %arg4[%c2_53, %c0_54, %c0_55] : memref<3x12x8xf32, #tpu.memory_space<vmem>>, vector<1x12x8xf32>
    %45 = vector.shape_cast %44 : vector<1x12x8xf32> to vector<12x8xf32>
    %cst_56 = arith.constant dense<0.000000e+00> : vector<128x8xf32>
    %46 = tpu.matmul %43, %45, %cst_56 {dimension_numbers = #tpu.dot_dimension_numbers<[1], [0], [0], [1], [0, 0, 1, 1], [], []>} : vector<128x12xf32>, vector<12x8xf32>, vector<128x8xf32> -> vector<128x8xf32>
    %47 = arith.addf %38, %46 : vector<128x8xf32>
    %c0_57 = arith.constant 0 : index
    %c0_58 = arith.constant 0 : index
    %48 = vector.load %arg5[%c0_57, %c0_58] : memref<1x8xf32, #tpu.memory_space<vmem>>, vector<1x8xf32>
    %49 = vector.broadcast %48 : vector<1x8xf32> to vector<128x8xf32>
    %50 = arith.addf %47, %49 : vector<128x8xf32>
    %cst_59 = arith.constant dense<0.000000e+00> : vector<8xf32>
    %51 = vector.multi_reduction <add>, %50, %cst_59 [0] : vector<128x8xf32> to vector<8xf32>
    %52 = vector.shape_cast %51 : vector<8xf32> to vector<1x8xf32>
    %53 = arith.addf %18, %52 : vector<1x8xf32>
    %54 = arith.mulf %50, %50 : vector<128x8xf32>
    %cst_60 = arith.constant dense<0.000000e+00> : vector<8xf32>
    %55 = vector.multi_reduction <add>, %54, %cst_60 [0] : vector<128x8xf32> to vector<8xf32>
    %56 = vector.shape_cast %55 : vector<8xf32> to vector<1x8xf32>
    %57 = arith.addf %19, %56 : vector<1x8xf32>
    %58 = vector.shape_cast %50 : vector<128x8xf32> to vector<8x16x8xf32>
    %c0_61 = arith.constant 0 : index
    %c0_62 = arith.constant 0 : index
    %c0_63 = arith.constant 0 : index
    %c0_64 = arith.constant 0 : index
    %59 = vector.load %arg7[%c0_61, %c0_62, %c0_63, %c0_64] : memref<1x16x16x8xf32, #tpu.memory_space<vmem>>, vector<1x8x16x8xf32>
    %60 = vector.shape_cast %59 : vector<1x8x16x8xf32> to vector<8x16x8xf32>
    %61 = vector.shape_cast %58 : vector<8x16x8xf32> to vector<1x8x16x8xf32>
    tpu.vector_store %arg7[%c0_61, %c0_62, %c0_63, %c0_64], %61 {strides = array<i32>} : memref<1x16x16x8xf32, #tpu.memory_space<vmem>>, vector<1x8x16x8xf32>,
    %cst_65 = arith.constant 0.000000e+00 : f32
    %62 = vector.broadcast %cst_65 : f32 to vector<128x8xf32>
    %c8 = arith.constant 8 : index
    %c0_66 = arith.constant 0 : index
    %c0_67 = arith.constant 0 : index
    %63 = vector.load %arg9[%c8, %c0_66, %c0_67] : memref<18x18x4xf32, #tpu.memory_space<vmem>>, vector<8x16x4xf32>
    %c8_68 = arith.constant 8 : index
    %c1_69 = arith.constant 1 : index
    %c0_70 = arith.constant 0 : index
    %64 = vector.load %arg9[%c8_68, %c1_69, %c0_70] : memref<18x18x4xf32, #tpu.memory_space<vmem>>, vector<8x16x4xf32>
    %c8_71 = arith.constant 8 : index
    %c2_72 = arith.constant 2 : index
    %c0_73 = arith.constant 0 : index
    %65 = vector.load %arg9[%c8_71, %c2_72, %c0_73] : memref<18x18x4xf32, #tpu.memory_space<vmem>>, vector<8x16x4xf32>
    %66 = tpu.concatenate %63, %64, %65 in 2 : vector<8x16x4xf32>, vector<8x16x4xf32>, vector<8x16x4xf32> -> vector<8x16x12xf32>
    %67 = vector.shape_cast %66 : vector<8x16x12xf32> to vector<128x12xf32>
    %c0_74 = arith.constant 0 : index
    %c0_75 = arith.constant 0 : index
    %c0_76 = arith.constant 0 : index
    %68 = vector.load %arg4[%c0_74, %c0_75, %c0_76] : memref<3x12x8xf32, #tpu.memory_space<vmem>>, vector<1x12x8xf32>
    %69 = vector.shape_cast %68 : vector<1x12x8xf32> to vector<12x8xf32>
    %cst_77 = arith.constant dense<0.000000e+00> : vector<128x8xf32>
    %70 = tpu.matmul %67, %69, %cst_77 {dimension_numbers = #tpu.dot_dimension_numbers<[1], [0], [0], [1], [0, 0, 1, 1], [], []>} : vector<128x12xf32>, vector<12x8xf32>, vector<128x8xf32> -> vector<128x8xf32>
    %71 = arith.addf %62, %70 : vector<128x8xf32>
    %c9 = arith.constant 9 : index
    %c0_78 = arith.constant 0 : index
    %c0_79 = arith.constant 0 : index
    %72 = vector.load %arg9[%c9, %c0_78, %c0_79] : memref<18x18x4xf32, #tpu.memory_space<vmem>>, vector<8x16x4xf32>
    %c9_80 = arith.constant 9 : index
    %c1_81 = arith.constant 1 : index
    %c0_82 = arith.constant 0 : index
    %73 = vector.load %arg9[%c9_80, %c1_81, %c0_82] : memref<18x18x4xf32, #tpu.memory_space<vmem>>, vector<8x16x4xf32>
    %c9_83 = arith.constant 9 : index
    %c2_84 = arith.constant 2 : index
    %c0_85 = arith.constant 0 : index
    %74 = vector.load %arg9[%c9_83, %c2_84, %c0_85] : memref<18x18x4xf32, #tpu.memory_space<vmem>>, vector<8x16x4xf32>
    %75 = tpu.concatenate %72, %73, %74 in 2 : vector<8x16x4xf32>, vector<8x16x4xf32>, vector<8x16x4xf32> -> vector<8x16x12xf32>
    %76 = vector.shape_cast %75 : vector<8x16x12xf32> to vector<128x12xf32>
    %c1_86 = arith.constant 1 : index
    %c0_87 = arith.constant 0 : index
    %c0_88 = arith.constant 0 : index
    %77 = vector.load %arg4[%c1_86, %c0_87, %c0_88] : memref<3x12x8xf32, #tpu.memory_space<vmem>>, vector<1x12x8xf32>
    %78 = vector.shape_cast %77 : vector<1x12x8xf32> to vector<12x8xf32>
    %cst_89 = arith.constant dense<0.000000e+00> : vector<128x8xf32>
    %79 = tpu.matmul %76, %78, %cst_89 {dimension_numbers = #tpu.dot_dimension_numbers<[1], [0], [0], [1], [0, 0, 1, 1], [], []>} : vector<128x12xf32>, vector<12x8xf32>, vector<128x8xf32> -> vector<128x8xf32>
    %80 = arith.addf %71, %79 : vector<128x8xf32>
    %c10 = arith.constant 10 : index
    %c0_90 = arith.constant 0 : index
    %c0_91 = arith.constant 0 : index
    %81 = vector.load %arg9[%c10, %c0_90, %c0_91] : memref<18x18x4xf32, #tpu.memory_space<vmem>>, vector<8x16x4xf32>
    %c10_92 = arith.constant 10 : index
    %c1_93 = arith.constant 1 : index
    %c0_94 = arith.constant 0 : index
    %82 = vector.load %arg9[%c10_92, %c1_93, %c0_94] : memref<18x18x4xf32, #tpu.memory_space<vmem>>, vector<8x16x4xf32>
    %c10_95 = arith.constant 10 : index
    %c2_96 = arith.constant 2 : index
    %c0_97 = arith.constant 0 : index
    %83 = vector.load %arg9[%c10_95, %c2_96, %c0_97] : memref<18x18x4xf32, #tpu.memory_space<vmem>>, vector<8x16x4xf32>
    %84 = tpu.concatenate %81, %82, %83 in 2 : vector<8x16x4xf32>, vector<8x16x4xf32>, vector<8x16x4xf32> -> vector<8x16x12xf32>
    %85 = vector.shape_cast %84 : vector<8x16x12xf32> to vector<128x12xf32>
    %c2_98 = arith.constant 2 : index
    %c0_99 = arith.constant 0 : index
    %c0_100 = arith.constant 0 : index
    %86 = vector.load %arg4[%c2_98, %c0_99, %c0_100] : memref<3x12x8xf32, #tpu.memory_space<vmem>>, vector<1x12x8xf32>
    %87 = vector.shape_cast %86 : vector<1x12x8xf32> to vector<12x8xf32>
    %cst_101 = arith.constant dense<0.000000e+00> : vector<128x8xf32>
    %88 = tpu.matmul %85, %87, %cst_101 {dimension_numbers = #tpu.dot_dimension_numbers<[1], [0], [0], [1], [0, 0, 1, 1], [], []>} : vector<128x12xf32>, vector<12x8xf32>, vector<128x8xf32> -> vector<128x8xf32>
    %89 = arith.addf %80, %88 : vector<128x8xf32>
    %c0_102 = arith.constant 0 : index
    %c0_103 = arith.constant 0 : index
    %90 = vector.load %arg5[%c0_102, %c0_103] : memref<1x8xf32, #tpu.memory_space<vmem>>, vector<1x8xf32>
    %91 = vector.broadcast %90 : vector<1x8xf32> to vector<128x8xf32>
    %92 = arith.addf %89, %91 : vector<128x8xf32>
    %cst_104 = arith.constant dense<0.000000e+00> : vector<8xf32>
    %93 = vector.multi_reduction <add>, %92, %cst_104 [0] : vector<128x8xf32> to vector<8xf32>
    %94 = vector.shape_cast %93 : vector<8xf32> to vector<1x8xf32>
    %95 = arith.addf %53, %94 : vector<1x8xf32>
    %96 = arith.mulf %92, %92 : vector<128x8xf32>
    %cst_105 = arith.constant dense<0.000000e+00> : vector<8xf32>
    %97 = vector.multi_reduction <add>, %96, %cst_105 [0] : vector<128x8xf32> to vector<8xf32>
    %98 = vector.shape_cast %97 : vector<8xf32> to vector<1x8xf32>
    %99 = arith.addf %57, %98 : vector<1x8xf32>
    %100 = vector.shape_cast %92 : vector<128x8xf32> to vector<8x16x8xf32>
    %c0_106 = arith.constant 0 : index
    %c8_107 = arith.constant 8 : index
    %c0_108 = arith.constant 0 : index
    %c0_109 = arith.constant 0 : index
    %101 = vector.load %arg7[%c0_106, %c8_107, %c0_108, %c0_109] : memref<1x16x16x8xf32, #tpu.memory_space<vmem>>, vector<1x8x16x8xf32>
    %102 = vector.shape_cast %101 : vector<1x8x16x8xf32> to vector<8x16x8xf32>
    %103 = vector.shape_cast %100 : vector<8x16x8xf32> to vector<1x8x16x8xf32>
    tpu.vector_store %arg7[%c0_106, %c8_107, %c0_108, %c0_109], %103 {strides = array<i32>} : memref<1x16x16x8xf32, #tpu.memory_space<vmem>>, vector<1x8x16x8xf32>,
    %104 = tpu.concatenate %95, %99 in 0 : vector<1x8xf32>, vector<1x8xf32> -> vector<2x8xf32>
    %c0_110 = arith.constant 0 : index
    %c0_111 = arith.constant 0 : index
    %c0_112 = arith.constant 0 : index
    %105 = vector.load %arg8[%c0_110, %c0_111, %c0_112] : memref<1x2x8xf32, #tpu.memory_space<vmem>>, vector<1x2x8xf32>
    %106 = vector.shape_cast %105 : vector<1x2x8xf32> to vector<2x8xf32>
    %107 = vector.shape_cast %104 : vector<2x8xf32> to vector<1x2x8xf32>
    tpu.vector_store %arg8[%c0_110, %c0_111, %c0_112], %107 {strides = array<i32>} : memref<1x2x8xf32, #tpu.memory_space<vmem>>, vector<1x2x8xf32>,
    return
  }
  func.func @transform_0(%arg0: i32, %arg1: i32) -> (i32, i32) {
    %c0_i32 = arith.constant 0 : i32
    %c0_i32_0 = arith.constant 0 : i32
    %c0_i32_1 = arith.constant 0 : i32
    return %c0_i32, %c0_i32_0 : i32, i32
  }
  func.func @transform_1(%arg0: i32, %arg1: i32) -> (i32, i32) {
    %c0_i32 = arith.constant 0 : i32
    %c0_i32_0 = arith.constant 0 : i32
    %c0_i32_1 = arith.constant 0 : i32
    return %c0_i32, %c0_i32_0 : i32, i32
  }
  func.func @transform_2(%arg0: i32, %arg1: i32) -> (i32, i32, i32) {
    %c0_i32 = arith.constant 0 : i32
    %c0_i32_0 = arith.constant 0 : i32
    %c0_i32_1 = arith.constant 0 : i32
    return %c0_i32, %c0_i32_0, %arg1 : i32, i32, i32
  }
  func.func @transform_3(%arg0: i32, %arg1: i32) -> (i32, i32) {
    %c0_i32 = arith.constant 0 : i32
    %c0_i32_0 = arith.constant 0 : i32
    return %c0_i32, %arg1 : i32, i32
  }
  func.func @transform_4(%arg0: i32, %arg1: i32) -> (i32, i32, i32, i32) {
    %c0_i32 = arith.constant 0 : i32
    %c0_i32_0 = arith.constant 0 : i32
    %c0_i32_1 = arith.constant 0 : i32
    %c0_i32_2 = arith.constant 0 : i32
    return %arg0, %c0_i32, %c0_i32_0, %c0_i32_1 : i32, i32, i32, i32
  }
  func.func @transform_5(%arg0: i32, %arg1: i32) -> (i32, i32, i32, i32) {
    %c0_i32 = arith.constant 0 : i32
    %c0_i32_0 = arith.constant 0 : i32
    %c0_i32_1 = arith.constant 0 : i32
    return %arg0, %c0_i32, %c0_i32_0, %arg1 : i32, i32, i32, i32
  }
  func.func @transform_6(%arg0: i32, %arg1: i32) -> (i32, i32, i32) {
    %c0_i32 = arith.constant 0 : i32
    %c0_i32_0 = arith.constant 0 : i32
    return %arg0, %c0_i32, %arg1 : i32, i32, i32
  }
}

module attributes {stable_mosaic.version = 11 : i64} {
  func.func @_bn_relu_conv3x3_kernel(%arg0: i32, %arg1: i32, %arg2: memref<1x8xf32, #tpu.memory_space<vmem>>, %arg3: memref<1x8xf32, #tpu.memory_space<vmem>>, %arg4: memref<3x24x8xf32, #tpu.memory_space<vmem>>, %arg5: memref<1x8xf32, #tpu.memory_space<vmem>>, %arg6: memref<1x16x16x8xf32, #tpu.memory_space<vmem>>, %arg7: memref<1x16x16x4xf32, #tpu.memory_space<vmem>>, %arg8: memref<4x8xf32, #tpu.memory_space<vmem>>, %arg9: memref<1x8xf32, #tpu.memory_space<vmem>>, %arg10: memref<1x16x16x8xf32, #tpu.memory_space<vmem>>, %arg11: memref<18x18x8xf32, #tpu.memory_space<vmem>>) attributes {dimension_semantics = [#tpu.dimension_semantics<parallel>, #tpu.dimension_semantics<parallel>], iteration_bounds = array<i64: 2, 1>, scalar_prefetch = 0 : i64, scratch_operands = 1 : i64, tpu.core_type = #tpu.core_type<tc>, window_params = [{pipeline_mode = #tpu.pipeline_mode<synchronous>, transform_indices = @transform_0, window_bounds = array<i64: 1, 8>}, {pipeline_mode = #tpu.pipeline_mode<synchronous>, transform_indices = @transform_1, window_bounds = array<i64: 1, 8>}, {pipeline_mode = #tpu.pipeline_mode<synchronous>, transform_indices = @transform_2, window_bounds = array<i64: 3, 24, 8>}, {pipeline_mode = #tpu.pipeline_mode<synchronous>, transform_indices = @transform_3, window_bounds = array<i64: 1, 8>}, {transform_indices = @transform_4, window_bounds = array<i64: 1, 16, 16, 8>}, {transform_indices = @transform_5, window_bounds = array<i64: 1, 16, 16, 4>}, {pipeline_mode = #tpu.pipeline_mode<synchronous>, transform_indices = @transform_6, window_bounds = array<i64: 4, 8>}, {pipeline_mode = #tpu.pipeline_mode<synchronous>, transform_indices = @transform_7, window_bounds = array<i64: 1, 8>}, {transform_indices = @transform_8, window_bounds = array<i64: 1, 16, 16, 8>}]} {
    %c0 = arith.constant 0 : index
    %c0_0 = arith.constant 0 : index
    %c0_1 = arith.constant 0 : index
    %c0_2 = arith.constant 0 : index
    %0 = vector.load %arg6[%c0, %c0_0, %c0_1, %c0_2] : memref<1x16x16x8xf32, #tpu.memory_space<vmem>>, vector<1x16x16x8xf32>
    %1 = vector.shape_cast %0 : vector<1x16x16x8xf32> to vector<16x16x8xf32>
    %c0_3 = arith.constant 0 : index
    %c0_4 = arith.constant 0 : index
    %2 = vector.load %arg2[%c0_3, %c0_4] : memref<1x8xf32, #tpu.memory_space<vmem>>, vector<1x8xf32>
    %3 = vector.shape_cast %2 : vector<1x8xf32> to vector<1x1x8xf32>
    %4 = vector.broadcast %3 : vector<1x1x8xf32> to vector<16x16x8xf32>
    %5 = arith.mulf %1, %4 : vector<16x16x8xf32>
    %c0_5 = arith.constant 0 : index
    %c0_6 = arith.constant 0 : index
    %6 = vector.load %arg3[%c0_5, %c0_6] : memref<1x8xf32, #tpu.memory_space<vmem>>, vector<1x8xf32>
    %7 = vector.shape_cast %6 : vector<1x8xf32> to vector<1x1x8xf32>
    %8 = vector.broadcast %7 : vector<1x1x8xf32> to vector<16x16x8xf32>
    %9 = arith.addf %5, %8 : vector<16x16x8xf32>
    %cst = arith.constant 0.000000e+00 : f32
    %10 = vector.broadcast %cst : f32 to vector<16x16x8xf32>
    %11 = arith.maximumf %9, %10 : vector<16x16x8xf32>
    %cst_7 = arith.constant 0.000000e+00 : f32
    %12 = vector.broadcast %cst_7 : f32 to vector<16x1x8xf32>
    %cst_8 = arith.constant 0.000000e+00 : f32
    %13 = vector.broadcast %cst_8 : f32 to vector<1x18x8xf32>
    %c0_9 = arith.constant 0 : index
    %c0_10 = arith.constant 0 : index
    %c0_11 = arith.constant 0 : index
    %14 = vector.load %arg11[%c0_9, %c0_10, %c0_11] : memref<18x18x8xf32, #tpu.memory_space<vmem>>, vector<1x18x8xf32>
    tpu.vector_store %arg11[%c0_9, %c0_10, %c0_11], %13 {strides = array<i32>} : memref<18x18x8xf32, #tpu.memory_space<vmem>>, vector<1x18x8xf32>,
    %c17 = arith.constant 17 : index
    %c0_12 = arith.constant 0 : index
    %c0_13 = arith.constant 0 : index
    %15 = vector.load %arg11[%c17, %c0_12, %c0_13] : memref<18x18x8xf32, #tpu.memory_space<vmem>>, vector<1x18x8xf32>
    tpu.vector_store %arg11[%c17, %c0_12, %c0_13], %13 {strides = array<i32>} : memref<18x18x8xf32, #tpu.memory_space<vmem>>, vector<1x18x8xf32>,
    %16 = tpu.concatenate %12, %11, %12 in 1 : vector<16x1x8xf32>, vector<16x16x8xf32>, vector<16x1x8xf32> -> vector<16x18x8xf32>
    %c1 = arith.constant 1 : index
    %c0_14 = arith.constant 0 : index
    %c0_15 = arith.constant 0 : index
    %17 = vector.load %arg11[%c1, %c0_14, %c0_15] : memref<18x18x8xf32, #tpu.memory_space<vmem>>, vector<16x18x8xf32>
    tpu.vector_store %arg11[%c1, %c0_14, %c0_15], %16 {strides = array<i32>} : memref<18x18x8xf32, #tpu.memory_space<vmem>>, vector<16x18x8xf32>,
    %cst_16 = arith.constant 0.000000e+00 : f32
    %18 = vector.broadcast %cst_16 : f32 to vector<128x8xf32>
    %c0_17 = arith.constant 0 : index
    %c0_18 = arith.constant 0 : index
    %c0_19 = arith.constant 0 : index
    %19 = vector.load %arg11[%c0_17, %c0_18, %c0_19] : memref<18x18x8xf32, #tpu.memory_space<vmem>>, vector<8x16x8xf32>
    %c0_20 = arith.constant 0 : index
    %c1_21 = arith.constant 1 : index
    %c0_22 = arith.constant 0 : index
    %20 = vector.load %arg11[%c0_20, %c1_21, %c0_22] : memref<18x18x8xf32, #tpu.memory_space<vmem>>, vector<8x16x8xf32>
    %c0_23 = arith.constant 0 : index
    %c2 = arith.constant 2 : index
    %c0_24 = arith.constant 0 : index
    %21 = vector.load %arg11[%c0_23, %c2, %c0_24] : memref<18x18x8xf32, #tpu.memory_space<vmem>>, vector<8x16x8xf32>
    %22 = tpu.concatenate %19, %20, %21 in 2 : vector<8x16x8xf32>, vector<8x16x8xf32>, vector<8x16x8xf32> -> vector<8x16x24xf32>
    %23 = vector.shape_cast %22 : vector<8x16x24xf32> to vector<128x24xf32>
    %c0_25 = arith.constant 0 : index
    %c0_26 = arith.constant 0 : index
    %c0_27 = arith.constant 0 : index
    %24 = vector.load %arg4[%c0_25, %c0_26, %c0_27] : memref<3x24x8xf32, #tpu.memory_space<vmem>>, vector<1x24x8xf32>
    %25 = vector.shape_cast %24 : vector<1x24x8xf32> to vector<24x8xf32>
    %cst_28 = arith.constant dense<0.000000e+00> : vector<128x8xf32>
    %26 = tpu.matmul %23, %25, %cst_28 {dimension_numbers = #tpu.dot_dimension_numbers<[1], [0], [0], [1], [0, 0, 1, 1], [], []>} : vector<128x24xf32>, vector<24x8xf32>, vector<128x8xf32> -> vector<128x8xf32>
    %27 = arith.addf %18, %26 : vector<128x8xf32>
    %c1_29 = arith.constant 1 : index
    %c0_30 = arith.constant 0 : index
    %c0_31 = arith.constant 0 : index
    %28 = vector.load %arg11[%c1_29, %c0_30, %c0_31] : memref<18x18x8xf32, #tpu.memory_space<vmem>>, vector<8x16x8xf32>
    %c1_32 = arith.constant 1 : index
    %c1_33 = arith.constant 1 : index
    %c0_34 = arith.constant 0 : index
    %29 = vector.load %arg11[%c1_32, %c1_33, %c0_34] : memref<18x18x8xf32, #tpu.memory_space<vmem>>, vector<8x16x8xf32>
    %c1_35 = arith.constant 1 : index
    %c2_36 = arith.constant 2 : index
    %c0_37 = arith.constant 0 : index
    %30 = vector.load %arg11[%c1_35, %c2_36, %c0_37] : memref<18x18x8xf32, #tpu.memory_space<vmem>>, vector<8x16x8xf32>
    %31 = tpu.concatenate %28, %29, %30 in 2 : vector<8x16x8xf32>, vector<8x16x8xf32>, vector<8x16x8xf32> -> vector<8x16x24xf32>
    %32 = vector.shape_cast %31 : vector<8x16x24xf32> to vector<128x24xf32>
    %c1_38 = arith.constant 1 : index
    %c0_39 = arith.constant 0 : index
    %c0_40 = arith.constant 0 : index
    %33 = vector.load %arg4[%c1_38, %c0_39, %c0_40] : memref<3x24x8xf32, #tpu.memory_space<vmem>>, vector<1x24x8xf32>
    %34 = vector.shape_cast %33 : vector<1x24x8xf32> to vector<24x8xf32>
    %cst_41 = arith.constant dense<0.000000e+00> : vector<128x8xf32>
    %35 = tpu.matmul %32, %34, %cst_41 {dimension_numbers = #tpu.dot_dimension_numbers<[1], [0], [0], [1], [0, 0, 1, 1], [], []>} : vector<128x24xf32>, vector<24x8xf32>, vector<128x8xf32> -> vector<128x8xf32>
    %36 = arith.addf %27, %35 : vector<128x8xf32>
    %c2_42 = arith.constant 2 : index
    %c0_43 = arith.constant 0 : index
    %c0_44 = arith.constant 0 : index
    %37 = vector.load %arg11[%c2_42, %c0_43, %c0_44] : memref<18x18x8xf32, #tpu.memory_space<vmem>>, vector<8x16x8xf32>
    %c2_45 = arith.constant 2 : index
    %c1_46 = arith.constant 1 : index
    %c0_47 = arith.constant 0 : index
    %38 = vector.load %arg11[%c2_45, %c1_46, %c0_47] : memref<18x18x8xf32, #tpu.memory_space<vmem>>, vector<8x16x8xf32>
    %c2_48 = arith.constant 2 : index
    %c2_49 = arith.constant 2 : index
    %c0_50 = arith.constant 0 : index
    %39 = vector.load %arg11[%c2_48, %c2_49, %c0_50] : memref<18x18x8xf32, #tpu.memory_space<vmem>>, vector<8x16x8xf32>
    %40 = tpu.concatenate %37, %38, %39 in 2 : vector<8x16x8xf32>, vector<8x16x8xf32>, vector<8x16x8xf32> -> vector<8x16x24xf32>
    %41 = vector.shape_cast %40 : vector<8x16x24xf32> to vector<128x24xf32>
    %c2_51 = arith.constant 2 : index
    %c0_52 = arith.constant 0 : index
    %c0_53 = arith.constant 0 : index
    %42 = vector.load %arg4[%c2_51, %c0_52, %c0_53] : memref<3x24x8xf32, #tpu.memory_space<vmem>>, vector<1x24x8xf32>
    %43 = vector.shape_cast %42 : vector<1x24x8xf32> to vector<24x8xf32>
    %cst_54 = arith.constant dense<0.000000e+00> : vector<128x8xf32>
    %44 = tpu.matmul %41, %43, %cst_54 {dimension_numbers = #tpu.dot_dimension_numbers<[1], [0], [0], [1], [0, 0, 1, 1], [], []>} : vector<128x24xf32>, vector<24x8xf32>, vector<128x8xf32> -> vector<128x8xf32>
    %45 = arith.addf %36, %44 : vector<128x8xf32>
    %c0_55 = arith.constant 0 : index
    %c0_56 = arith.constant 0 : index
    %46 = vector.load %arg5[%c0_55, %c0_56] : memref<1x8xf32, #tpu.memory_space<vmem>>, vector<1x8xf32>
    %47 = vector.broadcast %46 : vector<1x8xf32> to vector<128x8xf32>
    %48 = arith.addf %45, %47 : vector<128x8xf32>
    %c0_57 = arith.constant 0 : index
    %c0_58 = arith.constant 0 : index
    %c0_59 = arith.constant 0 : index
    %c0_60 = arith.constant 0 : index
    %49 = vector.load %arg7[%c0_57, %c0_58, %c0_59, %c0_60] : memref<1x16x16x4xf32, #tpu.memory_space<vmem>>, vector<1x8x16x4xf32>
    %50 = vector.shape_cast %49 : vector<1x8x16x4xf32> to vector<8x16x4xf32>
    %51 = vector.shape_cast %50 : vector<8x16x4xf32> to vector<128x4xf32>
    %c0_61 = arith.constant 0 : index
    %c0_62 = arith.constant 0 : index
    %52 = vector.load %arg8[%c0_61, %c0_62] : memref<4x8xf32, #tpu.memory_space<vmem>>, vector<4x8xf32>
    %cst_63 = arith.constant dense<0.000000e+00> : vector<128x8xf32>
    %53 = tpu.matmul %51, %52, %cst_63 {dimension_numbers = #tpu.dot_dimension_numbers<[1], [0], [0], [1], [0, 0, 1, 1], [], []>} : vector<128x4xf32>, vector<4x8xf32>, vector<128x8xf32> -> vector<128x8xf32>
    %54 = arith.addf %48, %53 : vector<128x8xf32>
    %c0_64 = arith.constant 0 : index
    %c0_65 = arith.constant 0 : index
    %55 = vector.load %arg9[%c0_64, %c0_65] : memref<1x8xf32, #tpu.memory_space<vmem>>, vector<1x8xf32>
    %56 = vector.broadcast %55 : vector<1x8xf32> to vector<128x8xf32>
    %57 = arith.addf %54, %56 : vector<128x8xf32>
    %58 = vector.shape_cast %57 : vector<128x8xf32> to vector<8x16x8xf32>
    %c0_66 = arith.constant 0 : index
    %c0_67 = arith.constant 0 : index
    %c0_68 = arith.constant 0 : index
    %c0_69 = arith.constant 0 : index
    %59 = vector.load %arg10[%c0_66, %c0_67, %c0_68, %c0_69] : memref<1x16x16x8xf32, #tpu.memory_space<vmem>>, vector<1x8x16x8xf32>
    %60 = vector.shape_cast %59 : vector<1x8x16x8xf32> to vector<8x16x8xf32>
    %61 = vector.shape_cast %58 : vector<8x16x8xf32> to vector<1x8x16x8xf32>
    tpu.vector_store %arg10[%c0_66, %c0_67, %c0_68, %c0_69], %61 {strides = array<i32>} : memref<1x16x16x8xf32, #tpu.memory_space<vmem>>, vector<1x8x16x8xf32>,
    %cst_70 = arith.constant 0.000000e+00 : f32
    %62 = vector.broadcast %cst_70 : f32 to vector<128x8xf32>
    %c8 = arith.constant 8 : index
    %c0_71 = arith.constant 0 : index
    %c0_72 = arith.constant 0 : index
    %63 = vector.load %arg11[%c8, %c0_71, %c0_72] : memref<18x18x8xf32, #tpu.memory_space<vmem>>, vector<8x16x8xf32>
    %c8_73 = arith.constant 8 : index
    %c1_74 = arith.constant 1 : index
    %c0_75 = arith.constant 0 : index
    %64 = vector.load %arg11[%c8_73, %c1_74, %c0_75] : memref<18x18x8xf32, #tpu.memory_space<vmem>>, vector<8x16x8xf32>
    %c8_76 = arith.constant 8 : index
    %c2_77 = arith.constant 2 : index
    %c0_78 = arith.constant 0 : index
    %65 = vector.load %arg11[%c8_76, %c2_77, %c0_78] : memref<18x18x8xf32, #tpu.memory_space<vmem>>, vector<8x16x8xf32>
    %66 = tpu.concatenate %63, %64, %65 in 2 : vector<8x16x8xf32>, vector<8x16x8xf32>, vector<8x16x8xf32> -> vector<8x16x24xf32>
    %67 = vector.shape_cast %66 : vector<8x16x24xf32> to vector<128x24xf32>
    %c0_79 = arith.constant 0 : index
    %c0_80 = arith.constant 0 : index
    %c0_81 = arith.constant 0 : index
    %68 = vector.load %arg4[%c0_79, %c0_80, %c0_81] : memref<3x24x8xf32, #tpu.memory_space<vmem>>, vector<1x24x8xf32>
    %69 = vector.shape_cast %68 : vector<1x24x8xf32> to vector<24x8xf32>
    %cst_82 = arith.constant dense<0.000000e+00> : vector<128x8xf32>
    %70 = tpu.matmul %67, %69, %cst_82 {dimension_numbers = #tpu.dot_dimension_numbers<[1], [0], [0], [1], [0, 0, 1, 1], [], []>} : vector<128x24xf32>, vector<24x8xf32>, vector<128x8xf32> -> vector<128x8xf32>
    %71 = arith.addf %62, %70 : vector<128x8xf32>
    %c9 = arith.constant 9 : index
    %c0_83 = arith.constant 0 : index
    %c0_84 = arith.constant 0 : index
    %72 = vector.load %arg11[%c9, %c0_83, %c0_84] : memref<18x18x8xf32, #tpu.memory_space<vmem>>, vector<8x16x8xf32>
    %c9_85 = arith.constant 9 : index
    %c1_86 = arith.constant 1 : index
    %c0_87 = arith.constant 0 : index
    %73 = vector.load %arg11[%c9_85, %c1_86, %c0_87] : memref<18x18x8xf32, #tpu.memory_space<vmem>>, vector<8x16x8xf32>
    %c9_88 = arith.constant 9 : index
    %c2_89 = arith.constant 2 : index
    %c0_90 = arith.constant 0 : index
    %74 = vector.load %arg11[%c9_88, %c2_89, %c0_90] : memref<18x18x8xf32, #tpu.memory_space<vmem>>, vector<8x16x8xf32>
    %75 = tpu.concatenate %72, %73, %74 in 2 : vector<8x16x8xf32>, vector<8x16x8xf32>, vector<8x16x8xf32> -> vector<8x16x24xf32>
    %76 = vector.shape_cast %75 : vector<8x16x24xf32> to vector<128x24xf32>
    %c1_91 = arith.constant 1 : index
    %c0_92 = arith.constant 0 : index
    %c0_93 = arith.constant 0 : index
    %77 = vector.load %arg4[%c1_91, %c0_92, %c0_93] : memref<3x24x8xf32, #tpu.memory_space<vmem>>, vector<1x24x8xf32>
    %78 = vector.shape_cast %77 : vector<1x24x8xf32> to vector<24x8xf32>
    %cst_94 = arith.constant dense<0.000000e+00> : vector<128x8xf32>
    %79 = tpu.matmul %76, %78, %cst_94 {dimension_numbers = #tpu.dot_dimension_numbers<[1], [0], [0], [1], [0, 0, 1, 1], [], []>} : vector<128x24xf32>, vector<24x8xf32>, vector<128x8xf32> -> vector<128x8xf32>
    %80 = arith.addf %71, %79 : vector<128x8xf32>
    %c10 = arith.constant 10 : index
    %c0_95 = arith.constant 0 : index
    %c0_96 = arith.constant 0 : index
    %81 = vector.load %arg11[%c10, %c0_95, %c0_96] : memref<18x18x8xf32, #tpu.memory_space<vmem>>, vector<8x16x8xf32>
    %c10_97 = arith.constant 10 : index
    %c1_98 = arith.constant 1 : index
    %c0_99 = arith.constant 0 : index
    %82 = vector.load %arg11[%c10_97, %c1_98, %c0_99] : memref<18x18x8xf32, #tpu.memory_space<vmem>>, vector<8x16x8xf32>
    %c10_100 = arith.constant 10 : index
    %c2_101 = arith.constant 2 : index
    %c0_102 = arith.constant 0 : index
    %83 = vector.load %arg11[%c10_100, %c2_101, %c0_102] : memref<18x18x8xf32, #tpu.memory_space<vmem>>, vector<8x16x8xf32>
    %84 = tpu.concatenate %81, %82, %83 in 2 : vector<8x16x8xf32>, vector<8x16x8xf32>, vector<8x16x8xf32> -> vector<8x16x24xf32>
    %85 = vector.shape_cast %84 : vector<8x16x24xf32> to vector<128x24xf32>
    %c2_103 = arith.constant 2 : index
    %c0_104 = arith.constant 0 : index
    %c0_105 = arith.constant 0 : index
    %86 = vector.load %arg4[%c2_103, %c0_104, %c0_105] : memref<3x24x8xf32, #tpu.memory_space<vmem>>, vector<1x24x8xf32>
    %87 = vector.shape_cast %86 : vector<1x24x8xf32> to vector<24x8xf32>
    %cst_106 = arith.constant dense<0.000000e+00> : vector<128x8xf32>
    %88 = tpu.matmul %85, %87, %cst_106 {dimension_numbers = #tpu.dot_dimension_numbers<[1], [0], [0], [1], [0, 0, 1, 1], [], []>} : vector<128x24xf32>, vector<24x8xf32>, vector<128x8xf32> -> vector<128x8xf32>
    %89 = arith.addf %80, %88 : vector<128x8xf32>
    %c0_107 = arith.constant 0 : index
    %c0_108 = arith.constant 0 : index
    %90 = vector.load %arg5[%c0_107, %c0_108] : memref<1x8xf32, #tpu.memory_space<vmem>>, vector<1x8xf32>
    %91 = vector.broadcast %90 : vector<1x8xf32> to vector<128x8xf32>
    %92 = arith.addf %89, %91 : vector<128x8xf32>
    %c0_109 = arith.constant 0 : index
    %c8_110 = arith.constant 8 : index
    %c0_111 = arith.constant 0 : index
    %c0_112 = arith.constant 0 : index
    %93 = vector.load %arg7[%c0_109, %c8_110, %c0_111, %c0_112] : memref<1x16x16x4xf32, #tpu.memory_space<vmem>>, vector<1x8x16x4xf32>
    %94 = vector.shape_cast %93 : vector<1x8x16x4xf32> to vector<8x16x4xf32>
    %95 = vector.shape_cast %94 : vector<8x16x4xf32> to vector<128x4xf32>
    %c0_113 = arith.constant 0 : index
    %c0_114 = arith.constant 0 : index
    %96 = vector.load %arg8[%c0_113, %c0_114] : memref<4x8xf32, #tpu.memory_space<vmem>>, vector<4x8xf32>
    %cst_115 = arith.constant dense<0.000000e+00> : vector<128x8xf32>
    %97 = tpu.matmul %95, %96, %cst_115 {dimension_numbers = #tpu.dot_dimension_numbers<[1], [0], [0], [1], [0, 0, 1, 1], [], []>} : vector<128x4xf32>, vector<4x8xf32>, vector<128x8xf32> -> vector<128x8xf32>
    %98 = arith.addf %92, %97 : vector<128x8xf32>
    %c0_116 = arith.constant 0 : index
    %c0_117 = arith.constant 0 : index
    %99 = vector.load %arg9[%c0_116, %c0_117] : memref<1x8xf32, #tpu.memory_space<vmem>>, vector<1x8xf32>
    %100 = vector.broadcast %99 : vector<1x8xf32> to vector<128x8xf32>
    %101 = arith.addf %98, %100 : vector<128x8xf32>
    %102 = vector.shape_cast %101 : vector<128x8xf32> to vector<8x16x8xf32>
    %c0_118 = arith.constant 0 : index
    %c8_119 = arith.constant 8 : index
    %c0_120 = arith.constant 0 : index
    %c0_121 = arith.constant 0 : index
    %103 = vector.load %arg10[%c0_118, %c8_119, %c0_120, %c0_121] : memref<1x16x16x8xf32, #tpu.memory_space<vmem>>, vector<1x8x16x8xf32>
    %104 = vector.shape_cast %103 : vector<1x8x16x8xf32> to vector<8x16x8xf32>
    %105 = vector.shape_cast %102 : vector<8x16x8xf32> to vector<1x8x16x8xf32>
    tpu.vector_store %arg10[%c0_118, %c8_119, %c0_120, %c0_121], %105 {strides = array<i32>} : memref<1x16x16x8xf32, #tpu.memory_space<vmem>>, vector<1x8x16x8xf32>,
    return
  }
  func.func @transform_0(%arg0: i32, %arg1: i32) -> (i32, i32) {
    %c0_i32 = arith.constant 0 : i32
    %c0_i32_0 = arith.constant 0 : i32
    %c0_i32_1 = arith.constant 0 : i32
    return %c0_i32, %c0_i32_0 : i32, i32
  }
  func.func @transform_1(%arg0: i32, %arg1: i32) -> (i32, i32) {
    %c0_i32 = arith.constant 0 : i32
    %c0_i32_0 = arith.constant 0 : i32
    %c0_i32_1 = arith.constant 0 : i32
    return %c0_i32, %c0_i32_0 : i32, i32
  }
  func.func @transform_2(%arg0: i32, %arg1: i32) -> (i32, i32, i32) {
    %c0_i32 = arith.constant 0 : i32
    %c0_i32_0 = arith.constant 0 : i32
    %c0_i32_1 = arith.constant 0 : i32
    return %c0_i32, %c0_i32_0, %arg1 : i32, i32, i32
  }
  func.func @transform_3(%arg0: i32, %arg1: i32) -> (i32, i32) {
    %c0_i32 = arith.constant 0 : i32
    %c0_i32_0 = arith.constant 0 : i32
    return %c0_i32, %arg1 : i32, i32
  }
  func.func @transform_4(%arg0: i32, %arg1: i32) -> (i32, i32, i32, i32) {
    %c0_i32 = arith.constant 0 : i32
    %c0_i32_0 = arith.constant 0 : i32
    %c0_i32_1 = arith.constant 0 : i32
    %c0_i32_2 = arith.constant 0 : i32
    return %arg0, %c0_i32, %c0_i32_0, %c0_i32_1 : i32, i32, i32, i32
  }
  func.func @transform_5(%arg0: i32, %arg1: i32) -> (i32, i32, i32, i32) {
    %c0_i32 = arith.constant 0 : i32
    %c0_i32_0 = arith.constant 0 : i32
    %c0_i32_1 = arith.constant 0 : i32
    %c0_i32_2 = arith.constant 0 : i32
    return %arg0, %c0_i32, %c0_i32_0, %c0_i32_1 : i32, i32, i32, i32
  }
  func.func @transform_6(%arg0: i32, %arg1: i32) -> (i32, i32) {
    %c0_i32 = arith.constant 0 : i32
    %c0_i32_0 = arith.constant 0 : i32
    return %c0_i32, %arg1 : i32, i32
  }
  func.func @transform_7(%arg0: i32, %arg1: i32) -> (i32, i32) {
    %c0_i32 = arith.constant 0 : i32
    %c0_i32_0 = arith.constant 0 : i32
    return %c0_i32, %arg1 : i32, i32
  }
  func.func @transform_8(%arg0: i32, %arg1: i32) -> (i32, i32, i32, i32) {
    %c0_i32 = arith.constant 0 : i32
    %c0_i32_0 = arith.constant 0 : i32
    %c0_i32_1 = arith.constant 0 : i32
    return %arg0, %c0_i32, %c0_i32_0, %arg1 : i32, i32, i32, i32
  }
}

</mosaic_0001>

<bundles_post_ra>
// kernel: wide_basic_forward.3
= control target key start
LH: loop header
LB: loop body
LE: loop exit
PB: predicated region body
PF: predicated region fallthrough
CT: control target
= control target key end

     0   :  { %s388_s6 = smov 0   ;;  %s524_s0 = inlined_call_operand.vmem [shape: f32[2,16,16,4], index: 0, kind: input, shape index: {}]   ;;  %s525_s1 = inlined_call_operand.vmem [shape: f32[2,4], index: 1, kind: output, shape index: {}]  }
   0x1 LB: > { %s394_s7 = sadd.s32 4294967295, %s376_s6   ;;  %p354_p0 = scmp.ge.s32.totalorder %s376_s6, 1  ;;  %s376_s6 = sphi %s388_s6, %s11_s6  }
   0x2   : > { %p82_p1 = scmp.lt.s32.totalorder %s376_s6, 3 }
   0x4   : > { %p83_p2 = pnand %p354_p0, %p82_p1 }
   0x5   : > { %p97_p3 = scmp.lt.s32.totalorder (!%p83_p2), %s394_s7, 1  ;;  %vm134_vm0 = vcmask (!%p83_p2), 31744   ;;  %p357_p4 = scmp.ne.s32.totalorder (!%p83_p2), %s394_s7, 0 }
   0x6   : > { %86 = sbr.rel (%p83_p2) target bundleno = 109 (0x6d), region = 24 }
   0xd   : > { %s98_s8 = scalar_select %p97_p3, %s394_s7, 1 }
   0xe   : > { %vm309_vm1 = vcmask (!%p357_p4), 24576  }
   0xf   : > { %s361_s9 = sshll.u32 %s98_s8, 8 }
  0x10   : > { %s403_s12 = scalar_lea.vmem %s524_s0, %s361_s9 }
  0x11   : > { %v102_v0 = vld [vmem:[%s403_s12] sm:$0xff]  ;;  %v103_v1 = vld [vmem:[%s403_s12 + $0x8] sm:$0xff]  ;;  %v104_v2 = vld [vmem:[%s403_s12 + $0x10] sm:$0xff] }
  0x12   : > { %v135_v3 = vsel %vm134_vm0, %v102_v0, 0.0  ;;  %v136_v4 = vsel %vm134_vm0, %v103_v1, 0.0  ;;  %v138_v5 = vsel %vm134_vm0, %v104_v2, 0.0  ;;  %v105_v6 = vld [vmem:[%s403_s12 + $0x18] sm:$0xff]  ;;  %v106_v9 = vld [vmem:[%s403_s12 + $0x20] sm:$0xff]  ;;  %v107_v12 = vld [vmem:[%s403_s12 + $0x28] sm:$0xff]  ;;  %v204_v27 = vmul.f32 %v102_v0, %v102_v0 }
  0x13   : > { %v137_v7 = vadd.f32 %v136_v4, %v135_v3  ;;  %v140_v8 = vsel %vm134_vm0, %v105_v6, 0.0  ;;  %v142_v11 = vsel %vm134_vm0, %v106_v9, 0.0  ;;  %v144_v14 = vsel %vm134_vm0, %v107_v12, 0.0  ;;  %v108_v15 = vld [vmem:[%s403_s12 + $0x30] sm:$0xff]  ;;  %v109_v18 = vld [vmem:[%s403_s12 + $0x38] sm:$0xff]  ;;  %v110_v21 = vld [vmem:[%s403_s12 + $0x40] sm:$0xff] }
  0x14   : > { %v146_v17 = vsel %vm134_vm0, %v108_v15, 0.0  ;;  %v148_v20 = vsel %vm134_vm0, %v109_v18, 0.0  ;;  %v150_v23 = vsel %vm134_vm0, %v110_v21, 0.0  ;;  %v111_v24 = vld [vmem:[%s403_s12 + $0x48] sm:$0xff]  ;;  %v205_v28 = vmul.f32 %v103_v1, %v103_v1  ;;  %v112_v30 = vld [vmem:[%s403_s12 + $0x50] sm:$0xff]  ;;  %v113_v32 = vld [vmem:[%s403_s12 + $0x58] sm:$0xff] }
  0x15   : > { %v139_v10 = vadd.f32 %v138_v5, %v137_v7  ;;  %v152_v26 = vsel %vm134_vm0, %v111_v24, 0.0  ;;  %v206_v29 = vmul.f32 %v104_v2, %v104_v2  ;;  %v154_v33 = vsel %vm134_vm0, %v112_v30, 0.0  ;;  %v114_v41 = vld [vmem:[%s403_s12 + $0x60] sm:$0xff]  ;;  %v115_v47 = vld [vmem:[%s403_s12 + $0x68] sm:$0xff]  ;;  %v116_v53 = vld [vmem:[%s403_s12 + $0x70] sm:$0xff] }
  0x16   : > { %v207_v34 = vmul.f32 %v105_v6, %v105_v6  ;;  %v156_v36 = vsel %vm134_vm0, %v113_v32, 0.0  ;;  %v208_v37 = vmul.f32 %v106_v9, %v106_v9  ;;  %v236_v38 = vsel %vm134_vm0, %v204_v27, 0.0  ;;  %v117_v59 = vld [vmem:[%s403_s12 + $0x78] sm:$0xff]  ;;  %v118_v1 = vld [vmem:[%s403_s12 + $0x80] sm:$0xff]  ;;  %v119_v7 = vld [vmem:[%s403_s12 + $0x88] sm:$0xff] }
  0x17   : > { %v141_v13 = vadd.f32 %v140_v8, %v139_v10  ;;  %v237_v39 = vsel %vm134_vm0, %v205_v28, 0.0  ;;  %v239_v40 = vsel %vm134_vm0, %v206_v29, 0.0  ;;  %v158_v44 = vsel %vm134_vm0, %v114_v41, 0.0 }
  0x18   : > { %v238_v43 = vadd.f32 %v237_v39, %v236_v38  ;;  %v209_v45 = vmul.f32 %v107_v12, %v107_v12  ;;  %v241_v46 = vsel %vm134_vm0, %v207_v34, 0.0  ;;  %v160_v50 = vsel %vm134_vm0, %v115_v47, 0.0 }
  0x19   : > { %v143_v16 = vadd.f32 %v142_v11, %v141_v13  ;;  %v210_v51 = vmul.f32 %v108_v15, %v108_v15  ;;  %v243_v52 = vsel %vm134_vm0, %v208_v37, 0.0  ;;  %v162_v56 = vsel %vm134_vm0, %v116_v53, 0.0  ;;  %v120_v13 = vld [vmem:[%s403_s12 + $0x90] sm:$0xff] }
  0x1a   : > { %v240_v49 = vadd.f32 %v239_v40, %v238_v43  ;;  %v211_v57 = vmul.f32 %v109_v18, %v109_v18  ;;  %v245_v58 = vsel %vm134_vm0, %v209_v45, 0.0  ;;  %v164_v62 = vsel %vm134_vm0, %v117_v59, 0.0  ;;  %v124_v37 = vld [vmem:[%s403_s12 + $0xb0] sm:$0xff]  ;;  %v125_v43 = vld [vmem:[%s403_s12 + $0xb8] sm:$0xff] }
  0x1b   : > { %v145_v19 = vadd.f32 %v144_v14, %v143_v16  ;;  %v212_v63 = vmul.f32 %v110_v21, %v110_v21  ;;  %v247_v0 = vsel %vm134_vm0, %v210_v51, 0.0  ;;  %v166_v4 = vsel %vm134_vm0, %v118_v1, 0.0 }
  0x1c   : > { %v242_v55 = vadd.f32 %v241_v46, %v240_v49  ;;  %v213_v5 = vmul.f32 %v111_v24, %v111_v24  ;;  %v249_v6 = vsel %vm134_vm0, %v211_v57, 0.0  ;;  %v168_v10 = vsel %vm134_vm0, %v119_v7, 0.0  ;;  %v126_v49 = vld [vmem:[%s403_s12 + $0xc0] sm:$0xff] }
  0x1d   : > { %v147_v22 = vadd.f32 %v146_v17, %v145_v19  ;;  %v214_v11 = vmul.f32 %v112_v30, %v112_v30  ;;  %v251_v12 = vsel %vm134_vm0, %v212_v63, 0.0  ;;  %v170_v16 = vsel %vm134_vm0, %v120_v13, 0.0  ;;  %v121_v19 = vld [vmem:[%s403_s12 + $0x98] sm:$0xff] }
  0x1e   : > { %v244_v61 = vadd.f32 %v243_v52, %v242_v55  ;;  %v215_v17 = vmul.f32 %v113_v32, %v113_v32  ;;  %v253_v18 = vsel %vm134_vm0, %v213_v5, 0.0  ;;  %v217_v29 = vmul.f32 %v115_v47, %v115_v47  ;;  %v127_v55 = vld [vmem:[%s403_s12 + $0xc8] sm:$0xff] }
  0x1f   : > { %v149_v25 = vadd.f32 %v148_v20, %v147_v22  ;;  %v172_v22 = vsel %vm134_vm0, %v121_v19, 0.0  ;;  %v255_v24 = vsel %vm134_vm0, %v214_v11, 0.0  ;;  %v178_v40 = vsel %vm134_vm0, %v124_v37, 0.0 }
  0x20   : > { %v246_v3 = vadd.f32 %v245_v58, %v244_v61  ;;  %v257_v30 = vsel %vm134_vm0, %v215_v17, 0.0  ;;  %v180_v46 = vsel %vm134_vm0, %v125_v43, 0.0  ;;  %v220_v47 = vmul.f32 %v118_v1, %v118_v1  ;;  %v128_v61 = vld [vmem:[%s403_s12 + $0xd0] sm:$0xff] }
  0x21   : > { %v151_v31 = vadd.f32 %v150_v23, %v149_v25  ;;  %v216_v23 = vmul.f32 %v114_v41, %v114_v41  ;;  %v122_v25 = vld [vmem:[%s403_s12 + $0xa0] sm:$0xff]  ;;  %v219_v41 = vmul.f32 %v117_v59, %v117_v59  ;;  %v182_v52 = vsel %vm134_vm0, %v126_v49, 0.0 }
  0x22   : > { %v248_v9 = vadd.f32 %v247_v0, %v246_v3  ;;  %v174_v28 = vsel %vm134_vm0, %v122_v25, 0.0  ;;  %v184_v58 = vsel %vm134_vm0, %v127_v55, 0.0  ;;  %v222_v59 = vmul.f32 %v120_v13, %v120_v13  ;;  %v129_v3 = vld [vmem:[%s403_s12 + $0xd8] sm:$0xff] }
  0x23   : > { %v153_v35 = vadd.f32 %v152_v26, %v151_v31  ;;  %v123_v31 = vld [vmem:[%s403_s12 + $0xa8] sm:$0xff]  ;;  %v186_v0 = vsel %vm134_vm0, %v128_v61, 0.0  ;;  %v223_v1 = vmul.f32 %v121_v19, %v121_v19  ;;  %v226_v19 = vmul.f32 %v124_v37, %v124_v37 }
  0x24   : > { %v250_v15 = vadd.f32 %v249_v6, %v248_v9  ;;  %v176_v34 = vsel %vm134_vm0, %v123_v31, 0.0  ;;  %v188_v6 = vsel %vm134_vm0, %v129_v3, 0.0  ;;  %v130_v9 = vld [vmem:[%s403_s12 + $0xe0] sm:$0xff]  ;;  %v225_v13 = vmul.f32 %v123_v31, %v123_v31 }
  0x25   : > { %v155_v42 = vadd.f32 %v154_v33, %v153_v35  ;;  %v218_v35 = vmul.f32 %v116_v53, %v116_v53  ;;  %v221_v53 = vmul.f32 %v119_v7, %v119_v7  ;;  %v224_v7 = vmul.f32 %v122_v25, %v122_v25 }
  0x26   : > { %v252_v21 = vadd.f32 %v251_v12, %v250_v15  ;;  %v190_v12 = vsel %vm134_vm0, %v130_v9, 0.0  ;;  %v131_v15 = vld [vmem:[%s403_s12 + $0xe8] sm:$0xff]  ;;  %v227_v25 = vmul.f32 %v125_v43, %v125_v43  ;;  %v228_v31 = vmul.f32 %v126_v49, %v126_v49 }
  0x27   : > { %v157_v48 = vadd.f32 %v156_v36, %v155_v42  ;;  %v259_v36 = vsel %vm134_vm0, %v216_v23, 0.0  ;;  %v261_v42 = vsel %vm134_vm0, %v217_v29, 0.0  ;;  %v231_v43 = vmul.f32 %v129_v3, %v129_v3 }
  0x28   : > { %v254_v27 = vadd.f32 %v253_v18, %v252_v21  ;;  %v192_v18 = vsel %vm134_vm0, %v131_v15, 0.0  ;;  %v132_v21 = vld [vmem:[%s403_s12 + $0xf0] sm:$0xff] }
  0x29   : > { %v159_v54 = vadd.f32 %v158_v44, %v157_v48  ;;  %v263_v48 = vsel %vm134_vm0, %v218_v35, 0.0  ;;  %v229_v35 = vmul.f32 %v127_v55, %v127_v55  ;;  %v234_v55 = vmul.f32 %v132_v21, %v132_v21 }
  0x2a   : > { %v256_v33 = vadd.f32 %v255_v24, %v254_v27  ;;  %v194_v24 = vsel %vm134_vm0, %v132_v21, 0.0  ;;  %v133_v27 = vld [vmem:[%s403_s12 + $0xf8] sm:$0xff] }
  0x2b   : > { %v161_v60 = vadd.f32 %v160_v50, %v159_v54  ;;  %v265_v54 = vsel %vm134_vm0, %v219_v41, 0.0 }
  0x2c   : > { %v258_v39 = vadd.f32 %v257_v30, %v256_v33  ;;  %v196_v30 = vsel %vm134_vm0, %v133_v27, 0.0 }
  0x2d   : > { %v163_v2 = vadd.f32 %v162_v56, %v161_v60  ;;  %v267_v60 = vsel %vm134_vm0, %v220_v47, 0.0  ;;  %v232_v47 = vmul.f32 %v130_v9, %v130_v9 }
  0x2e   : > { %v260_v45 = vadd.f32 %v259_v36, %v258_v39  ;;  %v281_v36 = vsel %vm134_vm0, %v227_v25, 0.0  ;;  %v230_v39 = vmul.f32 %v128_v61, %v128_v61 }
  0x2f   : > { %v165_v8 = vadd.f32 %v164_v62, %v163_v2  ;;  %v269_v2 = vsel %vm134_vm0, %v221_v53, 0.0 }
  0x30   : > { %v262_v51 = vadd.f32 %v261_v42, %v260_v45 }
  0x31   : > { %v167_v14 = vadd.f32 %v166_v4, %v165_v8  ;;  %v271_v8 = vsel %vm134_vm0, %v222_v59, 0.0  ;;  %v235_v59 = vmul.f32 %v133_v27, %v133_v27 }
  0x32   : > { %v264_v57 = vadd.f32 %v263_v48, %v262_v51  ;;  %v287_v48 = vsel %vm134_vm0, %v230_v39, 0.0  ;;  %v233_v51 = vmul.f32 %v131_v15, %v131_v15 }
  0x33   : > { %v169_v20 = vadd.f32 %v168_v10, %v167_v14  ;;  %v273_v14 = vsel %vm134_vm0, %v223_v1, 0.0  ;;  %v297_v1 = vsel %vm134_vm0, %v235_v59, 0.0 }
  0x34   : > { %v266_v63 = vadd.f32 %v265_v54, %v264_v57 }
  0x35   : > { %v171_v26 = vadd.f32 %v170_v16, %v169_v20  ;;  %v275_v20 = vsel %vm134_vm0, %v224_v7, 0.0 }
  0x36   : > { %v268_v5 = vadd.f32 %v267_v60, %v266_v63  ;;  %v293_v60 = vsel %vm134_vm0, %v233_v51, 0.0  ;;  %v295_v63 = vsel %vm134_vm0, %v234_v55, 0.0 }
  0x37   : > { %v173_v32 = vadd.f32 %v172_v22, %v171_v26  ;;  %v277_v26 = vsel %vm134_vm0, %v225_v13, 0.0 }
  0x38   : > { %v270_v11 = vadd.f32 %v269_v2, %v268_v5 }
  0x39   : > { %v175_v38 = vadd.f32 %v174_v28, %v173_v32  ;;  %v279_v32 = vsel %vm134_vm0, %v226_v19, 0.0 }
  0x3a   : > { %v272_v17 = vadd.f32 %v271_v8, %v270_v11 }
  0x3b   : > { %v177_v44 = vadd.f32 %v176_v34, %v175_v38 }
  0x3c   : > { %v274_v23 = vadd.f32 %v273_v14, %v272_v17 }
  0x3d   : > { %v179_v50 = vadd.f32 %v178_v40, %v177_v44  ;;  %v283_v40 = vsel %vm134_vm0, %v228_v31, 0.0  ;;  %v285_v44 = vsel %vm134_vm0, %v229_v35, 0.0 }
  0x3e   : > { %v276_v29 = vadd.f32 %v275_v20, %v274_v23 }
  0x3f   : > { %v181_v56 = vadd.f32 %v180_v46, %v179_v50 }
  0x40   : > { %v278_v34 = vadd.f32 %v277_v26, %v276_v29 }
  0x41   : > { %v183_v62 = vadd.f32 %v182_v52, %v181_v56  ;;  %v289_v52 = vsel %vm134_vm0, %v231_v43, 0.0  ;;  %v291_v56 = vsel %vm134_vm0, %v232_v47, 0.0 }
  0x42   : > { %v280_v38 = vadd.f32 %v279_v32, %v278_v34 }
  0x43   : > { %v185_v4 = vadd.f32 %v184_v58, %v183_v62 }
  0x44   : > { %v282_v42 = vadd.f32 %v281_v36, %v280_v38 }
  0x45   : > { %v187_v10 = vadd.f32 %v186_v0, %v185_v4 }
  0x46   : > { %v284_v46 = vadd.f32 %v283_v40, %v282_v42 }
  0x47   : > { %v189_v16 = vadd.f32 %v188_v6, %v187_v10 }
  0x48   : > { %v286_v50 = vadd.f32 %v285_v44, %v284_v46 }
  0x49   : > { %v191_v22 = vadd.f32 %v190_v12, %v189_v16 }
  0x4a   : > { %v288_v54 = vadd.f32 %v287_v48, %v286_v50 }
  0x4b   : > { %v193_v28 = vadd.f32 %v192_v18, %v191_v22 }
  0x4c   : > { %v290_v58 = vadd.f32 %v289_v52, %v288_v54 }
  0x4d   : > { %v195_v33 = vadd.f32 %v194_v24, %v193_v28 }
  0x4e   : > { %v292_v62 = vadd.f32 %v291_v56, %v290_v58 }
  0x4f   : > { %v197_v37 = vadd.f32 %v196_v30, %v195_v33 }
  0x50   : > { %v294_v0 = vadd.f32 %v293_v60, %v292_v62 }
  0x51   : > { %v198_v41 = vrot.slane %v197_v37, 4 }
  0x52   : > { %v296_v2 = vadd.f32 %v295_v63, %v294_v0 }
  0x53   : > { %v199_v45 = vadd.f32 %v198_v41, %v197_v37 }
  0x54   : > { %v298_v3 = vadd.f32 %v297_v1, %v296_v2 }
  0x55   : > { %v200_v49 = vrot.slane %v199_v45, 2 }
  0x56   : > { %v299_v4 = vrot.slane %v298_v3, 4 }
  0x57   : > { %v201_v53 = vadd.f32 %v200_v49, %v199_v45 }
  0x58   : > { %v300_v5 = vadd.f32 %v299_v4, %v298_v3 }
  0x59   : > { %v202_v57 = vrot.slane %v201_v53, 1 }
  0x5a   : > { %v301_v6 = vrot.slane %v300_v5, 2  ;;  %308 = sbr.rel (%p357_p4) target bundleno = 99 (0x63), region = 28 }
  0x5b   : > { %v203_v61 = vadd.f32 %v202_v57, %v201_v53 }
  0x5c   : > { %v302_v7 = vadd.f32 %v301_v6, %v300_v5 }
  0x5d   : > { %310 = vst.msk [vmem:[%s525_s1] sm:$0x1] (!%p357_p4), %vm309_vm1, %v203_v61 }
  0x5e   : > { %v303_v8 = vrot.slane %v302_v7, 1 }
  0x60   : > { %v304_v9 = vadd.f32 %v303_v8, %v302_v7 }
  0x62   : > { %311 = vst.msk [vmem:[%s525_s1 + $0x1] sm:$0x1] %vm309_vm1, %v304_v9 }
  0x63 PF: > { %p358_p5 = scmp.eq.s32.totalorder %s394_s7, 0 }
  0x64   : > { %vm318_vm2 = vcmask (!%p358_p5), 24576  }
  0x65   : > { %315 = sbr.rel (%p358_p5) target bundleno = 109 (0x6d), region = 32 }
  0x66   : > { %v316_v10 = vld [vmem:[%s525_s1] sm:$0x1] (!%p358_p5) }
  0x67   : > { %v317_v12 = vadd.f32 (!%p358_p5), %v316_v10, %v203_v61 }
  0x69   : > { %v320_v11 = vld [vmem:[%s525_s1 + $0x1] sm:$0x1] (!%p358_p5)  ;;  %319 = vst.msk [vmem:[%s525_s1] sm:$0x1] (!%p358_p5), %vm318_vm2, %v317_v12 }
  0x6a   : > { %v321_v13 = vadd.f32 (!%p358_p5), %v320_v11, %v304_v9 }
  0x6c   : > { %322 = vst.msk [vmem:[%s525_s1 + $0x1] sm:$0x1] %vm318_vm2, %v321_v13 }
  0x6d PF: > { %s11_s6 = sadd.s32 1, %s376_s6  }
  0x6e   : > { %p8_p6 = scmp.ge.s32.totalorder %s11_s6, 4  }
  0x70   :  { %10 = sbr.rel (!%p8_p6) target bundleno = 1 (0x1), region = 58 }

// kernel: wide_basic_forward.4
= control target key start
LH: loop header
LB: loop body
LE: loop exit
PB: predicated region body
PF: predicated region fallthrough
CT: control target
= control target key end

     0   :  { %s4185_s21 = smov 0   ;;  %s4187_s22 = smov 0   ;;  %s5483_s0 = inlined_call_operand.vmem [shape: f32[1,4], index: 0, kind: input, shape index: {}]   ;;  %s5484_s1 = inlined_call_operand.vmem [shape: f32[1,4], index: 1, kind: input, shape index: {}]   ;;  %s5485_s2 = inlined_call_operand.vmem [shape: f32[3,12,8], index: 2, kind: input, shape index: {}]   ;;  %s5486_s3 = inlined_call_operand.vmem [shape: f32[1,8], index: 3, kind: input, shape index: {}]   ;;  %s5487_s4 = inlined_call_operand.vmem [shape: f32[2,16,16,4], index: 4, kind: input, shape index: {}]   ;;  %s5488_s5 = inlined_call_operand.vmem [shape: f32[2,16,16,8], index: 5, kind: output, shape index: {0}]   ;;  %s5489_s6 = inlined_call_operand.vmem [shape: f32[2,2,8], index: 6, kind: output, shape index: {1}]  }
   0x1   :  { %s4189_s23 = smov 0  }
   0x2 LB: > { %s29_s24 = sadd.s32 1, %s4140_s22  ;;  %p3578_p0 = scmp.ge.s32.totalorder %s4144_s23, 1  ;;  %s4144_s23 = sphi %s4189_s23, %s17_s23   ;;  %s4140_s22 = sphi %s4187_s22, %s5541_s22   ;;  %s4136_s21 = sphi %s4185_s21, %s5540_s21  }
   0x3   : > { %p31_p1 = scmp.ge.s32.totalorder %s29_s24, 2  ;;  %p248_p2 = scmp.lt.s32.totalorder %s4144_s23, 3 }
   0x5   : > { %s5543_s24 = smov (%p31_p1, %s29_s24), 0  ;;  %p249_p3 = pnand %p3578_p0, %p248_p2 }
   0x7   : > { %252 = sbr.rel (%p249_p3) target bundleno = 772 (0x304), region = 40 }
   0xe   : > { %p302_p4 = scmp.lt.s32.totalorder %s4136_s21, 1  ;;  %v4209_v0 = vld [vmem:[%s5483_s0] ss:$0 sm:$0xff]  ;;  %vm464_vm0 = vcmask 31744   ;;  %vm467_vm1 = vcmask 25600   ;;  %vm505_vm2 = vcmask 1040384  }
   0xf   : > { %v4221_v1 = vld [vmem:[%s5484_s1] ss:$0 sm:$0xff]  ;;  %s4146_s9 = smov 4   ;;  %s4147_s10 = smov 8   ;;  %vm1154_vm3 = vcmask 1043456   ;;  %vm4149_vm4 = vmmov 1  }
  0x10   : > { %s5545_s21 = smov (!%p302_p4, %s4136_s21), 1  ;;  %vm4494_vm5 = vmpackc.low %vm1154_vm3, %vm4149_vm4  ;;  %vm875_vm6 = vcmask 64512   ;;  %vm1105_vm7 = vcmask 97280   ;;  %vm3424_vm8 = vcmask 58368  }
  0x11   : > { %s3716_s25 = sshll.u32 %s5545_s21, 8 }
  0x12   : > { %s4216_s30 = scalar_lea.vmem %s5487_s4, %s3716_s25  ;;  %s5307_s14 = scalar_lea.vmem %s5488_s5, %s3716_s25 }
  0x13   : > { %v322_v2 = vld [vmem:[%s4216_s30] sm:$0xff]  ;;  %v323_v3 = vld [vmem:[%s4216_s30 + $0x8] sm:$0xff]  ;;  %v340_v9 = vld [vmem:[%s4216_s30 + $0x90] sm:$0xff]  ;;  %s3583_s25 = sshll.u32 %s5545_s21, 1 }
  0x14   : > { %v338_v4 = vld [vmem:[%s4216_s30 + $0x80] sm:$0xff]  ;;  %v361_v5 = vmul.f32 %v4209_v0, %v322_v2  ;;  %v362_v6 = vmul.f32 %v4209_v0, %v323_v3  ;;  %v339_v7 = vld [vmem:[%s4216_s30 + $0x88] sm:$0xff]  ;;  %v341_v10 = vld [vmem:[%s4216_s30 + $0x98] sm:$0xff]  ;;  %v379_v12 = vmul.f32 %v4209_v0, %v340_v9  ;;  %s321_s17 = scalar_lea.vmem %s5489_s6, %s3583_s25 }
  0x15   : > { %v377_v8 = vmul.f32 %v4209_v0, %v338_v4  ;;  %v378_v11 = vmul.f32 %v4209_v0, %v339_v7  ;;  %v380_v13 = vmul.f32 %v4209_v0, %v341_v10  ;;  %v324_v14 = vld [vmem:[%s4216_s30 + $0x10] sm:$0xff]  ;;  %v325_v15 = vld [vmem:[%s4216_s30 + $0x18] sm:$0xff]  ;;  %v342_v40 = vld [vmem:[%s4216_s30 + $0xa0] sm:$0xff] }
  0x16   : > { %v400_v16 = vadd.f32 %v4221_v1, %v361_v5  ;;  %v401_v17 = vadd.f32 %v4221_v1, %v362_v6  ;;  %v363_v19 = vmul.f32 %v4209_v0, %v324_v14  ;;  %v418_v21 = vadd.f32 %v4221_v1, %v379_v12  ;;  %v343_v41 = vld [vmem:[%s4216_s30 + $0xa8] sm:$0xff]  ;;  %v326_v46 = vld [vmem:[%s4216_s30 + $0x20] sm:$0xff]  ;;  %v344_v48 = vld [vmem:[%s4216_s30 + $0xb0] sm:$0xff] }
  0x17   : > { %v416_v18 = vadd.f32 %v4221_v1, %v377_v8  ;;  %v417_v20 = vadd.f32 %v4221_v1, %v378_v11  ;;  %v419_v22 = vadd.f32 %v4221_v1, %v380_v13  ;;  %v364_v23 = vmul.f32 %v4209_v0, %v325_v15  ;;  %v327_v47 = vld [vmem:[%s4216_s30 + $0x28] sm:$0xff]  ;;  %v345_v57 = vld [vmem:[%s4216_s30 + $0xb8] sm:$0xff]  ;;  %v328_v62 = vld [vmem:[%s4216_s30 + $0x30] sm:$0xff] }
  0x18   : > { %v432_v24 = vmax.f32 %v400_v16, 0.0  ;;  %v433_v25 = vmax.f32 %v401_v17, 0.0  ;;  %v402_v27 = vadd.f32 %v4221_v1, %v363_v19  ;;  %v450_v29 = vmax.f32 %v418_v21, 0.0  ;;  %v329_v63 = vld [vmem:[%s4216_s30 + $0x38] sm:$0xff]  ;;  %v346_v14 = vld [vmem:[%s4216_s30 + $0xc0] sm:$0xff]  ;;  %v347_v19 = vld [vmem:[%s4216_s30 + $0xc8] sm:$0xff] }
  0x19   : > { %v448_v26 = vmax.f32 %v416_v18, 0.0  ;;  %v449_v28 = vmax.f32 %v417_v20, 0.0  ;;  %v451_v30 = vmax.f32 %v419_v22, 0.0  ;;  %v403_v31 = vadd.f32 %v4221_v1, %v364_v23 }
  0x1a   : > { %v506_v32 = vrot.slane %v432_v24, 7  ;;  %v507_v33 = vrot.slane %v433_v25, 7  ;;  %v434_v35 = vmax.f32 %v402_v27, 0.0  ;;  %v533_v37 = vrot.slane %v450_v29, 7 }
  0x1b   : > { %v530_v34 = vrot.slane %v448_v26, 7  ;;  %v531_v36 = vrot.slane %v449_v28, 7  ;;  %v534_v38 = vrot.slane %v451_v30, 7  ;;  %v435_v39 = vmax.f32 %v403_v31, 0.0 }
  0x1c   : > { %v508_v42 = vsel %vm505_vm2, %v506_v32, %v507_v33  ;;  %v618_v43 = vsel %vm505_vm2, %v507_v33, 0.0  ;;  %v602_v44 = vsel %vm505_vm2, 0.0, %v506_v32  ;;  %v611_v52 = vsel %vm505_vm2, 0.0, %v533_v37 }
  0x1d   : > { %v610_v45 = vsel %vm505_vm2, 0.0, %v530_v34  ;;  %636 = vst.msk [vmem:[#allocation2 + $0x20] sm:$0xff] %vm464_vm0, %v508_v42  ;;  %635 = vst.msk [vmem:[#allocation2 + $0x18] sm:$0xff] %vm464_vm0, %v602_v44  ;;  %v532_v49 = vsel %vm505_vm2, %v530_v34, %v531_v36  ;;  %v626_v50 = vsel %vm505_vm2, %v531_v36, 0.0  ;;  %v535_v51 = vsel %vm505_vm2, %v533_v37, %v534_v38  ;;  %v330_v36 = vld [vmem:[%s4216_s30 + $0x40] sm:$0xff] }
  0x1e   : > { %637 = vst.msk [vmem:[#allocation2 + $0x28] sm:$0x3] %vm467_vm1, %v618_v43  ;;  %661 = vst.msk [vmem:[#allocation2 + $0xe8] sm:$0x3] %vm467_vm1, %v626_v50  ;;  %v509_v53 = vrot.slane %v434_v35, 7  ;;  %v510_v54 = vrot.slane %v435_v39, 7  ;;  %v381_v56 = vmul.f32 %v4209_v0, %v342_v40  ;;  %v382_v58 = vmul.f32 %v4209_v0, %v343_v41 }
  0x1f   : > { %659 = vst.msk [vmem:[#allocation2 + $0xd8] sm:$0xff] %vm464_vm0, %v610_v45  ;;  %660 = vst.msk [vmem:[#allocation2 + $0xe0] sm:$0xff] %vm464_vm0, %v532_v49  ;;  %v627_v55 = vsel %vm505_vm2, %v534_v38, 0.0  ;;  %v365_v59 = vmul.f32 %v4209_v0, %v326_v46  ;;  %v366_v60 = vmul.f32 %v4209_v0, %v327_v47  ;;  %v383_v61 = vmul.f32 %v4209_v0, %v344_v48  ;;  %v331_v41 = vld [vmem:[%s4216_s30 + $0x48] sm:$0xff]  ;;  %v348_v50 = vld [vmem:[%s4216_s30 + $0xd0] sm:$0xff] }
  0x20   : > { %662 = vst.msk [vmem:[#allocation2 + $0xf0] sm:$0xff] %vm464_vm0, %v611_v52  ;;  %663 = vst.msk [vmem:[#allocation2 + $0xf8] sm:$0xff] %vm464_vm0, %v535_v51  ;;  %v511_v2 = vsel %vm505_vm2, %v509_v53, %v510_v54  ;;  %v603_v3 = vsel %vm505_vm2, 0.0, %v509_v53  ;;  %v619_v4 = vsel %vm505_vm2, %v510_v54, 0.0  ;;  %v420_v5 = vadd.f32 %v4221_v1, %v381_v56  ;;  %v349_v51 = vld [vmem:[%s4216_s30 + $0xd8] sm:$0xff] }
  0x21   : > { %664 = vst.msk [vmem:[#allocation2 + $0x100] sm:$0x3] %vm467_vm1, %v627_v55  ;;  %640 = vst.msk [vmem:[#allocation2 + $0x40] sm:$0x3] %vm467_vm1, %v619_v4  ;;  %v421_v6 = vadd.f32 %v4221_v1, %v382_v58  ;;  %v404_v7 = vadd.f32 %v4221_v1, %v365_v59  ;;  %v405_v8 = vadd.f32 %v4221_v1, %v366_v60  ;;  %v332_v4 = vld [vmem:[%s4216_s30 + $0x50] sm:$0xff] }
  0x22   : > { %638 = vst.msk [vmem:[#allocation2 + $0x30] sm:$0xff] %vm464_vm0, %v603_v3  ;;  %639 = vst.msk [vmem:[#allocation2 + $0x38] sm:$0xff] %vm464_vm0, %v511_v2  ;;  %v384_v9 = vmul.f32 %v4209_v0, %v345_v57  ;;  %v452_v10 = vmax.f32 %v420_v5, 0.0  ;;  %v422_v11 = vadd.f32 %v4221_v1, %v383_v61  ;;  %v367_v12 = vmul.f32 %v4209_v0, %v328_v62 }
  0x23   : > { %v368_v13 = vmul.f32 %v4209_v0, %v329_v63  ;;  %v453_v15 = vmax.f32 %v421_v6, 0.0  ;;  %v436_v16 = vmax.f32 %v404_v7, 0.0  ;;  %v437_v17 = vmax.f32 %v405_v8, 0.0 }
  0x24   : > { %v423_v18 = vadd.f32 %v4221_v1, %v384_v9  ;;  %v4297_v21 = vld [vmem:[#allocation2 + $0x19] sm:$0xff]  ;;  %v536_v22 = vrot.slane %v452_v10, 7  ;;  %v454_v23 = vmax.f32 %v422_v11, 0.0  ;;  %v406_v24 = vadd.f32 %v4221_v1, %v367_v12 }
  0x25   : > { %v4295_v20 = vld [vmem:[#allocation2 + $0x21] sm:$0xff]  ;;  %v407_v25 = vadd.f32 %v4221_v1, %v368_v13  ;;  %958 = vrot.lane.b32.xlu0 %v4297_v21, %s4146_s9  ;;  %v537_v26 = vrot.slane %v453_v15, 7  ;;  %v512_v27 = vrot.slane %v436_v16, 7  ;;  %v513_v28 = vrot.slane %v437_v17, 7  ;;  %v333_v9 = vld [vmem:[%s4216_s30 + $0x58] sm:$0xff] }
  0x26   : > { %960 = vrot.lane.b32.xlu1 %v4295_v20, %s4146_s9  ;;  %v385_v29 = vmul.f32 %v4209_v0, %v346_v14  ;;  %v4306_v30 = vld [vmem:[#allocation2 + $0x1a] sm:$0xff]  ;;  %v612_v32 = vsel %vm505_vm2, 0.0, %v536_v22  ;;  %v455_v33 = vmax.f32 %v423_v18, 0.0  ;;  %v539_v34 = vrot.slane %v454_v23, 7  ;;  %v4359_v11 = vld [vmem:[#allocation2 + $0xe2] sm:$0xff] }
  0x27   : > { %v4308_v31 = vld [vmem:[#allocation2 + $0xd9] sm:$0xff]  ;;  %v386_v35 = vmul.f32 %v4209_v0, %v347_v19  ;;  %v538_v37 = vsel %vm505_vm2, %v536_v22, %v537_v26  ;;  %665 = vst.msk [vmem:[#allocation2 + $0x108] sm:$0xff] %vm464_vm0, %v612_v32  ;;  %v514_v38 = vsel %vm505_vm2, %v512_v27, %v513_v28  ;;  %v604_v39 = vsel %vm505_vm2, 0.0, %v512_v27  ;;  %v4338_v53 = vld [vmem:[#allocation2 + $0xe1] sm:$0xff] }
  0x28   : > { %v620_v40 = vsel %vm505_vm2, %v513_v28, 0.0  ;;  %666 = vst.msk [vmem:[#allocation2 + $0x110] sm:$0xff] %vm464_vm0, %v538_v37  ;;  %641 = vst.msk [vmem:[#allocation2 + $0x48] sm:$0xff] %vm464_vm0, %v604_v39  ;;  %v628_v42 = vsel %vm505_vm2, %v537_v26, 0.0  ;;  %v540_v43 = vrot.slane %v455_v33, 7  ;;  %v613_v44 = vsel %vm505_vm2, 0.0, %v539_v34 }
  0x29   : > { %642 = vst.msk [vmem:[#allocation2 + $0x50] sm:$0xff] %vm464_vm0, %v514_v38  ;;  %v424_v45 = vadd.f32 %v4221_v1, %v385_v29  ;;  %2330 = vrot.lane.b32.xlu0 %v4308_v31, %s4146_s9  ;;  %668 = vst.msk [vmem:[#allocation2 + $0x120] sm:$0xff] %vm464_vm0, %v613_v44  ;;  %v438_v46 = vmax.f32 %v406_v24, 0.0  ;;  %v439_v47 = vmax.f32 %v407_v25, 0.0  ;;  %v425_v48 = vadd.f32 %v4221_v1, %v386_v35  ;;  %v4336_v52 = vld [vmem:[#allocation2 + $0xda] sm:$0xff]  ;;  %v4361_v12 = vld [vmem:[#allocation2 + $0x22] sm:$0xff] }
  0x2a   : > { %643 = vst.msk [vmem:[#allocation2 + $0x58] sm:$0x3] %vm467_vm1, %v620_v40  ;;  %1022 = vrot.lane.b32.xlu1 %v4306_v30, %s4147_s10  ;;  %667 = vst.msk [vmem:[#allocation2 + $0x118] sm:$0x3] %vm467_vm1, %v628_v42  ;;  %v369_v49 = vmul.f32 %v4209_v0, %v330_v36  ;;  %v541_v54 = vsel %vm505_vm2, %v539_v34, %v540_v43  ;;  %v629_v55 = vsel %vm505_vm2, %v540_v43, 0.0  ;;  %v350_v10 = vld [vmem:[%s4216_s30 + $0xe0] sm:$0xff] }
  0x2b   : > { %v456_v56 = vmax.f32 %v424_v45, 0.0  ;;  %v370_v57 = vmul.f32 %v4209_v0, %v331_v41  ;;  %669 = vst.msk [vmem:[#allocation2 + $0x128] sm:$0xff] %vm464_vm0, %v541_v54  ;;  %v515_v58 = vrot.slane %v438_v46, 7  ;;  %v516_v59 = vrot.slane %v439_v47, 7  ;;  %v351_v17 = vld [vmem:[%s4216_s30 + $0xe8] sm:$0xff]  ;;  %v334_v34 = vld [vmem:[%s4216_s30 + $0x60] sm:$0xff] }
  0x2c   : > { %670 = vst.msk [vmem:[#allocation2 + $0x130] sm:$0x3] %vm467_vm1, %v629_v55  ;;  %v457_v60 = vmax.f32 %v425_v48, 0.0  ;;  %v408_v61 = vadd.f32 %v4221_v1, %v369_v49  ;;  %v387_v2 = vmul.f32 %v4209_v0, %v348_v50  ;;  %v388_v3 = vmul.f32 %v4209_v0, %v349_v51  ;;  %v335_v35 = vld [vmem:[%s4216_s30 + $0x68] sm:$0xff]  ;;  %v4386_v36 = vld [vmem:[#allocation2 + $0xf1] sm:$0xff] }
  0x2d   : > { %v542_v62 = vrot.slane %v456_v56, 7  ;;  %v409_v63 = vadd.f32 %v4221_v1, %v370_v57  ;;  %2332 = vrot.lane.b32.xlu0 %v4338_v53, %s4146_s9  ;;  %v517_v5 = vsel %vm505_vm2, %v515_v58, %v516_v59  ;;  %v605_v6 = vsel %vm505_vm2, 0.0, %v515_v58  ;;  %v4388_v37 = vld [vmem:[#allocation2 + $0x31] sm:$0xff] }
  0x2e   : > { %2394 = vrot.lane.b32.xlu1 %v4336_v52, %s4147_s10  ;;  %v621_v7 = vsel %vm505_vm2, %v516_v59, 0.0  ;;  %v543_v8 = vrot.slane %v457_v60, 7  ;;  %644 = vst.msk [vmem:[#allocation2 + $0x60] sm:$0xff] %vm464_vm0, %v605_v6  ;;  %645 = vst.msk [vmem:[#allocation2 + $0x68] sm:$0xff] %vm464_vm0, %v517_v5  ;;  %v440_v14 = vmax.f32 %v408_v61, 0.0  ;;  %v426_v16 = vadd.f32 %v4221_v1, %v387_v2  ;;  %v352_v50 = vld [vmem:[%s4216_s30 + $0xf0] sm:$0xff] }
  0x2f   : > { %646 = vst.msk [vmem:[#allocation2 + $0x70] sm:$0x3] %vm467_vm1, %v621_v7  ;;  %v614_v13 = vsel %vm505_vm2, 0.0, %v542_v62  ;;  %v441_v15 = vmax.f32 %v409_v63, 0.0  ;;  %v427_v22 = vadd.f32 %v4221_v1, %v388_v3  ;;  %v371_v23 = vmul.f32 %v4209_v0, %v332_v4  ;;  %v353_v51 = vld [vmem:[%s4216_s30 + $0xf8] sm:$0xff] }
  0x30   : > { %v544_v18 = vsel %vm505_vm2, %v542_v62, %v543_v8  ;;  %671 = vst.msk [vmem:[#allocation2 + $0x138] sm:$0xff] %vm464_vm0, %v614_v13  ;;  %v630_v19 = vsel %vm505_vm2, %v543_v8, 0.0  ;;  %v518_v24 = vrot.slane %v440_v14, 7  ;;  %v458_v26 = vmax.f32 %v426_v16, 0.0  ;;  %v4411_v58 = vld [vmem:[#allocation2 + $0x32] sm:$0xff] }
  0x31   : > { %672 = vst.msk [vmem:[#allocation2 + $0x140] sm:$0xff] %vm464_vm0, %v544_v18  ;;  %v519_v25 = vrot.slane %v441_v15, 7  ;;  %v372_v27 = vmul.f32 %v4209_v0, %v333_v9  ;;  %1024 = vrot.lane.b32.xlu0 %v4361_v12, %s4147_s10  ;;  %v459_v28 = vmax.f32 %v427_v22, 0.0  ;;  %v410_v29 = vadd.f32 %v4221_v1, %v371_v23  ;;  %v4413_v59 = vld [vmem:[#allocation2 + $0x39] sm:$0xff] }
  0x32   : > { %673 = vst.msk [vmem:[#allocation2 + $0x148] sm:$0x3] %vm467_vm1, %v630_v19  ;;  %2396 = vrot.lane.b32.xlu1 %v4359_v11, %s4147_s10  ;;  %v389_v32 = vmul.f32 %v4209_v0, %v350_v10  ;;  %v390_v33 = vmul.f32 %v4209_v0, %v351_v17  ;;  %v606_v39 = vsel %vm505_vm2, 0.0, %v518_v24  ;;  %v545_v41 = vrot.slane %v458_v26, 7  ;;  %v336_v10 = vld [vmem:[%s4216_s30 + $0x70] sm:$0xff]  ;;  %v337_v17 = vld [vmem:[%s4216_s30 + $0x78] sm:$0xff] }
  0x33   : > { %v520_v38 = vsel %vm505_vm2, %v518_v24, %v519_v25  ;;  %v622_v40 = vsel %vm505_vm2, %v519_v25, 0.0  ;;  %647 = vst.msk [vmem:[#allocation2 + $0x78] sm:$0xff] %vm464_vm0, %v606_v39  ;;  %v546_v42 = vrot.slane %v459_v28, 7  ;;  %v411_v43 = vadd.f32 %v4221_v1, %v372_v27  ;;  %v4433_v18 = vld [vmem:[#allocation2 + $0xf2] sm:$0xff] }
  0x34   : > { %648 = vst.msk [vmem:[#allocation2 + $0x80] sm:$0xff] %vm464_vm0, %v520_v38  ;;  %v442_v44 = vmax.f32 %v410_v29, 0.0  ;;  %v428_v45 = vadd.f32 %v4221_v1, %v389_v32  ;;  %v615_v46 = vsel %vm505_vm2, 0.0, %v545_v41  ;;  %v429_v47 = vadd.f32 %v4221_v1, %v390_v33  ;;  %v4435_v19 = vld [vmem:[#allocation2 + $0xf9] sm:$0xff]  ;;  %v3586_v32 = vld [vmem:[%s5485_s2 + $0x10] sm:$0xff] }
  0x35   : > { %649 = vst.msk [vmem:[#allocation2 + $0x88] sm:$0x3] %vm467_vm1, %v622_v40  ;;  %v373_v48 = vmul.f32 %v4209_v0, %v334_v34  ;;  %v374_v49 = vmul.f32 %v4209_v0, %v335_v35  ;;  %962 = vrot.lane.b32.xlu0 %v4388_v37, %s4146_s9  ;;  %v547_v54 = vsel %vm505_vm2, %v545_v41, %v546_v42  ;;  %v443_v55 = vmax.f32 %v411_v43, 0.0  ;;  %v3587_v33 = vld [vmem:[%s5485_s2 + $0x18] sm:$0xf] }
  0x36   : > { %2334 = vrot.lane.b32.xlu1 %v4386_v36, %s4146_s9  ;;  %674 = vst.msk [vmem:[#allocation2 + $0x150] sm:$0xff] %vm464_vm0, %v615_v46  ;;  %v521_v56 = vrot.slane %v442_v44, 7  ;;  %v631_v57 = vsel %vm505_vm2, %v546_v42, 0.0  ;;  %675 = vst.msk [vmem:[#allocation2 + $0x158] sm:$0xff] %vm464_vm0, %v547_v54  ;;  %v460_v60 = vmax.f32 %v428_v45, 0.0  ;;  %v461_v61 = vmax.f32 %v429_v47, 0.0 }
  0x37   : > { %676 = vst.msk [vmem:[#allocation2 + $0x160] sm:$0x3] %vm467_vm1, %v631_v57  ;;  %v412_v62 = vadd.f32 %v4221_v1, %v373_v48  ;;  %v413_v63 = vadd.f32 %v4221_v1, %v374_v49  ;;  %v522_v2 = vrot.slane %v443_v55, 7  ;;  %v391_v4 = vmul.f32 %v4209_v0, %v352_v50  ;;  %v4467_v43 = vld [vmem:[#allocation2 + $0xfa] sm:$0xff]  ;;  %v4490_v57 = vld [vmem:[#allocation2 + $0x49] sm:$0xff] }
  0x38   : > { %v607_v3 = vsel %vm505_vm2, 0.0, %v521_v56  ;;  %v392_v5 = vmul.f32 %v4209_v0, %v353_v51  ;;  %v548_v6 = vrot.slane %v460_v60, 7  ;;  %v549_v7 = vrot.slane %v461_v61, 7  ;;  %v4469_v44 = vld [vmem:[#allocation2 + $0x3a] sm:$0xff] }
  0x39   : > { %650 = vst.msk [vmem:[#allocation2 + $0x90] sm:$0xff] %vm464_vm0, %v607_v3  ;;  %v444_v8 = vmax.f32 %v412_v62, 0.0  ;;  %v445_v9 = vmax.f32 %v413_v63, 0.0  ;;  %964 = vrot.lane.b32.xlu0 %v4413_v59, %s4146_s9  ;;  %v523_v13 = vsel %vm505_vm2, %v521_v56, %v522_v2  ;;  %v623_v14 = vsel %vm505_vm2, %v522_v2, 0.0  ;;  %v4488_v56 = vld [vmem:[#allocation2 + $0x109] sm:$0xff] }
  0x3a   : > { %1026 = vrot.lane.b32.xlu1 %v4411_v58, %s4147_s10  ;;  %v430_v15 = vadd.f32 %v4221_v1, %v391_v4  ;;  %v431_v16 = vadd.f32 %v4221_v1, %v392_v5  ;;  %651 = vst.msk [vmem:[#allocation2 + $0x98] sm:$0xff] %vm464_vm0, %v523_v13  ;;  %v550_v22 = vsel %vm505_vm2, %v548_v6, %v549_v7  ;;  %v616_v23 = vsel %vm505_vm2, 0.0, %v548_v6  ;;  %v4511_v3 = vld [vmem:[#allocation2 + $0x4a] sm:$0xff]  ;;  %v4547_v13 = vld [vmem:[#allocation2 + $0x62] sm:$0xff] }
  0x3b   : > { %652 = vst.msk [vmem:[#allocation2 + $0xa0] sm:$0x3] %vm467_vm1, %v623_v14  ;;  %v524_v24 = vrot.slane %v444_v8, 7  ;;  %v525_v25 = vrot.slane %v445_v9, 7  ;;  %v632_v26 = vsel %vm505_vm2, %v549_v7, 0.0  ;;  %v375_v29 = vmul.f32 %v4209_v0, %v336_v10  ;;  %v4513_v4 = vld [vmem:[#allocation2 + $0x51] sm:$0xff] }
  0x3c   : > { %677 = vst.msk [vmem:[#allocation2 + $0x168] sm:$0xff] %vm464_vm0, %v616_v23  ;;  %678 = vst.msk [vmem:[#allocation2 + $0x170] sm:$0xff] %vm464_vm0, %v550_v22  ;;  %v462_v27 = vmax.f32 %v430_v15, 0.0  ;;  %v463_v28 = vmax.f32 %v431_v16, 0.0  ;;  %v376_v39 = vmul.f32 %v4209_v0, %v337_v17  ;;  %v3643_v0 = vld [vmem:[%s5485_s2 + $0x18] sm:$0xf]  ;;  %v3994_v46 = vpack.c.bf16 %v3587_v33, %v3586_v32 }
  0x3d   : > { %v526_v34 = vsel %vm505_vm2, %v524_v24, %v525_v25  ;;  %v608_v35 = vsel %vm505_vm2, 0.0, %v524_v24  ;;  %v624_v38 = vsel %vm505_vm2, %v525_v25, 0.0  ;;  %679 = vst.msk [vmem:[#allocation2 + $0x178] sm:$0x3] %vm467_vm1, %v632_v26  ;;  %2336 = vrot.lane.b32.xlu0 %v4435_v19, %s4146_s9  ;;  %v414_v42 = vadd.f32 %v4221_v1, %v375_v29  ;;  %v4523_v5 = vld [vmem:[#allocation2 + $0x10a] sm:$0xff]  ;;  %v4531_v7 = vld [vmem:[#allocation2 + $0x112] sm:$0xff] }
  0x3e   : > { %2398 = vrot.lane.b32.xlu1 %v4433_v18, %s4147_s10  ;;  %653 = vst.msk [vmem:[#allocation2 + $0xa8] sm:$0xff] %vm464_vm0, %v608_v35  ;;  %654 = vst.msk [vmem:[#allocation2 + $0xb0] sm:$0xff] %vm464_vm0, %v526_v34  ;;  %v551_v40 = vrot.slane %v462_v27, 7  ;;  %v552_v41 = vrot.slane %v463_v28, 7  ;;  %v415_v45 = vadd.f32 %v4221_v1, %v376_v39  ;;  %v4012_v54 = vpack.c.bf16 %v3643_v0, %v3586_v32  ;;  %v4525_v6 = vld [vmem:[#allocation2 + $0x111] sm:$0xff]  ;;  %v4539_v9 = vld [vmem:[#allocation2 + $0x121] sm:$0xff] }
  0x3f   : > { %655 = vst.msk [vmem:[#allocation2 + $0xb8] sm:$0x3] %vm467_vm1, %v624_v38  ;;  %v446_v49 = vmax.f32 %v414_v42, 0.0  ;;  %v4148_v55 = vmov 0.0   ;;  %3996 = vmatprep.subr.msk.bf16.mxu0 %vm4494_vm5, %v3994_v46  ;;  %v4533_v8 = vld [vmem:[#allocation2 + $0x52] sm:$0xff]  ;;  %v4541_v10 = vld [vmem:[#allocation2 + $0x61] sm:$0xff] }
  0x40   : > { %v553_v47 = vsel %vm505_vm2, %v551_v40, %v552_v41  ;;  %v617_v48 = vsel %vm505_vm2, 0.0, %v551_v40  ;;  %v633_v50 = vsel %vm505_vm2, %v552_v41, 0.0  ;;  %v447_v51 = vmax.f32 %v415_v45, 0.0  ;;  %465 = vst.msk [vmem:[#allocation2] sm:$0xff] %vm464_vm0, %v4148_v55  ;;  %466 = vst.msk [vmem:[#allocation2 + $0x8] sm:$0xff] %vm464_vm0, %v4148_v55  ;;  %4014 = vmatprep.subr.msk.bf16.mxu1 %vm4494_vm5, %v4012_v54  ;;  %3999 = vmatpush3.bf16.msk.msra.mxu0 %vm4494_vm5, %v3994_v46  ;;  %v4549_v14 = vld [vmem:[#allocation2 + $0x69] sm:$0xff] }
  0x41   : > { %680 = vst.msk [vmem:[#allocation2 + $0x180] sm:$0xff] %vm464_vm0, %v617_v48  ;;  %681 = vst.msk [vmem:[#allocation2 + $0x188] sm:$0xff] %vm464_vm0, %v553_v47  ;;  %1028 = vrot.lane.b32.xlu0 %v4469_v44, %s4147_s10  ;;  %v527_v1 = vrot.slane %v446_v49, 7  ;;  %4017 = vmatpush3.bf16.msk.msra.mxu1 %vm4494_vm5, %v4012_v54  ;;  %v4555_v15 = vld [vmem:[#allocation2 + $0x122] sm:$0xff]  ;;  %v4563_v17 = vld [vmem:[#allocation2 + $0x12a] sm:$0xff] }
  0x42   : > { %682 = vst.msk [vmem:[#allocation2 + $0x190] sm:$0x3] %vm467_vm1, %v633_v50  ;;  %2400 = vrot.lane.b32.xlu1 %v4467_v43, %s4147_s10  ;;  %468 = vst.msk [vmem:[#allocation2 + $0x10] sm:$0x3] %vm467_vm1, %v4148_v55  ;;  %v528_v60 = vrot.slane %v447_v51, 7  ;;  %v4557_v16 = vld [vmem:[#allocation2 + $0x129] sm:$0xff] }
  0x43   : > { %470 = vst.msk [vmem:[#allocation2 + $0x198] sm:$0xff] %vm464_vm0, %v4148_v55  ;;  %471 = vst.msk [vmem:[#allocation2 + $0x1a0] sm:$0xff] %vm464_vm0, %v4148_v55  ;;  %v609_v61 = vsel %vm505_vm2, 0.0, %v527_v1  ;;  %v4565_v22 = vld [vmem:[#allocation2 + $0x6a] sm:$0xff]  ;;  %v4571_v23 = vld [vmem:[#allocation2 + $0x139] sm:$0xff] }
  0x44   : > { %472 = vst.msk [vmem:[#allocation2 + $0x1a8] sm:$0x3] %vm467_vm1, %v4148_v55  ;;  %v529_v63 = vsel %vm505_vm2, %v527_v1, %v528_v60  ;;  %v625_v2 = vsel %vm505_vm2, %v528_v60, 0.0  ;;  %v4573_v24 = vld [vmem:[#allocation2 + $0x79] sm:$0xff]  ;;  %v4581_v26 = vld [vmem:[#allocation2 + $0x81] sm:$0xff]  ;;  %v4603_v33 = vld [vmem:[#allocation2 + $0x151] sm:$0xff] }
  0x45   : > { %656 = vst.msk [vmem:[#allocation2 + $0xc0] sm:$0xff] %vm464_vm0, %v609_v61  ;;  %966 = vrot.lane.b32.xlu0 %v4490_v57, %s4146_s9  ;;  %657 = vst.msk [vmem:[#allocation2 + $0xc8] sm:$0xff] %vm464_vm0, %v529_v63  ;;  %v4579_v25 = vld [vmem:[#allocation2 + $0x7a] sm:$0xff]  ;;  %v4595_v29 = vld [vmem:[#allocation2 + $0x142] sm:$0xff] }
  0x46   : > { %2338 = vrot.lane.b32.xlu1 %v4488_v56, %s4146_s9  ;;  %658 = vst.msk [vmem:[#allocation2 + $0xd0] sm:$0x3] %vm467_vm1, %v625_v2  ;;  %v4587_v27 = vld [vmem:[#allocation2 + $0x13a] sm:$0xff]  ;;  %v4597_v32 = vld [vmem:[#allocation2 + $0x82] sm:$0xff]  ;;  %v4605_v34 = vld [vmem:[#allocation2 + $0x91] sm:$0xff] }
  0x47   : > { %v4589_v28 = vld [vmem:[#allocation2 + $0x141] sm:$0xff]  ;;  %v4611_v35 = vld [vmem:[#allocation2 + $0x92] sm:$0xff]  ;;  %v4635_v0 = vld [vmem:[#allocation2 + $0x169] sm:$0xff] }
  0x48   : > { %5508 = vst [vmem:[#allocation3_spill] sm:$0xff] %v4611_v35  ;;  %v4613_v38 = vld [vmem:[#allocation2 + $0x99] sm:$0xff]  ;;  %5514 = vst [vmem:[#allocation9_spill] sm:$0xff] %v4635_v0  ;;  %v4637_v45 = vld [vmem:[#allocation2 + $0xa9] sm:$0xff] }
  0x49   : > { %968 = vrot.lane.b32.xlu0 %v4513_v4, %s4146_s9  ;;  %5509 = vst [vmem:[#allocation4_spill] sm:$0xff] %v4613_v38  ;;  %v4619_v39 = vld [vmem:[#allocation2 + $0x152] sm:$0xff]  ;;  %v4627_v41 = vld [vmem:[#allocation2 + $0x15a] sm:$0xff]  ;;  %5515 = vst [vmem:[#allocation10_spill] sm:$0xff] %v4637_v45 }
  0x4a   : > { %1030 = vrot.lane.b32.xlu1 %v4511_v3, %s4147_s10  ;;  %5510 = vst [vmem:[#allocation5_spill] sm:$0xff] %v4619_v39  ;;  %v4621_v40 = vld [vmem:[#allocation2 + $0x159] sm:$0xff]  ;;  %5512 = vst [vmem:[#allocation7_spill] sm:$0xff] %v4627_v41  ;;  %v4643_v46 = vld [vmem:[#allocation2 + $0xaa] sm:$0xff] }
  0x4b   : > { %5511 = vst [vmem:[#allocation6_spill] sm:$0xff] %v4621_v40  ;;  %v4629_v42 = vld [vmem:[#allocation2 + $0x9a] sm:$0xff]  ;;  %5516 = vst [vmem:[#allocation11_spill] sm:$0xff] %v4643_v46  ;;  %v4645_v47 = vld [vmem:[#allocation2 + $0xb1] sm:$0xff] }
  0x4c   : > { %5513 = vst [vmem:[#allocation8_spill] sm:$0xff] %v4629_v42  ;;  %5517 = vst [vmem:[#allocation12_spill] sm:$0xff] %v4645_v47  ;;  %v4651_v48 = vld [vmem:[#allocation2 + $0x16a] sm:$0xff]  ;;  %v4659_v50 = vld [vmem:[#allocation2 + $0x172] sm:$0xff] }
  0x4d   : > { %2340 = vrot.lane.b32.xlu0 %v4525_v6, %s4146_s9  ;;  %5518 = vst [vmem:[#allocation13_spill] sm:$0xff] %v4651_v48  ;;  %v4653_v49 = vld [vmem:[#allocation2 + $0x171] sm:$0xff]  ;;  %5520 = vst [vmem:[#allocation15_spill] sm:$0xff] %v4659_v50  ;;  %v2296_v54 = vld [vmem:[#allocation2 + $0x181] sm:$0xff] }
  0x4e   : > { %2402 = vrot.lane.b32.xlu1 %v4523_v5, %s4147_s10  ;;  %5519 = vst [vmem:[#allocation14_spill] sm:$0xff] %v4653_v49  ;;  %v4661_v51 = vld [vmem:[#allocation2 + $0xb2] sm:$0xff]  ;;  %v924_v1 = vld [vmem:[#allocation2 + $0xc1] sm:$0xff]  ;;  %v925_v60 = vld [vmem:[#allocation2 + $0xc9] sm:$0xff] }
  0x4f   : > { %5521 = vst [vmem:[#allocation16_spill] sm:$0xff] %v4661_v51  ;;  %v4669_v55 = vld [vmem:[#allocation2 + $0xc2] sm:$0xff]  ;;  %v4671_v2 = vld [vmem:[#allocation2 + $0x18] sm:$0xff] }
  0x50   : > { %5522 = vst [vmem:[#allocation17_spill] sm:$0xff] %v4671_v2 }
  0x51   : > { %1032 = vrot.lane.b32.xlu0 %v4533_v8, %s4147_s10 }
  0x52   : > { %2404 = vrot.lane.b32.xlu1 %v4531_v7, %s4147_s10 }
  0x55   : > { %970 = vrot.lane.b32.xlu0 %v4541_v10, %s4146_s9 }
  0x56   : > { %2342 = vrot.lane.b32.xlu1 %v4539_v9, %s4146_s9 }
  0x59   : > { %972 = vrot.lane.b32.xlu0 %v4549_v14, %s4146_s9 }
  0x5a   : > { %1034 = vrot.lane.b32.xlu1 %v4547_v13, %s4147_s10 }
  0x5d   : > { %2344 = vrot.lane.b32.xlu0 %v4557_v16, %s4146_s9 }
  0x5e   : > { %2406 = vrot.lane.b32.xlu1 %v4555_v15, %s4147_s10 }
  0x61   : > { %1036 = vrot.lane.b32.xlu0 %v4565_v22, %s4147_s10 }
  0x62   : > { %2408 = vrot.lane.b32.xlu1 %v4563_v17, %s4147_s10 }
  0x65   : > { %974 = vrot.lane.b32.xlu0 %v4573_v24, %s4146_s9 }
  0x66   : > { %2346 = vrot.lane.b32.xlu1 %v4571_v23, %s4146_s9 }
  0x69   : > { %976 = vrot.lane.b32.xlu0 %v4581_v26, %s4146_s9 }
  0x6a   : > { %1038 = vrot.lane.b32.xlu1 %v4579_v25, %s4147_s10 }
  0x6d   : > { %2348 = vrot.lane.b32.xlu0 %v4589_v28, %s4146_s9 }
  0x6e   : > { %2410 = vrot.lane.b32.xlu1 %v4587_v27, %s4147_s10 }
  0x71   : > { %1040 = vrot.lane.b32.xlu0 %v4597_v32, %s4147_s10 }
  0x72   : > { %2412 = vrot.lane.b32.xlu1 %v4595_v29, %s4147_s10 }
  0x75   : > { %978 = vrot.lane.b32.xlu0 %v4605_v34, %s4146_s9 }
  0x76   : > { %2350 = vrot.lane.b32.xlu1 %v4603_v33, %s4146_s9 }
  0x79   : > { %980 = vrot.lane.b32.xlu0 %v4613_v38, %s4146_s9 }
  0x7a   : > { %1042 = vrot.lane.b32.xlu1 %v4611_v35, %s4147_s10 }
  0x7d   : > { %2352 = vrot.lane.b32.xlu0 %v4621_v40, %s4146_s9  ;;  %v699_v40 = vld [vmem:[#allocation2 + $0x1] sm:$0xff] }
  0x7e   : > { %2414 = vrot.lane.b32.xlu1 %v4619_v39, %s4147_s10 }
  0x81   : > { %1044 = vrot.lane.b32.xlu0 %v4629_v42, %s4147_s10 }
  0x82   : > { %2416 = vrot.lane.b32.xlu1 %v4627_v41, %s4147_s10 }
  0x85   : > { %982 = vrot.lane.b32.xlu0 %v4637_v45, %s4146_s9  ;;  %v2313_v45 = vld [vmem:[#allocation2 + $0x18a] sm:$0xff] }
  0x86   : > { %2354 = vrot.lane.b32.xlu1 %v4635_v0, %s4146_s9  ;;  %v941_v0 = vld [vmem:[#allocation2 + $0xca] sm:$0xff] }
  0x89   : > { %984 = vrot.lane.b32.xlu0 %v4645_v47, %s4146_s9  ;;  %v4678_v47 = vld [vmem:[#allocation2 + $0xd8] sm:$0xff] }
  0x8a   : > { %1046 = vrot.lane.b32.xlu1 %v4643_v46, %s4147_s10  ;;  %5523 = vst [vmem:[#allocation18_spill] sm:$0xff] %v4678_v47 }
  0x8d   : > { %2356 = vrot.lane.b32.xlu0 %v4653_v49, %s4146_s9 }
  0x8e   : > { %2418 = vrot.lane.b32.xlu1 %v4651_v48, %s4147_s10 }
  0x91   : > { %1048 = vrot.lane.b32.xlu0 %v4661_v51, %s4147_s10  ;;  %v2312_v51 = vld [vmem:[#allocation2 + $0x182] sm:$0xff] }
  0x92   : > { %2420 = vrot.lane.b32.xlu1 %v4659_v50, %s4147_s10  ;;  %v2297_v50 = vld [vmem:[#allocation2 + $0x189] sm:$0xff] }
  0x93   : > { %v5539_v62 = vld [vmem:[#allocation18_spill] sm:$0xff] }
  0x95   : > { %986 = vrot.lane.b32.xlu0 %v924_v1, %s4146_s9 }
  0x96   : > { %2358 = vrot.lane.b32.xlu1 %v2296_v54, %s4146_s9 }
  0x97   : > { %v959_v63 = vpop.permute.xlu0 %958 }
  0x98   : > { %v961_v61 = vpop.permute.xlu1 %960  ;;  %v1070_v54 = vsel %vm464_vm0, %v4671_v2, %v959_v63  ;;  %v892_v2 = vld [vmem:[%s5485_s2] sm:$0xff] }
  0x99   : > { %988 = vrot.lane.b32.xlu0 %v925_v60, %s4146_s9 }
  0x9a   : > { %1050 = vrot.lane.b32.xlu1 %v4669_v55, %s4147_s10 }
  0x9b   : > { %v2331_v48 = vpop.permute.xlu0 %2330 }
  0x9c   : > { %v1023_v49 = vpop.permute.xlu1 %1022  ;;  %v2442_v42 = vsel %vm464_vm0, %v4678_v47, %v2331_v48 }
  0x9d   : > { %v1086_v46 = vsel %vm875_vm6, %v1070_v54, %v1023_v49  ;;  %2360 = vrot.lane.b32.xlu0 %v2297_v50, %s4146_s9  ;;  %v893_v49 = vld [vmem:[%s5485_s2 + $0x8] sm:$0xf] }
  0x9e   : > { %2422 = vrot.lane.b32.xlu1 %v2312_v51, %s4147_s10  ;;  %3830 = vmatprep.mubr.msk.f32.mxu0 %vm1105_vm7, %v1086_v46  ;;  %v2264_v50 = vld [vmem:[%s5485_s2 + $0x8] sm:$0xf]  ;;  %v4695_v46 = vld [vmem:[#allocation2 + $0x20] sm:$0xff]  ;;  %v4000_v54 = vpack.c.bf16 %v893_v49, %v892_v2 }
  0x9f   : > { %v2333_v63 = vpop.permute.xlu0 %2332  ;;  %v4697_v51 = vld [vmem:[#allocation2 + $0xe0] sm:$0xff]  ;;  %v4018_v47 = vpack.c.bf16 %v2264_v50, %v892_v2  ;;  %v1071_v39 = vsel %vm464_vm0, %v4695_v46, %v961_v61  ;;  %v700_v2 = vld [vmem:[#allocation2 + $0x9] sm:$0xff] }
  0xa0   : > { %v2395_v41 = vpop.permute.xlu1 %2394  ;;  %4002 = vmatprep.subr.msk.bf16.mxu0 %vm4494_vm5, %v4000_v54  ;;  %v2443_v38 = vsel %vm464_vm0, %v4697_v51, %v2333_v63  ;;  %v715_v61 = vld [vmem:[#allocation2 + $0x2] sm:$0xff] }
  0xa1   : > { %v2458_v48 = vsel %vm875_vm6, %v2442_v42, %v2395_v41  ;;  %1052 = vrot.lane.b32.xlu0 %v941_v0, %s4147_s10  ;;  %4020 = vmatprep.subr.msk.bf16.mxu1 %vm4494_vm5, %v4018_v47 }
  0xa2   : > { %2424 = vrot.lane.b32.xlu1 %v2313_v45, %s4147_s10  ;;  %3914 = vmatprep.mubr.msk.f32.mxu1 %vm1105_vm7, %v2458_v48 }
  0xa3   : > { %v1025_v41 = vpop.permute.xlu0 %1024 }
  0xa4   : > { %v2397_v35 = vpop.permute.xlu1 %2396  ;;  %v1087_v45 = vsel %vm875_vm6, %v1071_v39, %v1025_v41 }
  0xa5   : > { %v2459_v42 = vsel %vm875_vm6, %v2443_v38, %v2397_v35  ;;  %747 = vrot.lane.b32.xlu0 %v699_v40, %s4146_s9  ;;  %3831 = vmatmul.mubr.msk.f32.vlgmr.msra.gmra.mrb[0].mxu0 %vm1105_vm7, %v1087_v45  ;;  %v4721_v35 = vld [vmem:[#allocation2 + $0x30] sm:$0xff] }
  0xa6   : > { %2119 = vrot.lane.b32.xlu1 %v924_v1, %s4146_s9  ;;  %3915 = vmatmul.mubr.msk.f32.vlgmr.msra.gmra.mrb[0].mxu1 %vm1105_vm7, %v2459_v42  ;;  %v4727_v1 = vld [vmem:[#allocation2 + $0xf0] sm:$0xff]  ;;  %v4736_v42 = vld [vmem:[#allocation2 + $0x38] sm:$0xff] }
  0xa7   : > { %v963_v49 = vpop.permute.xlu0 %962  ;;  %4005 = vmatpush3.bf16.msk.msra.mxu0 %vm4494_vm5, %v4000_v54  ;;  %4023 = vmatpush3.bf16.msk.msra.mxu1 %vm4494_vm5, %v4018_v47  ;;  %v716_v47 = vld [vmem:[#allocation2 + $0xa] sm:$0xff] }
  0xa8   : > { %v2335_v63 = vpop.permute.xlu1 %2334  ;;  %v1072_v38 = vsel %vm464_vm0, %v4721_v35, %v963_v49 }
  0xa9   : > { %749 = vrot.lane.b32.xlu0 %v700_v2, %s4146_s9  ;;  %v2444_v48 = vsel %vm464_vm0, %v4727_v1, %v2335_v63 }
  0xaa   : > { %811 = vrot.lane.b32.xlu1 %v715_v61, %s4147_s10  ;;  %v4739_v61 = vld [vmem:[#allocation2 + $0xf8] sm:$0xff] }
  0xab   : > { %v965_v40 = vpop.permute.xlu0 %964 }
  0xac   : > { %v1027_v39 = vpop.permute.xlu1 %1026 }
  0xad   : > { %v1088_v50 = vsel %vm875_vm6, %v1072_v38, %v1027_v39  ;;  %2121 = vrot.lane.b32.xlu0 %v925_v60, %s4146_s9 }
  0xae   : > { %2183 = vrot.lane.b32.xlu1 %v4669_v55, %s4147_s10  ;;  %3833 = vmatprep.mubr.msk.f32.mxu0 %vm1105_vm7, %v1088_v50  ;;  %v1073_v55 = vsel %vm464_vm0, %v4736_v42, %v965_v40  ;;  %v4756_v40 = vld [vmem:[#allocation2 + $0x48] sm:$0xff] }
  0xaf   : > { %v2337_v41 = vpop.permute.xlu0 %2336 }
  0xb0   : > { %v2399_v54 = vpop.permute.xlu1 %2398  ;;  %v2445_v60 = vsel %vm464_vm0, %v4739_v61, %v2337_v41  ;;  %v4774_v41 = vld [vmem:[#allocation2 + $0x50] sm:$0xff] }
  0xb1   : > { %v2460_v45 = vsel %vm875_vm6, %v2444_v48, %v2399_v54  ;;  %813 = vrot.lane.b32.xlu0 %v716_v47, %s4147_s10  ;;  %v4764_v48 = vld [vmem:[#allocation2 + $0x108] sm:$0xff] }
  0xb2   : > { %2185 = vrot.lane.b32.xlu1 %v941_v0, %s4147_s10  ;;  %3917 = vmatprep.mubr.msk.f32.mxu1 %vm1105_vm7, %v2460_v45 }
  0xb3   : > { %v1029_v63 = vpop.permute.xlu0 %1028 }
  0xb4   : > { %v2401_v2 = vpop.permute.xlu1 %2400  ;;  %v1089_v38 = vsel %vm875_vm6, %v1073_v55, %v1029_v63  ;;  %v4777_v55 = vld [vmem:[#allocation2 + $0x110] sm:$0xff] }
  0xb5   : > { %v2461_v49 = vsel %vm875_vm6, %v2445_v60, %v2401_v2  ;;  %3834 = vmatmul.mubr.msk.f32.gmra.mrb[2].mxu0 %vm1105_vm7, %v1089_v38  ;;  %751 = vrot.lane.b32.xlu0 %v4297_v21, %s4146_s9  ;;  %v4796_v38 = vld [vmem:[#allocation2 + $0x60] sm:$0xff] }
  0xb6   : > { %2123 = vrot.lane.b32.xlu1 %v4308_v31, %s4146_s9  ;;  %3918 = vmatmul.mubr.msk.f32.gmra.mrb[2].mxu1 %vm1105_vm7, %v2461_v49 }
  0xb7   : > { %v967_v39 = vpop.permute.xlu0 %966 }
  0xb8   : > { %v2339_v0 = vpop.permute.xlu1 %2338  ;;  %v1074_v31 = vsel %vm464_vm0, %v4756_v40, %v967_v39 }
  0xb9   : > { %753 = vrot.lane.b32.xlu0 %v4295_v20, %s4146_s9  ;;  %v2446_v20 = vsel %vm464_vm0, %v4764_v48, %v2339_v0 }
  0xba   : > { %815 = vrot.lane.b32.xlu1 %v4306_v30, %s4147_s10 }
  0xbb   : > { %v969_v47 = vpop.permute.xlu0 %968 }
  0xbc   : > { %v1031_v50 = vpop.permute.xlu1 %1030 }
  0xbd   : > { %v1090_v54 = vsel %vm875_vm6, %v1074_v31, %v1031_v50  ;;  %2125 = vrot.lane.b32.xlu0 %v4338_v53, %s4146_s9  ;;  %v4804_v50 = vld [vmem:[#allocation2 + $0x120] sm:$0xff] }
  0xbe   : > { %3836 = vmatprep.mubr.msk.f32.mxu0 %vm1105_vm7, %v1090_v54  ;;  %2187 = vrot.lane.b32.xlu1 %v4336_v52, %s4147_s10  ;;  %v1075_v52 = vsel %vm464_vm0, %v4774_v41, %v969_v47  ;;  %v4814_v47 = vld [vmem:[#allocation2 + $0x68] sm:$0xff] }
  0xbf   : > { %v2341_v30 = vpop.permute.xlu0 %2340 }
  0xc0   : > { %v2403_v21 = vpop.permute.xlu1 %2402  ;;  %v2447_v53 = vsel %vm464_vm0, %v4777_v55, %v2341_v30 }
  0xc1   : > { %v2462_v45 = vsel %vm875_vm6, %v2446_v20, %v2403_v21  ;;  %817 = vrot.lane.b32.xlu0 %v4361_v12, %s4147_s10  ;;  %v4817_v20 = vld [vmem:[#allocation2 + $0x128] sm:$0xff] }
  0xc2   : > { %3920 = vmatprep.mubr.msk.f32.mxu1 %vm1105_vm7, %v2462_v45  ;;  %2189 = vrot.lane.b32.xlu1 %v4359_v11, %s4147_s10 }
  0xc3   : > { %v1033_v2 = vpop.permute.xlu0 %1032 }
  0xc4   : > { %v2405_v60 = vpop.permute.xlu1 %2404  ;;  %v1091_v49 = vsel %vm875_vm6, %v1075_v52, %v1033_v2 }
  0xc5   : > { %v2463_v63 = vsel %vm875_vm6, %v2447_v53, %v2405_v60  ;;  %3837 = vmatmul.mubr.msk.f32.gmra.mrb[4].mxu0 %vm1105_vm7, %v1091_v49  ;;  %755 = vrot.lane.b32.xlu0 %v4388_v37, %s4146_s9  ;;  %v4836_v53 = vld [vmem:[#allocation2 + $0x78] sm:$0xff] }
  0xc6   : > { %3921 = vmatmul.mubr.msk.f32.gmra.mrb[4].mxu1 %vm1105_vm7, %v2463_v63  ;;  %2127 = vrot.lane.b32.xlu1 %v4386_v36, %s4146_s9  ;;  %v4844_v49 = vld [vmem:[#allocation2 + $0x138] sm:$0xff] }
  0xc7   : > { %v971_v12 = vpop.permute.xlu0 %970 }
  0xc8   : > { %v2343_v11 = vpop.permute.xlu1 %2342  ;;  %v1076_v0 = vsel %vm464_vm0, %v4796_v38, %v971_v12 }
  0xc9   : > { %757 = vrot.lane.b32.xlu0 %v4413_v59, %s4146_s9  ;;  %v2448_v37 = vsel %vm464_vm0, %v4804_v50, %v2343_v11  ;;  %v4854_v11 = vld [vmem:[#allocation2 + $0x80] sm:$0xff] }
  0xca   : > { %819 = vrot.lane.b32.xlu1 %v4411_v58, %s4147_s10 }
  0xcb   : > { %v973_v31 = vpop.permute.xlu0 %972 }
  0xcc   : > { %v1035_v39 = vpop.permute.xlu1 %1034 }
  0xcd   : > { %v1092_v36 = vsel %vm875_vm6, %v1076_v0, %v1035_v39  ;;  %2129 = vrot.lane.b32.xlu0 %v4435_v19, %s4146_s9  ;;  %v4857_v0 = vld [vmem:[#allocation2 + $0x140] sm:$0xff] }
  0xce   : > { %3839 = vmatprep.mubr.msk.f32.mxu0 %vm1105_vm7, %v1092_v36  ;;  %2191 = vrot.lane.b32.xlu1 %v4433_v18, %s4147_s10  ;;  %v1077_v18 = vsel %vm464_vm0, %v4814_v47, %v973_v31 }
  0xcf   : > { %v2345_v59 = vpop.permute.xlu0 %2344 }
  0xd0   : > { %v2407_v58 = vpop.permute.xlu1 %2406  ;;  %v2449_v19 = vsel %vm464_vm0, %v4817_v20, %v2345_v59 }
  0xd1   : > { %v2464_v54 = vsel %vm875_vm6, %v2448_v37, %v2407_v58  ;;  %821 = vrot.lane.b32.xlu0 %v4469_v44, %s4147_s10  ;;  %v4876_v58 = vld [vmem:[#allocation2 + $0x90] sm:$0xff] }
  0xd2   : > { %3923 = vmatprep.mubr.msk.f32.mxu1 %vm1105_vm7, %v2464_v54  ;;  %2193 = vrot.lane.b32.xlu1 %v4467_v43, %s4147_s10 }
  0xd3   : > { %v1037_v30 = vpop.permute.xlu0 %1036 }
  0xd4   : > { %v2409_v21 = vpop.permute.xlu1 %2408  ;;  %v1093_v52 = vsel %vm875_vm6, %v1077_v18, %v1037_v30 }
  0xd5   : > { %v2465_v45 = vsel %vm875_vm6, %v2449_v19, %v2409_v21  ;;  %3840 = vmatmul.mubr.msk.f32.gmra.mrb[6].mxu0 %vm1105_vm7, %v1093_v52  ;;  %759 = vrot.lane.b32.xlu0 %v4490_v57, %s4146_s9  ;;  %v4884_v19 = vld [vmem:[#allocation2 + $0x150] sm:$0xff]  ;;  %v4894_v21 = vld [vmem:[#allocation2 + $0x98] sm:$0xff] }
  0xd6   : > { %3924 = vmatmul.mubr.msk.f32.gmra.mrb[6].mxu1 %vm1105_vm7, %v2465_v45  ;;  %2131 = vrot.lane.b32.xlu1 %v4488_v56, %s4146_s9  ;;  %v4897_v45 = vld [vmem:[#allocation2 + $0x158] sm:$0xff] }
  0xd7   : > { %v975_v44 = vpop.permute.xlu0 %974 }
  0xd8   : > { %v2347_v43 = vpop.permute.xlu1 %2346  ;;  %v1078_v60 = vsel %vm464_vm0, %v4836_v53, %v975_v44 }
  0xd9   : > { %761 = vrot.lane.b32.xlu0 %v4513_v4, %s4146_s9  ;;  %v2450_v57 = vsel %vm464_vm0, %v4844_v49, %v2347_v43 }
  0xda   : > { %823 = vrot.lane.b32.xlu1 %v4511_v3, %s4147_s10 }
  0xdb   : > { %v977_v63 = vpop.permute.xlu0 %976 }
  0xdc   : > { %v1039_v2 = vpop.permute.xlu1 %1038 }
  0xdd   : > { %v1094_v56 = vsel %vm875_vm6, %v1078_v60, %v1039_v2  ;;  %2133 = vrot.lane.b32.xlu0 %v4525_v6, %s4146_s9  ;;  %v4916_v2 = vld [vmem:[#allocation2 + $0xa8] sm:$0xff] }
  0xde   : > { %3842 = vmatprep.mubr.msk.f32.mxu0 %vm1105_vm7, %v1094_v56  ;;  %2195 = vrot.lane.b32.xlu1 %v4523_v5, %s4147_s10  ;;  %v1079_v5 = vsel %vm464_vm0, %v4854_v11, %v977_v63 }
  0xdf   : > { %v2349_v4 = vpop.permute.xlu0 %2348 }
  0xe0   : > { %v2411_v3 = vpop.permute.xlu1 %2410  ;;  %v2451_v6 = vsel %vm464_vm0, %v4857_v0, %v2349_v4  ;;  %v4934_v4 = vld [vmem:[#allocation2 + $0xb0] sm:$0xff] }
  0xe1   : > { %v2466_v12 = vsel %vm875_vm6, %v2450_v57, %v2411_v3  ;;  %825 = vrot.lane.b32.xlu0 %v4533_v8, %s4147_s10  ;;  %v4924_v3 = vld [vmem:[#allocation2 + $0x168] sm:$0xff] }
  0xe2   : > { %3926 = vmatprep.mubr.msk.f32.mxu1 %vm1105_vm7, %v2466_v12  ;;  %2197 = vrot.lane.b32.xlu1 %v4531_v7, %s4147_s10 }
  0xe3   : > { %v1041_v31 = vpop.permute.xlu0 %1040 }
  0xe4   : > { %v2413_v39 = vpop.permute.xlu1 %2412  ;;  %v1095_v37 = vsel %vm875_vm6, %v1079_v5, %v1041_v31  ;;  %v4937_v5 = vld [vmem:[#allocation2 + $0x170] sm:$0xff] }
  0xe5   : > { %v2467_v36 = vsel %vm875_vm6, %v2451_v6, %v2413_v39  ;;  %3843 = vmatmul.mubr.msk.f32.gmra.mrb[8].mxu0 %vm1105_vm7, %v1095_v37  ;;  %763 = vrot.lane.b32.xlu0 %v4541_v10, %s4146_s9  ;;  %v908_v37 = vld [vmem:[#allocation2 + $0xc0] sm:$0xff] }
  0xe6   : > { %3927 = vmatmul.mubr.msk.f32.gmra.mrb[8].mxu1 %vm1105_vm7, %v2467_v36  ;;  %2135 = vrot.lane.b32.xlu1 %v4539_v9, %s4146_s9 }
  0xe7   : > { %v979_v8 = vpop.permute.xlu0 %978 }
  0xe8   : > { %v2351_v7 = vpop.permute.xlu1 %2350  ;;  %v1080_v59 = vsel %vm464_vm0, %v4876_v58, %v979_v8  ;;  %v5525_v8 = vld [vmem:[#allocation4_spill] sm:$0xff] }
  0xe9   : > { %765 = vrot.lane.b32.xlu0 %v4549_v14, %s4146_s9  ;;  %v2452_v10 = vsel %vm464_vm0, %v4884_v19, %v2351_v7  ;;  %v5524_v7 = vld [vmem:[#allocation3_spill] sm:$0xff] }
  0xea   : > { %827 = vrot.lane.b32.xlu1 %v4547_v13, %s4147_s10 }
  0xeb   : > { %v981_v18 = vpop.permute.xlu0 %980 }
  0xec   : > { %v1043_v54 = vpop.permute.xlu1 %1042 }
  0xed   : > { %v1096_v9 = vsel %vm875_vm6, %v1080_v59, %v1043_v54  ;;  %2137 = vrot.lane.b32.xlu0 %v4557_v16, %s4146_s9 }
  0xee   : > { %3845 = vmatprep.mubr.msk.f32.mxu0 %vm1105_vm7, %v1096_v9  ;;  %2199 = vrot.lane.b32.xlu1 %v4555_v15, %s4147_s10  ;;  %v1081_v15 = vsel %vm464_vm0, %v4894_v21, %v981_v18  ;;  %v2280_v9 = vld [vmem:[#allocation2 + $0x180] sm:$0xff] }
  0xef   : > { %v2353_v14 = vpop.permute.xlu0 %2352 }
  0xf0   : > { %v2415_v13 = vpop.permute.xlu1 %2414  ;;  %v2453_v16 = vsel %vm464_vm0, %v4897_v45, %v2353_v14 }
  0xf1   : > { %v2468_v30 = vsel %vm875_vm6, %v2452_v10, %v2415_v13  ;;  %829 = vrot.lane.b32.xlu0 %v4565_v22, %s4147_s10 }
  0xf2   : > { %3929 = vmatprep.mubr.msk.f32.mxu1 %vm1105_vm7, %v2468_v30  ;;  %2201 = vrot.lane.b32.xlu1 %v4563_v17, %s4147_s10 }
  0xf3   : > { %v1045_v43 = vpop.permute.xlu0 %1044 }
  0xf4   : > { %v2417_v52 = vpop.permute.xlu1 %2416  ;;  %v1097_v60 = vsel %vm875_vm6, %v1081_v15, %v1045_v43  ;;  %v909_v15 = vld [vmem:[#allocation2 + $0xc8] sm:$0xff]  ;;  %v5528_v43 = vld [vmem:[#allocation7_spill] sm:$0xff] }
  0xf5   : > { %v2469_v44 = vsel %vm875_vm6, %v2453_v16, %v2417_v52  ;;  %3846 = vmatmul.mubr.msk.f32.gmra.mrb[10].mxu0 %vm1105_vm7, %v1097_v60  ;;  %767 = vrot.lane.b32.xlu0 %v4573_v24, %s4146_s9  ;;  %v2281_v52 = vld [vmem:[#allocation2 + $0x188] sm:$0xff] }
  0xf6   : > { %3930 = vmatmul.mubr.msk.f32.gmra.mrb[10].mxu1 %vm1105_vm7, %v2469_v44  ;;  %2139 = vrot.lane.b32.xlu1 %v4571_v23, %s4146_s9  ;;  %v5529_v44 = vld [vmem:[#allocation8_spill] sm:$0xff] }
  0xf7   : > { %v983_v22 = vpop.permute.xlu0 %982 }
  0xf8   : > { %v2355_v17 = vpop.permute.xlu1 %2354  ;;  %v1082_v63 = vsel %vm464_vm0, %v4916_v2, %v983_v22 }
  0xf9   : > { %769 = vrot.lane.b32.xlu0 %v4581_v26, %s4146_s9  ;;  %v2454_v24 = vsel %vm464_vm0, %v4924_v3, %v2355_v17 }
  0xfa   : > { %831 = vrot.lane.b32.xlu1 %v4579_v25, %s4147_s10 }
  0xfb   : > { %v985_v57 = vpop.permute.xlu0 %984 }
  0xfc   : > { %v1047_v56 = vpop.permute.xlu1 %1046 }
  0xfd   : > { %v1098_v23 = vsel %vm875_vm6, %v1082_v63, %v1047_v56  ;;  %2141 = vrot.lane.b32.xlu0 %v4589_v28, %s4146_s9 }
  0xfe   : > { %3848 = vmatprep.mubr.msk.f32.mxu0 %vm1105_vm7, %v1098_v23  ;;  %2203 = vrot.lane.b32.xlu1 %v4587_v27, %s4147_s10  ;;  %v1083_v27 = vsel %vm464_vm0, %v4934_v4, %v985_v57  ;;  %v5530_v23 = vld [vmem:[#allocation9_spill] sm:$0xff] }
  0xff   : > { %v2357_v26 = vpop.permute.xlu0 %2356 }
 0x100   : > { %v2419_v25 = vpop.permute.xlu1 %2418  ;;  %v2455_v28 = vsel %vm464_vm0, %v4937_v5, %v2357_v26 }
 0x101   : > { %v2470_v12 = vsel %vm875_vm6, %v2454_v24, %v2419_v25  ;;  %833 = vrot.lane.b32.xlu0 %v4597_v32, %s4147_s10  ;;  %v5531_v24 = vld [vmem:[#allocation10_spill] sm:$0xff] }
 0x102   : > { %3932 = vmatprep.mubr.msk.f32.mxu1 %vm1105_vm7, %v2470_v12  ;;  %2205 = vrot.lane.b32.xlu1 %v4595_v29, %s4147_s10  ;;  %v683_v12 = vld [vmem:[#allocation2] sm:$0xff] }
 0x103   : > { %v1049_v39 = vpop.permute.xlu0 %1048 }
 0x104   : > { %v2421_v6 = vpop.permute.xlu1 %2420  ;;  %v1099_v36 = vsel %vm875_vm6, %v1083_v27, %v1049_v39  ;;  %v5532_v27 = vld [vmem:[#allocation11_spill] sm:$0xff] }
 0x105   : > { %v2471_v31 = vsel %vm875_vm6, %v2455_v28, %v2421_v6  ;;  %3849 = vmatmul.mubr.msk.f32.gmra.mrb[12].mxu0 %vm1105_vm7, %v1099_v36  ;;  %771 = vrot.lane.b32.xlu0 %v4605_v34, %s4146_s9  ;;  %v5527_v34 = vld [vmem:[#allocation6_spill] sm:$0xff]  ;;  %v5533_v28 = vld [vmem:[#allocation12_spill] sm:$0xff] }
 0x106   : > { %3933 = vmatmul.mubr.msk.f32.gmra.mrb[12].mxu1 %vm1105_vm7, %v2471_v31  ;;  %2143 = vrot.lane.b32.xlu1 %v4603_v33, %s4146_s9  ;;  %v5526_v33 = vld [vmem:[#allocation5_spill] sm:$0xff] }
 0x107   : > { %v987_v32 = vpop.permute.xlu0 %986 }
 0x108   : > { %v2359_v29 = vpop.permute.xlu1 %2358  ;;  %v1084_v59 = vsel %vm464_vm0, %v908_v37, %v987_v32  ;;  %v5535_v32 = vld [vmem:[#allocation14_spill] sm:$0xff] }
 0x109   : > { %773 = vrot.lane.b32.xlu0 %v5525_v8, %s4146_s9  ;;  %v2456_v13 = vsel %vm464_vm0, %v2280_v9, %v2359_v29  ;;  %v5534_v29 = vld [vmem:[#allocation13_spill] sm:$0xff]  ;;  %v684_v8 = vld [vmem:[#allocation2 + $0x8] sm:$0xff] }
 0x10a   : > { %835 = vrot.lane.b32.xlu1 %v5524_v7, %s4147_s10  ;;  %v3622_v9 = vld [vmem:[%s5485_s2 + $0x20] sm:$0xff] }
 0x10b   : > { %v989_v18 = vpop.permute.xlu0 %988 }
 0x10c   : > { %v1051_v54 = vpop.permute.xlu1 %1050  ;;  %v1085_v60 = vsel %vm464_vm0, %v909_v15, %v989_v18 }
 0x10d   : > { %v1100_v10 = vsel %vm875_vm6, %v1084_v59, %v1051_v54  ;;  %2145 = vrot.lane.b32.xlu0 %v5527_v34, %s4146_s9 }
 0x10e   : > { %3851 = vmatprep.mubr.msk.f32.mxu0 %vm1105_vm7, %v1100_v10  ;;  %2207 = vrot.lane.b32.xlu1 %v5526_v33, %s4147_s10  ;;  %v3623_v10 = vld [vmem:[%s5485_s2 + $0x28] sm:$0xf] }
 0x10f   : > { %v2361_v30 = vpop.permute.xlu0 %2360  ;;  %v3679_v33 = vld [vmem:[%s5485_s2 + $0x28] sm:$0xf] }
 0x110   : > { %v2423_v14 = vpop.permute.xlu1 %2422  ;;  %v2457_v17 = vsel %vm464_vm0, %v2281_v52, %v2361_v30  ;;  %v4024_v34 = vpack.c.bf16 %v3679_v33, %v3622_v9 }
 0x111   : > { %v2472_v16 = vsel %vm875_vm6, %v2456_v13, %v2423_v14  ;;  %837 = vrot.lane.b32.xlu0 %v5529_v44, %s4147_s10  ;;  %v5536_v13 = vld [vmem:[#allocation15_spill] sm:$0xff]  ;;  %v5537_v14 = vld [vmem:[#allocation16_spill] sm:$0xff] }
 0x112   : > { %3935 = vmatprep.mubr.msk.f32.mxu1 %vm1105_vm7, %v2472_v16  ;;  %2209 = vrot.lane.b32.xlu1 %v5528_v43, %s4147_s10  ;;  %v2885_v44 = vld [vmem:[#allocation2 + $0xf1] sm:$0xff] }
 0x113   : > { %v1053_v63 = vpop.permute.xlu0 %1052  ;;  %4026 = vmatprep.subr.msk.bf16.mxu1 %vm4494_vm5, %v4024_v34 }
 0x114   : > { %v2425_v22 = vpop.permute.xlu1 %2424  ;;  %v1101_v57 = vsel %vm875_vm6, %v1085_v60, %v1053_v63  ;;  %v1516_v60 = vld [vmem:[#allocation2 + $0x31] sm:$0xff] }
 0x115   : > { %v2473_v56 = vsel %vm875_vm6, %v2457_v17, %v2425_v22  ;;  %3852 = vmatmul.mubr.msk.f32.gmra.mrb[14].mxu0 %vm1105_vm7, %v1101_v57  ;;  %775 = vrot.lane.b32.xlu0 %v5531_v24, %s4146_s9  ;;  %v1532_v63 = vld [vmem:[#allocation2 + $0x32] sm:$0xff] }
 0x116   : > { %3936 = vmatmul.mubr.msk.f32.gmra.mrb[14].mxu1 %vm1105_vm7, %v2473_v56  ;;  %2147 = vrot.lane.b32.xlu1 %v5530_v23, %s4146_s9  ;;  %v1517_v56 = vld [vmem:[#allocation2 + $0x39] sm:$0xff] }
 0x117   : > { %v748_v26 = vpop.permute.xlu0 %747  ;;  %v5538_v23 = vld [vmem:[#allocation17_spill] sm:$0xff] }
 0x118   : > { %v2120_v25 = vpop.permute.xlu1 %2119  ;;  %v859_v6 = vsel %vm464_vm0, %v683_v12, %v748_v26  ;;  %v2901_v26 = vld [vmem:[#allocation2 + $0xf2] sm:$0xff] }
 0x119   : > { %777 = vrot.lane.b32.xlu0 %v5533_v28, %s4146_s9  ;;  %v2231_v7 = vsel %vm464_vm0, %v908_v37, %v2120_v25  ;;  %v4006_v37 = vpack.c.bf16 %v3623_v10, %v3622_v9  ;;  %v2886_v12 = vld [vmem:[#allocation2 + $0xf9] sm:$0xff] }
 0x11a   : > { %839 = vrot.lane.b32.xlu1 %v5532_v27, %s4147_s10 }
 0x11b   : > { %v750_v31 = vpop.permute.xlu0 %749  ;;  %4008 = vmatprep.subr.msk.bf16.mxu0 %vm4494_vm5, %v4006_v37 }
 0x11c   : > { %v812_v39 = vpop.permute.xlu1 %811  ;;  %v860_v30 = vsel %vm464_vm0, %v684_v8, %v750_v31  ;;  %v2902_v31 = vld [vmem:[#allocation2 + $0xfa] sm:$0xff] }
 0x11d   : > { %v876_v36 = vsel %vm875_vm6, %v859_v6, %v812_v39  ;;  %2149 = vrot.lane.b32.xlu0 %v5535_v32, %s4146_s9 }
 0x11e   : > { %3858 = vmatprep.mubr.msk.f32.mxu0 %vm1105_vm7, %v876_v36  ;;  %2211 = vrot.lane.b32.xlu1 %v5534_v29, %s4147_s10  ;;  %v1533_v36 = vld [vmem:[#allocation2 + $0x3a] sm:$0xff] }
 0x11f   : > { %v2122_v54 = vpop.permute.xlu0 %2121 }
 0x120   : > { %v2184_v59 = vpop.permute.xlu1 %2183  ;;  %v2232_v16 = vsel %vm464_vm0, %v909_v15, %v2122_v54  ;;  %v1518_v54 = vld [vmem:[#allocation2 + $0x49] sm:$0xff] }
 0x121   : > { %v2247_v18 = vsel %vm875_vm6, %v2231_v7, %v2184_v59  ;;  %841 = vrot.lane.b32.xlu0 %v5537_v14, %s4147_s10  ;;  %v2887_v59 = vld [vmem:[#allocation2 + $0x109] sm:$0xff]  ;;  %v2888_v14 = vld [vmem:[#allocation2 + $0x111] sm:$0xff] }
 0x122   : > { %3942 = vmatprep.mubr.msk.f32.mxu1 %vm1105_vm7, %v2247_v18  ;;  %2213 = vrot.lane.b32.xlu1 %v5536_v13, %s4147_s10 }
 0x123   : > { %v814_v43 = vpop.permute.xlu0 %813 }
 0x124   : > { %v2186_v52 = vpop.permute.xlu1 %2185  ;;  %v877_v22 = vsel %vm875_vm6, %v860_v30, %v814_v43 }
 0x125   : > { %v2248_v17 = vsel %vm875_vm6, %v2232_v16, %v2186_v52  ;;  %3859 = vmatmul.mubr.msk.f32.vlgmr.msra.gmra.mrb[0].mxu0 %vm1105_vm7, %v877_v22  ;;  %1564 = vrot.lane.b32.xlu0 %v1516_v60, %s4146_s9  ;;  %v1535_v60 = vld [vmem:[#allocation2 + $0x52] sm:$0xff] }
 0x126   : > { %3943 = vmatmul.mubr.msk.f32.vlgmr.msra.gmra.mrb[0].mxu1 %vm1105_vm7, %v2248_v17  ;;  %2933 = vrot.lane.b32.xlu1 %v2885_v44, %s4146_s9  ;;  %v2904_v44 = vld [vmem:[#allocation2 + $0x112] sm:$0xff] }
 0x127   : > { %4011 = vmatpush3.bf16.msk.msra.mxu0 %vm4494_vm5, %v4006_v37  ;;  %4029 = vmatpush3.bf16.msk.msra.mxu1 %vm4494_vm5, %v4024_v34  ;;  %v752_v57 = vpop.permute.xlu0 %751  ;;  %v1519_v37 = vld [vmem:[#allocation2 + $0x51] sm:$0xff] }
 0x128   : > { %v2124_v15 = vpop.permute.xlu1 %2123  ;;  %v861_v24 = vsel %vm464_vm0, %v5538_v23, %v752_v57 }
 0x129   : > { %1566 = vrot.lane.b32.xlu0 %v1517_v56, %s4146_s9  ;;  %v2233_v6 = vsel %vm464_vm0, %v5539_v62, %v2124_v15  ;;  %v1520_v56 = vld [vmem:[#allocation2 + $0x61] sm:$0xff]  ;;  %v2890_v62 = vld [vmem:[#allocation2 + $0x129] sm:$0xff] }
 0x12a   : > { %1628 = vrot.lane.b32.xlu1 %v1532_v63, %s4147_s10 }
 0x12b   : > { %v754_v28 = vpop.permute.xlu0 %753 }
 0x12c   : > { %v816_v25 = vpop.permute.xlu1 %815  ;;  %v862_v18 = vsel %vm464_vm0, %v4695_v46, %v754_v28  ;;  %v2903_v46 = vld [vmem:[#allocation2 + $0x10a] sm:$0xff] }
 0x12d   : > { %v878_v27 = vsel %vm875_vm6, %v861_v24, %v816_v25  ;;  %2935 = vrot.lane.b32.xlu0 %v2886_v12, %s4146_s9  ;;  %v1536_v12 = vld [vmem:[#allocation2 + $0x62] sm:$0xff] }
 0x12e   : > { %3861 = vmatprep.mubr.msk.f32.mxu0 %vm1105_vm7, %v878_v27  ;;  %2997 = vrot.lane.b32.xlu1 %v2901_v26, %s4147_s10  ;;  %v1521_v27 = vld [vmem:[#allocation2 + $0x69] sm:$0xff] }
 0x12f   : > { %v2126_v32 = vpop.permute.xlu0 %2125 }
 0x130   : > { %v2188_v39 = vpop.permute.xlu1 %2187  ;;  %v2234_v7 = vsel %vm464_vm0, %v4697_v51, %v2126_v32  ;;  %v1534_v51 = vld [vmem:[#allocation2 + $0x4a] sm:$0xff] }
 0x131   : > { %v2249_v29 = vsel %vm875_vm6, %v2233_v6, %v2188_v39  ;;  %1630 = vrot.lane.b32.xlu0 %v1533_v36, %s4147_s10  ;;  %v1537_v32 = vld [vmem:[#allocation2 + $0x6a] sm:$0xff] }
 0x132   : > { %3945 = vmatprep.mubr.msk.f32.mxu1 %vm1105_vm7, %v2249_v29  ;;  %2999 = vrot.lane.b32.xlu1 %v2902_v31, %s4147_s10  ;;  %v2906_v29 = vld [vmem:[#allocation2 + $0x12a] sm:$0xff] }
 0x133   : > { %v818_v10 = vpop.permute.xlu0 %817 }
 0x134   : > { %v2190_v8 = vpop.permute.xlu1 %2189  ;;  %v879_v33 = vsel %vm875_vm6, %v862_v18, %v818_v10  ;;  %v1522_v18 = vld [vmem:[#allocation2 + $0x79] sm:$0xff] }
 0x135   : > { %v2250_v9 = vsel %vm875_vm6, %v2234_v7, %v2190_v8  ;;  %1568 = vrot.lane.b32.xlu0 %v1518_v54, %s4146_s9  ;;  %3862 = vmatmul.mubr.msk.f32.gmra.mrb[2].mxu0 %vm1105_vm7, %v879_v33 }
 0x136   : > { %3946 = vmatmul.mubr.msk.f32.gmra.mrb[2].mxu1 %vm1105_vm7, %v2250_v9  ;;  %2937 = vrot.lane.b32.xlu1 %v2887_v59, %s4146_s9 }
 0x137   : > { %v756_v13 = vpop.permute.xlu0 %755 }
 0x138   : > { %v2128_v34 = vpop.permute.xlu1 %2127  ;;  %v863_v30 = vsel %vm464_vm0, %v4721_v35, %v756_v13  ;;  %v2889_v35 = vld [vmem:[#allocation2 + $0x121] sm:$0xff] }
 0x139   : > { %1570 = vrot.lane.b32.xlu0 %v1519_v37, %s4146_s9  ;;  %v2235_v17 = vsel %vm464_vm0, %v4727_v1, %v2128_v34  ;;  %v1538_v34 = vld [vmem:[#allocation2 + $0x7a] sm:$0xff] }
 0x13a   : > { %1632 = vrot.lane.b32.xlu1 %v1534_v51, %s4147_s10  ;;  %v1523_v13 = vld [vmem:[#allocation2 + $0x81] sm:$0xff] }
 0x13b   : > { %v758_v52 = vpop.permute.xlu0 %757 }
 0x13c   : > { %v820_v16 = vpop.permute.xlu1 %819  ;;  %v864_v57 = vsel %vm464_vm0, %v4736_v42, %v758_v52 }
 0x13d   : > { %v880_v43 = vsel %vm875_vm6, %v863_v30, %v820_v16  ;;  %2939 = vrot.lane.b32.xlu0 %v2888_v14, %s4146_s9  ;;  %v2892_v14 = vld [vmem:[#allocation2 + $0x141] sm:$0xff] }
 0x13e   : > { %3001 = vrot.lane.b32.xlu1 %v2903_v46, %s4147_s10  ;;  %3864 = vmatprep.mubr.msk.f32.mxu0 %vm1105_vm7, %v880_v43 }
 0x13f   : > { %v2130_v15 = vpop.permute.xlu0 %2129 }
 0x140   : > { %v2192_v22 = vpop.permute.xlu1 %2191  ;;  %v2236_v23 = vsel %vm464_vm0, %v4739_v61, %v2130_v15  ;;  %v2905_v61 = vld [vmem:[#allocation2 + $0x122] sm:$0xff] }
 0x141   : > { %v2251_v63 = vsel %vm875_vm6, %v2235_v17, %v2192_v22  ;;  %1634 = vrot.lane.b32.xlu0 %v1535_v60, %s4147_s10  ;;  %v1539_v60 = vld [vmem:[#allocation2 + $0x82] sm:$0xff] }
 0x142   : > { %3003 = vrot.lane.b32.xlu1 %v2904_v44, %s4147_s10  ;;  %3948 = vmatprep.mubr.msk.f32.mxu1 %vm1105_vm7, %v2251_v63  ;;  %v2908_v44 = vld [vmem:[#allocation2 + $0x142] sm:$0xff] }
 0x143   : > { %v822_v1 = vpop.permute.xlu0 %821 }
 0x144   : > { %v2194_v24 = vpop.permute.xlu1 %2193  ;;  %v881_v26 = vsel %vm875_vm6, %v864_v57, %v822_v1 }
 0x145   : > { %v2252_v25 = vsel %vm875_vm6, %v2236_v23, %v2194_v24  ;;  %1572 = vrot.lane.b32.xlu0 %v1520_v56, %s4146_s9  ;;  %3865 = vmatmul.mubr.msk.f32.gmra.mrb[4].mxu0 %vm1105_vm7, %v881_v26  ;;  %v1525_v26 = vld [vmem:[#allocation2 + $0x99] sm:$0xff] }
 0x146   : > { %2941 = vrot.lane.b32.xlu1 %v2889_v35, %s4146_s9  ;;  %3949 = vmatmul.mubr.msk.f32.gmra.mrb[4].mxu1 %vm1105_vm7, %v2252_v25  ;;  %v1524_v35 = vld [vmem:[#allocation2 + $0x91] sm:$0xff] }
 0x147   : > { %v760_v28 = vpop.permute.xlu0 %759  ;;  %v1540_v25 = vld [vmem:[#allocation2 + $0x92] sm:$0xff] }
 0x148   : > { %v2132_v42 = vpop.permute.xlu1 %2131  ;;  %v865_v6 = vsel %vm464_vm0, %v4756_v40, %v760_v28  ;;  %v2891_v40 = vld [vmem:[#allocation2 + $0x139] sm:$0xff] }
 0x149   : > { %1574 = vrot.lane.b32.xlu0 %v1521_v27, %s4146_s9  ;;  %v2237_v7 = vsel %vm464_vm0, %v4764_v48, %v2132_v42  ;;  %v2894_v27 = vld [vmem:[#allocation2 + $0x159] sm:$0xff] }
 0x14a   : > { %1636 = vrot.lane.b32.xlu1 %v1536_v12, %s4147_s10 }
 0x14b   : > { %v762_v31 = vpop.permute.xlu0 %761 }
 0x14c   : > { %v824_v39 = vpop.permute.xlu1 %823  ;;  %v866_v9 = vsel %vm464_vm0, %v4774_v41, %v762_v31 }
 0x14d   : > { %v882_v36 = vsel %vm875_vm6, %v865_v6, %v824_v39  ;;  %2943 = vrot.lane.b32.xlu0 %v2890_v62, %s4146_s9  ;;  %v2910_v6 = vld [vmem:[#allocation2 + $0x15a] sm:$0xff] }
 0x14e   : > { %3005 = vrot.lane.b32.xlu1 %v2905_v61, %s4147_s10  ;;  %3867 = vmatprep.mubr.msk.f32.mxu0 %vm1105_vm7, %v882_v36  ;;  %v1541_v39 = vld [vmem:[#allocation2 + $0x9a] sm:$0xff] }
 0x14f   : > { %v2134_v59 = vpop.permute.xlu0 %2133 }
 0x150   : > { %v2196_v8 = vpop.permute.xlu1 %2195  ;;  %v2238_v10 = vsel %vm464_vm0, %v4777_v55, %v2134_v59  ;;  %v2907_v55 = vld [vmem:[#allocation2 + $0x13a] sm:$0xff] }
 0x151   : > { %v2253_v54 = vsel %vm875_vm6, %v2237_v7, %v2196_v8  ;;  %1638 = vrot.lane.b32.xlu0 %v1537_v32, %s4147_s10  ;;  %v1526_v7 = vld [vmem:[#allocation2 + $0xa9] sm:$0xff] }
 0x152   : > { %3007 = vrot.lane.b32.xlu1 %v2906_v29, %s4147_s10  ;;  %3951 = vmatprep.mubr.msk.f32.mxu1 %vm1105_vm7, %v2253_v54 }
 0x153   : > { %v826_v48 = vpop.permute.xlu0 %825 }
 0x154   : > { %v2198_v33 = vpop.permute.xlu1 %2197  ;;  %v883_v37 = vsel %vm875_vm6, %v866_v9, %v826_v48  ;;  %v1542_v9 = vld [vmem:[#allocation2 + $0xaa] sm:$0xff] }
 0x155   : > { %v2254_v51 = vsel %vm875_vm6, %v2238_v10, %v2198_v33  ;;  %1576 = vrot.lane.b32.xlu0 %v1522_v18, %s4146_s9  ;;  %3868 = vmatmul.mubr.msk.f32.gmra.mrb[6].mxu0 %vm1105_vm7, %v883_v37  ;;  %v1527_v10 = vld [vmem:[#allocation2 + $0xb1] sm:$0xff] }
 0x156   : > { %2945 = vrot.lane.b32.xlu1 %v2891_v40, %s4146_s9  ;;  %3952 = vmatmul.mubr.msk.f32.gmra.mrb[6].mxu1 %vm1105_vm7, %v2254_v51  ;;  %v2896_v48 = vld [vmem:[#allocation2 + $0x171] sm:$0xff] }
 0x157   : > { %v764_v46 = vpop.permute.xlu0 %763 }
 0x158   : > { %v2136_v41 = vpop.permute.xlu1 %2135  ;;  %v867_v30 = vsel %vm464_vm0, %v4796_v38, %v764_v46  ;;  %v2893_v38 = vld [vmem:[#allocation2 + $0x151] sm:$0xff] }
 0x159   : > { %1578 = vrot.lane.b32.xlu0 %v1523_v13, %s4146_s9  ;;  %v2239_v17 = vsel %vm464_vm0, %v4804_v50, %v2136_v41  ;;  %v2912_v41 = vld [vmem:[#allocation2 + $0x172] sm:$0xff] }
 0x15a   : > { %1640 = vrot.lane.b32.xlu1 %v1538_v34, %s4147_s10  ;;  %v1543_v46 = vld [vmem:[#allocation2 + $0xb2] sm:$0xff] }
 0x15b   : > { %v766_v52 = vpop.permute.xlu0 %765 }
 0x15c   : > { %v828_v16 = vpop.permute.xlu1 %827  ;;  %v868_v56 = vsel %vm464_vm0, %v4814_v47, %v766_v52  ;;  %v1528_v52 = vld [vmem:[#allocation2 + $0xc1] sm:$0xff] }
 0x15d   : > { %v884_v43 = vsel %vm875_vm6, %v867_v30, %v828_v16  ;;  %2947 = vrot.lane.b32.xlu0 %v2892_v14, %s4146_s9 }
 0x15e   : > { %3009 = vrot.lane.b32.xlu1 %v2907_v55, %s4147_s10  ;;  %3870 = vmatprep.mubr.msk.f32.mxu0 %vm1105_vm7, %v884_v43 }
 0x15f   : > { %v2138_v15 = vpop.permute.xlu0 %2137 }
 0x160   : > { %v2200_v22 = vpop.permute.xlu1 %2199  ;;  %v2240_v57 = vsel %vm464_vm0, %v4817_v20, %v2138_v15  ;;  %v2909_v20 = vld [vmem:[#allocation2 + $0x152] sm:$0xff]  ;;  %v1544_v15 = vld [vmem:[#allocation2 + $0xc2] sm:$0xff] }
 0x161   : > { %v2255_v63 = vsel %vm875_vm6, %v2239_v17, %v2200_v22  ;;  %1642 = vrot.lane.b32.xlu0 %v1539_v60, %s4147_s10 }
 0x162   : > { %3011 = vrot.lane.b32.xlu1 %v2908_v44, %s4147_s10  ;;  %3954 = vmatprep.mubr.msk.f32.mxu1 %vm1105_vm7, %v2255_v63  ;;  %v1529_v63 = vld [vmem:[#allocation2 + $0xc9] sm:$0xff] }
 0x163   : > { %v830_v50 = vpop.permute.xlu0 %829 }
 0x164   : > { %v2202_v23 = vpop.permute.xlu1 %2201  ;;  %v885_v1 = vsel %vm875_vm6, %v868_v56, %v830_v50 }
 0x165   : > { %v2256_v24 = vsel %vm875_vm6, %v2240_v57, %v2202_v23  ;;  %1580 = vrot.lane.b32.xlu0 %v1524_v35, %s4146_s9  ;;  %3871 = vmatmul.mubr.msk.f32.gmra.mrb[8].mxu0 %vm1105_vm7, %v885_v1  ;;  %v2898_v35 = vld [vmem:[#allocation2 + $0x189] sm:$0xff] }
 0x166   : > { %2949 = vrot.lane.b32.xlu1 %v2893_v38, %s4146_s9  ;;  %3955 = vmatmul.mubr.msk.f32.gmra.mrb[8].mxu1 %vm1105_vm7, %v2256_v24  ;;  %v2914_v24 = vld [vmem:[#allocation2 + $0x18a] sm:$0xff] }
 0x167   : > { %v768_v12 = vpop.permute.xlu0 %767  ;;  %v1545_v1 = vld [vmem:[#allocation2 + $0xca] sm:$0xff] }
 0x168   : > { %v2140_v47 = vpop.permute.xlu1 %2139  ;;  %v869_v42 = vsel %vm464_vm0, %v4836_v53, %v768_v12  ;;  %v2895_v53 = vld [vmem:[#allocation2 + $0x169] sm:$0xff] }
 0x169   : > { %1582 = vrot.lane.b32.xlu0 %v1525_v26, %s4146_s9  ;;  %v2241_v31 = vsel %vm464_vm0, %v4844_v49, %v2140_v47 }
 0x16a   : > { %1644 = vrot.lane.b32.xlu1 %v1540_v25, %s4147_s10 }
 0x16b   : > { %v770_v61 = vpop.permute.xlu0 %769 }
 0x16c   : > { %v832_v28 = vpop.permute.xlu1 %831  ;;  %v870_v8 = vsel %vm464_vm0, %v4854_v11, %v770_v61 }
 0x16d   : > { %v886_v62 = vsel %vm875_vm6, %v869_v42, %v832_v28  ;;  %2951 = vrot.lane.b32.xlu0 %v2894_v27, %s4146_s9 }
 0x16e   : > { %3013 = vrot.lane.b32.xlu1 %v2909_v20, %s4147_s10  ;;  %3873 = vmatprep.mubr.msk.f32.mxu0 %vm1105_vm7, %v886_v62  ;;  %v1530_v20 = vld [vmem:[#allocation2 + $0xd9] sm:$0xff] }
 0x16f   : > { %v2142_v29 = vpop.permute.xlu0 %2141 }
 0x170   : > { %v2204_v36 = vpop.permute.xlu1 %2203  ;;  %v2242_v59 = vsel %vm464_vm0, %v4857_v0, %v2142_v29  ;;  %v2911_v0 = vld [vmem:[#allocation2 + $0x16a] sm:$0xff]  ;;  %v2900_v29 = vld [vmem:[#allocation2 + $0x1a1] sm:$0xff] }
 0x171   : > { %v2257_v32 = vsel %vm875_vm6, %v2241_v31, %v2204_v36  ;;  %1646 = vrot.lane.b32.xlu0 %v1541_v39, %s4147_s10  ;;  %v1531_v39 = vld [vmem:[#allocation2 + $0xe1] sm:$0xff]  ;;  %v1500_v36 = vld [vmem:[#allocation2 + $0x30] sm:$0xff] }
 0x172   : > { %3015 = vrot.lane.b32.xlu1 %v2910_v6, %s4147_s10  ;;  %3957 = vmatprep.mubr.msk.f32.mxu1 %vm1105_vm7, %v2257_v32  ;;  %v1546_v6 = vld [vmem:[#allocation2 + $0xda] sm:$0xff] }
 0x173   : > { %v834_v49 = vpop.permute.xlu0 %833 }
 0x174   : > { %v2206_v54 = vpop.permute.xlu1 %2205  ;;  %v887_v18 = vsel %vm875_vm6, %v870_v8, %v834_v49  ;;  %v2869_v8 = vld [vmem:[#allocation2 + $0xf0] sm:$0xff]  ;;  %v1547_v49 = vld [vmem:[#allocation2 + $0xe2] sm:$0xff] }
 0x175   : > { %v2258_v40 = vsel %vm875_vm6, %v2242_v59, %v2206_v54  ;;  %1584 = vrot.lane.b32.xlu0 %v1526_v7, %s4146_s9  ;;  %3874 = vmatmul.mubr.msk.f32.gmra.mrb[10].mxu0 %vm1105_vm7, %v887_v18  ;;  %v2916_v54 = vld [vmem:[#allocation2 + $0x1a2] sm:$0xff] }
 0x176   : > { %2953 = vrot.lane.b32.xlu1 %v2895_v53, %s4146_s9  ;;  %3958 = vmatmul.mubr.msk.f32.gmra.mrb[10].mxu1 %vm1105_vm7, %v2258_v40 }
 0x177   : > { %v772_v33 = vpop.permute.xlu0 %771 }
 0x178   : > { %v2144_v11 = vpop.permute.xlu1 %2143  ;;  %v871_v51 = vsel %vm464_vm0, %v4876_v58, %v772_v33  ;;  %v2897_v58 = vld [vmem:[#allocation2 + $0x181] sm:$0xff]  ;;  %v2870_v33 = vld [vmem:[#allocation2 + $0xf8] sm:$0xff] }
 0x179   : > { %1586 = vrot.lane.b32.xlu0 %v1527_v10, %s4146_s9  ;;  %v2243_v55 = vsel %vm464_vm0, %v4884_v19, %v2144_v11  ;;  %v1501_v10 = vld [vmem:[#allocation2 + $0x38] sm:$0xff] }
 0x17a   : > { %1648 = vrot.lane.b32.xlu1 %v1542_v9, %s4147_s10 }
 0x17b   : > { %v774_v34 = vpop.permute.xlu0 %773 }
 0x17c   : > { %v836_v37 = vpop.permute.xlu1 %835  ;;  %v872_v43 = vsel %vm464_vm0, %v4894_v21, %v774_v34 }
 0x17d   : > { %v888_v13 = vsel %vm875_vm6, %v871_v51, %v836_v37  ;;  %2955 = vrot.lane.b32.xlu0 %v2896_v48, %s4146_s9 }
 0x17e   : > { %3017 = vrot.lane.b32.xlu1 %v2911_v0, %s4147_s10  ;;  %3876 = vmatprep.mubr.msk.f32.mxu0 %vm1105_vm7, %v888_v13 }
 0x17f   : > { %v2146_v30 = vpop.permute.xlu0 %2145 }
 0x180   : > { %v2208_v14 = vpop.permute.xlu1 %2207  ;;  %v2244_v44 = vsel %vm464_vm0, %v4897_v45, %v2146_v30  ;;  %v2913_v45 = vld [vmem:[#allocation2 + $0x182] sm:$0xff] }
 0x181   : > { %v2259_v16 = vsel %vm875_vm6, %v2243_v55, %v2208_v14  ;;  %1650 = vrot.lane.b32.xlu0 %v1543_v46, %s4147_s10  ;;  %v1502_v55 = vld [vmem:[#allocation2 + $0x48] sm:$0xff] }
 0x182   : > { %3019 = vrot.lane.b32.xlu1 %v2912_v41, %s4147_s10  ;;  %3960 = vmatprep.mubr.msk.f32.mxu1 %vm1105_vm7, %v2259_v16 }
 0x183   : > { %v838_v19 = vpop.permute.xlu0 %837 }
 0x184   : > { %v2210_v60 = vpop.permute.xlu1 %2209  ;;  %v889_v22 = vsel %vm875_vm6, %v872_v43, %v838_v19  ;;  %v1503_v19 = vld [vmem:[#allocation2 + $0x50] sm:$0xff] }
 0x185   : > { %v2260_v17 = vsel %vm875_vm6, %v2244_v44, %v2210_v60  ;;  %1588 = vrot.lane.b32.xlu0 %v1528_v52, %s4146_s9  ;;  %3877 = vmatmul.mubr.msk.f32.gmra.mrb[12].mxu0 %vm1105_vm7, %v889_v22  ;;  %v2872_v22 = vld [vmem:[#allocation2 + $0x110] sm:$0xff] }
 0x186   : > { %2957 = vrot.lane.b32.xlu1 %v2897_v58, %s4146_s9  ;;  %3961 = vmatmul.mubr.msk.f32.gmra.mrb[12].mxu1 %vm1105_vm7, %v2260_v17  ;;  %v2871_v58 = vld [vmem:[#allocation2 + $0x108] sm:$0xff] }
 0x187   : > { %v776_v38 = vpop.permute.xlu0 %775 }
 0x188   : > { %v2148_v21 = vpop.permute.xlu1 %2147  ;;  %v873_v56 = vsel %vm464_vm0, %v4916_v2, %v776_v38  ;;  %v2899_v2 = vld [vmem:[#allocation2 + $0x199] sm:$0xff] }
 0x189   : > { %1590 = vrot.lane.b32.xlu0 %v1529_v63, %s4146_s9  ;;  %v2245_v25 = vsel %vm464_vm0, %v4924_v3, %v2148_v21 }
 0x18a   : > { %1652 = vrot.lane.b32.xlu1 %v1544_v15, %s4147_s10 }
 0x18b   : > { %v778_v23 = vpop.permute.xlu0 %777 }
 0x18c   : > { %v840_v57 = vpop.permute.xlu1 %839  ;;  %v874_v27 = vsel %vm464_vm0, %v4934_v4, %v778_v23  ;;  %v1504_v23 = vld [vmem:[#allocation2 + $0x60] sm:$0xff] }
 0x18d   : > { %v890_v50 = vsel %vm875_vm6, %v873_v56, %v840_v57  ;;  %2959 = vrot.lane.b32.xlu0 %v2898_v35, %s4146_s9 }
 0x18e   : > { %3021 = vrot.lane.b32.xlu1 %v2913_v45, %s4147_s10  ;;  %3879 = vmatprep.mubr.msk.f32.mxu0 %vm1105_vm7, %v890_v50 }
 0x18f   : > { %v2150_v47 = vpop.permute.xlu0 %2149 }
 0x190   : > { %v2212_v26 = vpop.permute.xlu1 %2211  ;;  %v2246_v42 = vsel %vm464_vm0, %v4937_v5, %v2150_v47  ;;  %v2915_v5 = vld [vmem:[#allocation2 + $0x19a] sm:$0xff] }
 0x191   : > { %v2261_v12 = vsel %vm875_vm6, %v2245_v25, %v2212_v26  ;;  %1654 = vrot.lane.b32.xlu0 %v1545_v1, %s4147_s10  ;;  %v2873_v25 = vld [vmem:[#allocation2 + $0x120] sm:$0xff] }
 0x192   : > { %3023 = vrot.lane.b32.xlu1 %v2914_v24, %s4147_s10  ;;  %3963 = vmatprep.mubr.msk.f32.mxu1 %vm1105_vm7, %v2261_v12 }
 0x193   : > { %v842_v3 = vpop.permute.xlu0 %841 }
 0x194   : > { %v2214_v28 = vpop.permute.xlu1 %2213  ;;  %v891_v62 = vsel %vm875_vm6, %v874_v27, %v842_v3 }
 0x195   : > { %v2262_v61 = vsel %vm875_vm6, %v2246_v42, %v2214_v28  ;;  %1592 = vrot.lane.b32.xlu0 %v1530_v20, %s4146_s9  ;;  %3880 = vmatmul.mubr.msk.f32.gmra.mrb[14].mxu0 %vm1105_vm7, %v891_v62  ;;  %v1505_v20 = vld [vmem:[#allocation2 + $0x68] sm:$0xff] }
 0x196   : > { %2961 = vrot.lane.b32.xlu1 %v2899_v2, %s4146_s9  ;;  %3964 = vmatmul.mubr.msk.f32.gmra.mrb[14].mxu1 %vm1105_vm7, %v2262_v61  ;;  %v2874_v42 = vld [vmem:[#allocation2 + $0x128] sm:$0xff] }
 0x197   : > { %v1565_v31 = vpop.permute.xlu0 %1564 }
 0x198   : > { %v2934_v4 = vpop.permute.xlu1 %2933  ;;  %v1676_v32 = vsel %vm464_vm0, %v1500_v36, %v1565_v31  ;;  %v1506_v36 = vld [vmem:[#allocation2 + $0x78] sm:$0xff] }
 0x199   : > { %1594 = vrot.lane.b32.xlu0 %v1531_v39, %s4146_s9  ;;  %v3045_v40 = vsel %vm464_vm0, %v2869_v8, %v2934_v4 }
 0x19a   : > { %1656 = vrot.lane.b32.xlu1 %v1546_v6, %s4147_s10 }
 0x19b   : > { %v1567_v7 = vpop.permute.xlu0 %1566 }
 0x19c   : > { %v1629_v53 = vpop.permute.xlu1 %1628  ;;  %v1677_v0 = vsel %vm464_vm0, %v1501_v10, %v1567_v7 }
 0x19d   : > { %v1692_v59 = vsel %vm875_vm6, %v1676_v32, %v1629_v53  ;;  %2963 = vrot.lane.b32.xlu0 %v2900_v29, %s4146_s9  ;;  %v2875_v53 = vld [vmem:[#allocation2 + $0x138] sm:$0xff] }
 0x19e   : > { %3025 = vrot.lane.b32.xlu1 %v2915_v5, %s4147_s10  ;;  %3886 = vmatprep.mubr.msk.f32.mxu0 %vm1105_vm7, %v1692_v59 }
 0x19f   : > { %v2936_v9 = vpop.permute.xlu0 %2935 }
 0x1a0   : > { %v2998_v18 = vpop.permute.xlu1 %2997  ;;  %v3046_v48 = vsel %vm464_vm0, %v2870_v33, %v2936_v9 }
 0x1a1   : > { %v3061_v11 = vsel %vm875_vm6, %v3045_v40, %v2998_v18  ;;  %1658 = vrot.lane.b32.xlu0 %v1547_v49, %s4147_s10  ;;  %v1507_v49 = vld [vmem:[#allocation2 + $0x80] sm:$0xff] }
 0x1a2   : > { %3027 = vrot.lane.b32.xlu1 %v2916_v54, %s4147_s10  ;;  %3970 = vmatprep.mubr.msk.f32.mxu1 %vm1105_vm7, %v3061_v11  ;;  %v2876_v18 = vld [vmem:[#allocation2 + $0x140] sm:$0xff] }
 0x1a3   : > { %v1631_v37 = vpop.permute.xlu0 %1630 }
 0x1a4   : > { %v3000_v51 = vpop.permute.xlu1 %2999  ;;  %v1693_v13 = vsel %vm875_vm6, %v1677_v0, %v1631_v37 }
 0x1a5   : > { %v3062_v34 = vsel %vm875_vm6, %v3046_v48, %v3000_v51  ;;  %3887 = vmatmul.mubr.msk.f32.vlgmr.msra.gmra.mrb[0].mxu0 %vm1105_vm7, %v1693_v13 }
 0x1a6   : > { %3971 = vmatmul.mubr.msk.f32.vlgmr.msra.gmra.mrb[0].mxu1 %vm1105_vm7, %v3062_v34  ;;  %v1508_v34 = vld [vmem:[#allocation2 + $0x90] sm:$0xff] }
 0x1a7   : > { %v1569_v46 = vpop.permute.xlu0 %1568 }
 0x1a8   : > { %v2938_v41 = vpop.permute.xlu1 %2937  ;;  %v1678_v14 = vsel %vm464_vm0, %v1502_v55, %v1569_v46  ;;  %v2877_v55 = vld [vmem:[#allocation2 + $0x150] sm:$0xff] }
 0x1a9   : > { %v3047_v43 = vsel %vm464_vm0, %v2871_v58, %v2938_v41 }
 0x1ab   : > { %v1571_v16 = vpop.permute.xlu0 %1570 }
 0x1ac   : > { %v1633_v30 = vpop.permute.xlu1 %1632  ;;  %v1679_v15 = vsel %vm464_vm0, %v1503_v19, %v1571_v16 }
 0x1ad   : > { %v1694_v52 = vsel %vm875_vm6, %v1678_v14, %v1633_v30 }
 0x1ae   : > { %3889 = vmatprep.mubr.msk.f32.mxu0 %vm1105_vm7, %v1694_v52  ;;  %v1509_v52 = vld [vmem:[#allocation2 + $0x98] sm:$0xff] }
 0x1af   : > { %v2940_v60 = vpop.permute.xlu0 %2939 }
 0x1b0   : > { %v3002_v44 = vpop.permute.xlu1 %3001  ;;  %v3048_v63 = vsel %vm464_vm0, %v2872_v22, %v2940_v60 }
 0x1b1   : > { %v3063_v17 = vsel %vm875_vm6, %v3047_v43, %v3002_v44  ;;  %v2878_v44 = vld [vmem:[#allocation2 + $0x158] sm:$0xff] }
 0x1b2   : > { %3973 = vmatprep.mubr.msk.f32.mxu1 %vm1105_vm7, %v3063_v17 }
 0x1b3   : > { %v1635_v38 = vpop.permute.xlu0 %1634 }
 0x1b4   : > { %v3004_v21 = vpop.permute.xlu1 %3003  ;;  %v1695_v35 = vsel %vm875_vm6, %v1679_v15, %v1635_v38 }
 0x1b5   : > { %v3064_v45 = vsel %vm875_vm6, %v3048_v63, %v3004_v21  ;;  %3890 = vmatmul.mubr.msk.f32.gmra.mrb[2].mxu0 %vm1105_vm7, %v1695_v35 }
 0x1b6   : > { %3974 = vmatmul.mubr.msk.f32.gmra.mrb[2].mxu1 %vm1105_vm7, %v3064_v45  ;;  %v1510_v45 = vld [vmem:[#allocation2 + $0xa8] sm:$0xff] }
 0x1b7   : > { %v1573_v57 = vpop.permute.xlu0 %1572 }
 0x1b8   : > { %v2942_v56 = vpop.permute.xlu1 %2941  ;;  %v1680_v50 = vsel %vm464_vm0, %v1504_v23, %v1573_v57  ;;  %v2879_v23 = vld [vmem:[#allocation2 + $0x168] sm:$0xff] }
 0x1b9   : > { %v3049_v47 = vsel %vm464_vm0, %v2873_v25, %v2942_v56 }
 0x1bb   : > { %v1575_v1 = vpop.permute.xlu0 %1574 }
 0x1bc   : > { %v1637_v24 = vpop.permute.xlu1 %1636  ;;  %v1681_v28 = vsel %vm464_vm0, %v1505_v20, %v1575_v1 }
 0x1bd   : > { %v1696_v26 = vsel %vm875_vm6, %v1680_v50, %v1637_v24 }
 0x1be   : > { %3892 = vmatprep.mubr.msk.f32.mxu0 %vm1105_vm7, %v1696_v26  ;;  %v1511_v26 = vld [vmem:[#allocation2 + $0xb0] sm:$0xff] }
 0x1bf   : > { %v2944_v2 = vpop.permute.xlu0 %2943 }
 0x1c0   : > { %v3006_v12 = vpop.permute.xlu1 %3005  ;;  %v3050_v3 = vsel %vm464_vm0, %v2874_v42, %v2944_v2 }
 0x1c1   : > { %v3065_v27 = vsel %vm875_vm6, %v3049_v47, %v3006_v12  ;;  %v2880_v12 = vld [vmem:[#allocation2 + $0x170] sm:$0xff] }
 0x1c2   : > { %3976 = vmatprep.mubr.msk.f32.mxu1 %vm1105_vm7, %v3065_v27 }
 0x1c3   : > { %v1639_v62 = vpop.permute.xlu0 %1638 }
 0x1c4   : > { %v3008_v61 = vpop.permute.xlu1 %3007  ;;  %v1697_v39 = vsel %vm875_vm6, %v1681_v28, %v1639_v62 }
 0x1c5   : > { %v3066_v6 = vsel %vm875_vm6, %v3050_v3, %v3008_v61  ;;  %3893 = vmatmul.mubr.msk.f32.gmra.mrb[4].mxu0 %vm1105_vm7, %v1697_v39 }
 0x1c6   : > { %3977 = vmatmul.mubr.msk.f32.gmra.mrb[4].mxu1 %vm1105_vm7, %v3066_v6  ;;  %v1512_v6 = vld [vmem:[#allocation2 + $0xc0] sm:$0xff] }
 0x1c7   : > { %v1577_v31 = vpop.permute.xlu0 %1576 }
 0x1c8   : > { %v2946_v4 = vpop.permute.xlu1 %2945  ;;  %v1682_v5 = vsel %vm464_vm0, %v1506_v36, %v1577_v31  ;;  %v2881_v36 = vld [vmem:[#allocation2 + $0x180] sm:$0xff] }
 0x1c9   : > { %v3051_v8 = vsel %vm464_vm0, %v2875_v53, %v2946_v4 }
 0x1cb   : > { %v1579_v32 = vpop.permute.xlu0 %1578 }
 0x1cc   : > { %v1641_v29 = vpop.permute.xlu1 %1640  ;;  %v1683_v9 = vsel %vm464_vm0, %v1507_v49, %v1579_v32 }
 0x1cd   : > { %v1698_v7 = vsel %vm875_vm6, %v1682_v5, %v1641_v29 }
 0x1ce   : > { %3895 = vmatprep.mubr.msk.f32.mxu0 %vm1105_vm7, %v1698_v7  ;;  %v1513_v7 = vld [vmem:[#allocation2 + $0xc8] sm:$0xff] }
 0x1cf   : > { %v2948_v54 = vpop.permute.xlu0 %2947 }
 0x1d0   : > { %v3010_v59 = vpop.permute.xlu1 %3009  ;;  %v3052_v10 = vsel %vm464_vm0, %v2876_v18, %v2948_v54 }
 0x1d1   : > { %v3067_v40 = vsel %vm875_vm6, %v3051_v8, %v3010_v59  ;;  %v2882_v59 = vld [vmem:[#allocation2 + $0x188] sm:$0xff] }
 0x1d2   : > { %3979 = vmatprep.mubr.msk.f32.mxu1 %vm1105_vm7, %v3067_v40 }
 0x1d3   : > { %v1643_v33 = vpop.permute.xlu0 %1642 }
 0x1d4   : > { %v3012_v11 = vpop.permute.xlu1 %3011  ;;  %v1699_v48 = vsel %vm875_vm6, %v1683_v9, %v1643_v33 }
 0x1d5   : > { %v3068_v0 = vsel %vm875_vm6, %v3052_v10, %v3012_v11  ;;  %3896 = vmatmul.mubr.msk.f32.gmra.mrb[6].mxu0 %vm1105_vm7, %v1699_v48 }
 0x1d6   : > { %3980 = vmatmul.mubr.msk.f32.gmra.mrb[6].mxu1 %vm1105_vm7, %v3068_v0  ;;  %v1514_v0 = vld [vmem:[#allocation2 + $0xd8] sm:$0xff] }
 0x1d7   : > { %v1581_v37 = vpop.permute.xlu0 %1580 }
 0x1d8   : > { %v2950_v51 = vpop.permute.xlu1 %2949  ;;  %v1684_v13 = vsel %vm464_vm0, %v1508_v34, %v1581_v37  ;;  %v2883_v34 = vld [vmem:[#allocation2 + $0x198] sm:$0xff] }
 0x1d9   : > { %v3053_v30 = vsel %vm464_vm0, %v2877_v55, %v2950_v51 }
 0x1db   : > { %v1583_v46 = vpop.permute.xlu0 %1582 }
 0x1dc   : > { %v1645_v41 = vpop.permute.xlu1 %1644  ;;  %v1685_v60 = vsel %vm464_vm0, %v1509_v52, %v1583_v46 }
 0x1dd   : > { %v1700_v14 = vsel %vm875_vm6, %v1684_v13, %v1645_v41 }
 0x1de   : > { %3898 = vmatprep.mubr.msk.f32.mxu0 %vm1105_vm7, %v1700_v14  ;;  %v1515_v14 = vld [vmem:[#allocation2 + $0xe0] sm:$0xff] }
 0x1df   : > { %v2952_v58 = vpop.permute.xlu0 %2951 }
 0x1e0   : > { %v3014_v16 = vpop.permute.xlu1 %3013  ;;  %v3054_v19 = vsel %vm464_vm0, %v2878_v44, %v2952_v58 }
 0x1e1   : > { %v3069_v43 = vsel %vm875_vm6, %v3053_v30, %v3014_v16  ;;  %v2884_v16 = vld [vmem:[#allocation2 + $0x1a0] sm:$0xff] }
 0x1e2   : > { %3982 = vmatprep.mubr.msk.f32.mxu1 %vm1105_vm7, %v3069_v43 }
 0x1e3   : > { %v1647_v22 = vpop.permute.xlu0 %1646 }
 0x1e4   : > { %v3016_v17 = vpop.permute.xlu1 %3015  ;;  %v1701_v63 = vsel %vm875_vm6, %v1685_v60, %v1647_v22 }
 0x1e5   : > { %v3070_v15 = vsel %vm875_vm6, %v3054_v19, %v3016_v17  ;;  %3899 = vmatmul.mubr.msk.f32.gmra.mrb[8].mxu0 %vm1105_vm7, %v1701_v63  ;;  %v5300_v17 = vld [vmem:[%s5486_s3] ss:$0 sm:$0xff] }
 0x1e6   : > { %3983 = vmatmul.mubr.msk.f32.gmra.mrb[8].mxu1 %vm1105_vm7, %v3070_v15 }
 0x1e7   : > { %v1585_v38 = vpop.permute.xlu0 %1584 }
 0x1e8   : > { %v2954_v21 = vpop.permute.xlu1 %2953  ;;  %v1686_v35 = vsel %vm464_vm0, %v1510_v45, %v1585_v38 }
 0x1e9   : > { %v3055_v24 = vsel %vm464_vm0, %v2879_v23, %v2954_v21 }
 0x1eb   : > { %v1587_v57 = vpop.permute.xlu0 %1586 }
 0x1ec   : > { %v1649_v56 = vpop.permute.xlu1 %1648  ;;  %v1687_v2 = vsel %vm464_vm0, %v1511_v26, %v1587_v57 }
 0x1ed   : > { %v1702_v50 = vsel %vm875_vm6, %v1686_v35, %v1649_v56 }
 0x1ee   : > { %3901 = vmatprep.mubr.msk.f32.mxu0 %vm1105_vm7, %v1702_v50 }
 0x1ef   : > { %v2956_v25 = vpop.permute.xlu0 %2955 }
 0x1f0   : > { %v3018_v1 = vpop.permute.xlu1 %3017  ;;  %v3056_v20 = vsel %vm464_vm0, %v2880_v12, %v2956_v25 }
 0x1f1   : > { %v3071_v47 = vsel %vm875_vm6, %v3055_v24, %v3018_v1 }
 0x1f2   : > { %3985 = vmatprep.mubr.msk.f32.mxu1 %vm1105_vm7, %v3071_v47 }
 0x1f3   : > { %v1651_v42 = vpop.permute.xlu0 %1650 }
 0x1f4   : > { %v3020_v27 = vpop.permute.xlu1 %3019  ;;  %v1703_v3 = vsel %vm875_vm6, %v1687_v2, %v1651_v42 }
 0x1f5   : > { %v3072_v28 = vsel %vm875_vm6, %v3056_v20, %v3020_v27  ;;  %3902 = vmatmul.mubr.msk.f32.gmra.mrb[10].mxu0 %vm1105_vm7, %v1703_v3 }
 0x1f6   : > { %3986 = vmatmul.mubr.msk.f32.gmra.mrb[10].mxu1 %vm1105_vm7, %v3072_v28 }
 0x1f7   : > { %v1589_v62 = vpop.permute.xlu0 %1588 }
 0x1f8   : > { %v2958_v61 = vpop.permute.xlu1 %2957  ;;  %v1688_v39 = vsel %vm464_vm0, %v1512_v6, %v1589_v62 }
 0x1f9   : > { %v3057_v29 = vsel %vm464_vm0, %v2881_v36, %v2958_v61 }
 0x1fb   : > { %v1591_v31 = vpop.permute.xlu0 %1590 }
 0x1fc   : > { %v1653_v4 = vpop.permute.xlu1 %1652  ;;  %v1689_v54 = vsel %vm464_vm0, %v1513_v7, %v1591_v31 }
 0x1fd   : > { %v1704_v5 = vsel %vm875_vm6, %v1688_v39, %v1653_v4 }
 0x1fe   : > { %3904 = vmatprep.mubr.msk.f32.mxu0 %vm1105_vm7, %v1704_v5 }
 0x1ff   : > { %v2960_v53 = vpop.permute.xlu0 %2959 }
 0x200   : > { %v3022_v32 = vpop.permute.xlu1 %3021  ;;  %v3058_v49 = vsel %vm464_vm0, %v2882_v59, %v2960_v53 }
 0x201   : > { %v3073_v8 = vsel %vm875_vm6, %v3057_v29, %v3022_v32 }
 0x202   : > { %3988 = vmatprep.mubr.msk.f32.mxu1 %vm1105_vm7, %v3073_v8 }
 0x203   : > { %v1655_v18 = vpop.permute.xlu0 %1654 }
 0x204   : > { %v3024_v40 = vpop.permute.xlu1 %3023  ;;  %v1705_v10 = vsel %vm875_vm6, %v1689_v54, %v1655_v18 }
 0x205   : > { %v3074_v9 = vsel %vm875_vm6, %v3058_v49, %v3024_v40  ;;  %3905 = vmatmul.mubr.msk.f32.gmra.mrb[12].mxu0 %vm1105_vm7, %v1705_v10 }
 0x206   : > { %3989 = vmatmul.mubr.msk.f32.gmra.mrb[12].mxu1 %vm1105_vm7, %v3074_v9 }
 0x207   : > { %v1593_v33 = vpop.permute.xlu0 %1592 }
 0x208   : > { %v2962_v11 = vpop.permute.xlu1 %2961  ;;  %v1690_v48 = vsel %vm464_vm0, %v1514_v0, %v1593_v33 }
 0x209   : > { %v3059_v41 = vsel %vm464_vm0, %v2883_v34, %v2962_v11 }
 0x20b   : > { %v1595_v37 = vpop.permute.xlu0 %1594 }
 0x20c   : > { %v1657_v51 = vpop.permute.xlu1 %1656  ;;  %v1691_v58 = vsel %vm464_vm0, %v1515_v14, %v1595_v37 }
 0x20d   : > { %v1706_v13 = vsel %vm875_vm6, %v1690_v48, %v1657_v51 }
 0x20e   : > { %3907 = vmatprep.mubr.msk.f32.mxu0 %vm1105_vm7, %v1706_v13 }
 0x20f   : > { %v2964_v55 = vpop.permute.xlu0 %2963 }
 0x210   : > { %v3026_v46 = vpop.permute.xlu1 %3025  ;;  %v3060_v52 = vsel %vm464_vm0, %v2884_v16, %v2964_v55 }
 0x211   : > { %v3075_v30 = vsel %vm875_vm6, %v3059_v41, %v3026_v46 }
 0x212   : > { %3991 = vmatprep.mubr.msk.f32.mxu1 %vm1105_vm7, %v3075_v30 }
 0x213   : > { %v1659_v44 = vpop.permute.xlu0 %1658 }
 0x214   : > { %v3028_v43 = vpop.permute.xlu1 %3027  ;;  %v1707_v19 = vsel %vm875_vm6, %v1691_v58, %v1659_v44 }
 0x215   : > { %v3076_v60 = vsel %vm875_vm6, %v3060_v52, %v3028_v43  ;;  %3908 = vmatmul.mubr.msk.f32.gmra.mrb[14].mxu0 %vm1105_vm7, %v1707_v19 }
 0x216   : > { %3992 = vmatmul.mubr.msk.f32.gmra.mrb[14].mxu1 %vm1105_vm7, %v3076_v60 }
 0x278   : > { %v3888_v22 = vpop.f32.mrb[0].mxu0 }
 0x279   : > { %v3972_v15 = vpop.f32.mrb[0].mxu1  ;;  %v1931_v63 = vadd.f32 %v3888_v22, %v5300_v17  ;;  %v1828_v38 = vpop.f32.mrb[1].mxu0 }
 0x27a   : > { %v3299_v21 = vadd.f32 %v3972_v15, %v5300_v17  ;;  %v3196_v45 = vpop.f32.mrb[1].mxu1  ;;  %v1930_v35 = vadd.f32 %v5300_v17, %v1828_v38 }
 0x27b   : > { %v3298_v56 = vadd.f32 %v5300_v17, %v3196_v45  ;;  %v1947_v57 = vsel %vm875_vm6, %v1931_v63, 0.0  ;;  %v1985_v23 = vmul.f32 %v1931_v63, %v1931_v63  ;;  %2039 = vst.msk [vmem:[%s5307_s14 + $0x8] sm:$0xff] %vm875_vm6, %v1931_v63 }
 0x27c   : > { %v3315_v50 = vsel %vm875_vm6, %v3299_v21, 0.0  ;;  %v3353_v24 = vmul.f32 %v3299_v21, %v3299_v21  ;;  %3699 = vst.msk [vmem:[%s5307_s14 + $0x88] sm:$0xff] %vm875_vm6, %v3299_v21  ;;  %v1946_v1 = vsel %vm875_vm6, %v1930_v35, 0.0  ;;  %v1984_v25 = vmul.f32 %v1930_v35, %v1930_v35  ;;  %2038 = vst.msk [vmem:[%s5307_s14] sm:$0xff] %vm875_vm6, %v1930_v35 }
 0x27d   : > { %v3314_v26 = vsel %vm875_vm6, %v3298_v56, 0.0  ;;  %v3352_v47 = vmul.f32 %v3298_v56, %v3298_v56  ;;  %3698 = vst.msk [vmem:[%s5307_s14 + $0x80] sm:$0xff] %vm875_vm6, %v3298_v56  ;;  %v2001_v12 = vsel %vm875_vm6, %v1985_v23, 0.0  ;;  %v1948_v20 = vadd.f32 %v1947_v57, %v1946_v1 }
 0x27e   : > { %v3369_v2 = vsel %vm875_vm6, %v3353_v24, 0.0  ;;  %v3316_v27 = vadd.f32 %v3315_v50, %v3314_v26  ;;  %v2000_v42 = vsel %vm875_vm6, %v1984_v25, 0.0 }
 0x27f   : > { %v3368_v28 = vsel %vm875_vm6, %v3352_v47, 0.0  ;;  %v2002_v3 = vadd.f32 %v2001_v12, %v2000_v42 }
 0x280   : > { %v3370_v61 = vadd.f32 %v3369_v2, %v3368_v28 }
 0x288   : > { %v3891_v62 = vpop.f32.mrb[2].mxu0 }
 0x289   : > { %v3975_v6 = vpop.f32.mrb[2].mxu1  ;;  %v1933_v39 = vadd.f32 %v3891_v62, %v5300_v17  ;;  %v1838_v31 = vpop.f32.mrb[3].mxu0 }
 0x28a   : > { %v3301_v4 = vadd.f32 %v3975_v6, %v5300_v17  ;;  %v3206_v36 = vpop.f32.mrb[3].mxu1  ;;  %v1932_v5 = vadd.f32 %v5300_v17, %v1838_v31 }
 0x28b   : > { %v3300_v29 = vadd.f32 %v5300_v17, %v3206_v36  ;;  %v1987_v32 = vmul.f32 %v1933_v39, %v1933_v39  ;;  %2041 = vst.msk [vmem:[%s5307_s14 + $0x18] sm:$0xff] %vm875_vm6, %v1933_v39  ;;  %v1951_v18 = vsel %vm875_vm6, %v1933_v39, 0.0 }
 0x28c   : > { %v3355_v53 = vmul.f32 %v3301_v4, %v3301_v4  ;;  %3701 = vst.msk [vmem:[%s5307_s14 + $0x98] sm:$0xff] %vm875_vm6, %v3301_v4  ;;  %v1949_v7 = vsel %vm875_vm6, %v1932_v5, 0.0  ;;  %v1986_v8 = vmul.f32 %v1932_v5, %v1932_v5  ;;  %2040 = vst.msk [vmem:[%s5307_s14 + $0x10] sm:$0xff] %vm875_vm6, %v1932_v5  ;;  %v3319_v9 = vsel %vm875_vm6, %v3301_v4, 0.0 }
 0x28d   : > { %v3317_v59 = vsel %vm875_vm6, %v3300_v29, 0.0  ;;  %v3354_v54 = vmul.f32 %v3300_v29, %v3300_v29  ;;  %3700 = vst.msk [vmem:[%s5307_s14 + $0x90] sm:$0xff] %vm875_vm6, %v3300_v29  ;;  %v1950_v49 = vadd.f32 %v1949_v7, %v1948_v20  ;;  %v2005_v37 = vsel %vm875_vm6, %v1987_v32, 0.0 }
 0x28e   : > { %v3318_v40 = vadd.f32 %v3317_v59, %v3316_v27  ;;  %v2003_v10 = vsel %vm875_vm6, %v1986_v8, 0.0  ;;  %v3373_v34 = vsel %vm875_vm6, %v3355_v53, 0.0 }
 0x28f   : > { %v3371_v11 = vsel %vm875_vm6, %v3354_v54, 0.0  ;;  %v2004_v33 = vadd.f32 %v2003_v10, %v2002_v3  ;;  %v1952_v48 = vadd.f32 %v1951_v18, %v1950_v49 }
 0x290   : > { %v3372_v0 = vadd.f32 %v3371_v11, %v3370_v61  ;;  %v3320_v51 = vadd.f32 %v3319_v9, %v3318_v40 }
 0x291   : > { %v2006_v13 = vadd.f32 %v2005_v37, %v2004_v33 }
 0x292   : > { %v3374_v41 = vadd.f32 %v3373_v34, %v3372_v0 }
 0x298   : > { %v3894_v46 = vpop.f32.mrb[4].mxu0 }
 0x299   : > { %v3978_v55 = vpop.f32.mrb[4].mxu1  ;;  %v1935_v14 = vadd.f32 %v3894_v46, %v5300_v17  ;;  %v1848_v16 = vpop.f32.mrb[5].mxu0 }
 0x29a   : > { %v3303_v30 = vadd.f32 %v3978_v55, %v5300_v17  ;;  %v3216_v58 = vpop.f32.mrb[5].mxu1  ;;  %v1934_v52 = vadd.f32 %v5300_v17, %v1848_v16 }
 0x29b   : > { %v3302_v43 = vadd.f32 %v5300_v17, %v3216_v58  ;;  %v1989_v44 = vmul.f32 %v1935_v14, %v1935_v14  ;;  %2043 = vst.msk [vmem:[%s5307_s14 + $0x28] sm:$0xff] %vm875_vm6, %v1935_v14  ;;  %v1955_v45 = vsel %vm875_vm6, %v1935_v14, 0.0 }
 0x29c   : > { %v3357_v60 = vmul.f32 %v3303_v30, %v3303_v30  ;;  %3703 = vst.msk [vmem:[%s5307_s14 + $0xa8] sm:$0xff] %vm875_vm6, %v3303_v30  ;;  %v1953_v19 = vsel %vm875_vm6, %v1934_v52, 0.0  ;;  %v1988_v22 = vmul.f32 %v1934_v52, %v1934_v52  ;;  %2042 = vst.msk [vmem:[%s5307_s14 + $0x20] sm:$0xff] %vm875_vm6, %v1934_v52  ;;  %v3323_v35 = vsel %vm875_vm6, %v3303_v30, 0.0 }
 0x29d   : > { %v3321_v15 = vsel %vm875_vm6, %v3302_v43, 0.0  ;;  %v3356_v63 = vmul.f32 %v3302_v43, %v3302_v43  ;;  %3702 = vst.msk [vmem:[%s5307_s14 + $0xa0] sm:$0xff] %vm875_vm6, %v3302_v43  ;;  %v1954_v21 = vadd.f32 %v1953_v19, %v1952_v48  ;;  %v2009_v25 = vsel %vm875_vm6, %v1989_v44, 0.0 }
 0x29e   : > { %v3322_v38 = vadd.f32 %v3321_v15, %v3320_v51  ;;  %v2007_v56 = vsel %vm875_vm6, %v1988_v22, 0.0  ;;  %v3377_v26 = vsel %vm875_vm6, %v3357_v60, 0.0 }
 0x29f   : > { %v3375_v57 = vsel %vm875_vm6, %v3356_v63, 0.0  ;;  %v2008_v23 = vadd.f32 %v2007_v56, %v2006_v13  ;;  %v1956_v24 = vadd.f32 %v1955_v45, %v1954_v21 }
 0x2a0   : > { %v3376_v50 = vadd.f32 %v3375_v57, %v3374_v41  ;;  %v3324_v1 = vadd.f32 %v3323_v35, %v3322_v38 }
 0x2a1   : > { %v2010_v47 = vadd.f32 %v2009_v25, %v2008_v23 }
 0x2a2   : > { %v3378_v12 = vadd.f32 %v3377_v26, %v3376_v50 }
 0x2a8   : > { %v3897_v2 = vpop.f32.mrb[6].mxu0 }
 0x2a9   : > { %v3981_v20 = vpop.f32.mrb[6].mxu1  ;;  %v1937_v27 = vadd.f32 %v3897_v2, %v5300_v17  ;;  %v1858_v28 = vpop.f32.mrb[7].mxu0 }
 0x2aa   : > { %v3305_v42 = vadd.f32 %v3981_v20, %v5300_v17  ;;  %v3226_v3 = vpop.f32.mrb[7].mxu1  ;;  %v1936_v61 = vadd.f32 %v5300_v17, %v1858_v28 }
 0x2ab   : > { %v3304_v62 = vadd.f32 %v5300_v17, %v3226_v3  ;;  %v1991_v6 = vmul.f32 %v1937_v27, %v1937_v27  ;;  %2045 = vst.msk [vmem:[%s5307_s14 + $0x38] sm:$0xff] %vm875_vm6, %v1937_v27  ;;  %v1959_v53 = vsel %vm875_vm6, %v1937_v27, 0.0 }
 0x2ac   : > { %v3359_v39 = vmul.f32 %v3305_v42, %v3305_v42  ;;  %3705 = vst.msk [vmem:[%s5307_s14 + $0xb8] sm:$0xff] %vm875_vm6, %v3305_v42  ;;  %v1957_v4 = vsel %vm875_vm6, %v1936_v61, 0.0  ;;  %v1990_v31 = vmul.f32 %v1936_v61, %v1936_v61  ;;  %2044 = vst.msk [vmem:[%s5307_s14 + $0x30] sm:$0xff] %vm875_vm6, %v1936_v61  ;;  %v3327_v7 = vsel %vm875_vm6, %v3305_v42, 0.0 }
 0x2ad   : > { %v3325_v36 = vsel %vm875_vm6, %v3304_v62, 0.0  ;;  %v3358_v5 = vmul.f32 %v3304_v62, %v3304_v62  ;;  %3704 = vst.msk [vmem:[%s5307_s14 + $0xb0] sm:$0xff] %vm875_vm6, %v3304_v62  ;;  %v1958_v29 = vadd.f32 %v1957_v4, %v1956_v24  ;;  %v2013_v9 = vsel %vm875_vm6, %v1991_v6, 0.0 }
 0x2ae   : > { %v3326_v32 = vadd.f32 %v3325_v36, %v3324_v1  ;;  %v2011_v8 = vsel %vm875_vm6, %v1990_v31, 0.0  ;;  %v3381_v10 = vsel %vm875_vm6, %v3359_v39, 0.0 }
 0x2af   : > { %v3379_v59 = vsel %vm875_vm6, %v3358_v5, 0.0  ;;  %v2012_v54 = vadd.f32 %v2011_v8, %v2010_v47  ;;  %v1960_v40 = vadd.f32 %v1959_v53, %v1958_v29 }
 0x2b0   : > { %v3380_v49 = vadd.f32 %v3379_v59, %v3378_v12  ;;  %v3328_v18 = vadd.f32 %v3327_v7, %v3326_v32 }
 0x2b1   : > { %v2014_v11 = vadd.f32 %v2013_v9, %v2012_v54 }
 0x2b2   : > { %v3382_v33 = vadd.f32 %v3381_v10, %v3380_v49 }
 0x2b8   : > { %v3900_v0 = vpop.f32.mrb[8].mxu0 }
 0x2b9   : > { %v3984_v48 = vpop.f32.mrb[8].mxu1  ;;  %v1939_v51 = vadd.f32 %v3900_v0, %v5300_v17  ;;  %v1868_v34 = vpop.f32.mrb[9].mxu0 }
 0x2ba   : > { %v3307_v37 = vadd.f32 %v3984_v48, %v5300_v17  ;;  %v3236_v13 = vpop.f32.mrb[9].mxu1  ;;  %v1938_v41 = vadd.f32 %v5300_v17, %v1868_v34 }
 0x2bb   : > { %v3306_v46 = vadd.f32 %v5300_v17, %v3236_v13  ;;  %v1993_v55 = vmul.f32 %v1939_v51, %v1939_v51  ;;  %2047 = vst.msk [vmem:[%s5307_s14 + $0x48] sm:$0xff] %vm875_vm6, %v1939_v51  ;;  %v1963_v60 = vsel %vm875_vm6, %v1939_v51, 0.0 }
 0x2bc   : > { %v3361_v14 = vmul.f32 %v3307_v37, %v3307_v37  ;;  %3707 = vst.msk [vmem:[%s5307_s14 + $0xc8] sm:$0xff] %vm875_vm6, %v3307_v37  ;;  %v1961_v30 = vsel %vm875_vm6, %v1938_v41, 0.0  ;;  %v1992_v16 = vmul.f32 %v1938_v41, %v1938_v41  ;;  %2046 = vst.msk [vmem:[%s5307_s14 + $0x40] sm:$0xff] %vm875_vm6, %v1938_v41  ;;  %v3331_v19 = vsel %vm875_vm6, %v3307_v37, 0.0 }
 0x2bd   : > { %v3329_v58 = vsel %vm875_vm6, %v3306_v46, 0.0  ;;  %v3360_v52 = vmul.f32 %v3306_v46, %v3306_v46  ;;  %3706 = vst.msk [vmem:[%s5307_s14 + $0xc0] sm:$0xff] %vm875_vm6, %v3306_v46  ;;  %v1962_v43 = vadd.f32 %v1961_v30, %v1960_v40  ;;  %v2017_v35 = vsel %vm875_vm6, %v1993_v55, 0.0 }
 0x2be   : > { %v3330_v44 = vadd.f32 %v3329_v58, %v3328_v18  ;;  %v2015_v22 = vsel %vm875_vm6, %v1992_v16, 0.0  ;;  %v3385_v56 = vsel %vm875_vm6, %v3361_v14, 0.0 }
 0x2bf   : > { %v3383_v15 = vsel %vm875_vm6, %v3360_v52, 0.0  ;;  %v2016_v63 = vadd.f32 %v2015_v22, %v2014_v11  ;;  %v1964_v38 = vadd.f32 %v1963_v60, %v1962_v43 }
 0x2c0   : > { %v3384_v21 = vadd.f32 %v3383_v15, %v3382_v33  ;;  %v3332_v45 = vadd.f32 %v3331_v19, %v3330_v44 }
 0x2c1   : > { %v2018_v57 = vadd.f32 %v2017_v35, %v2016_v63 }
 0x2c2   : > { %v3386_v23 = vadd.f32 %v3385_v56, %v3384_v21 }
 0x2c8   : > { %v3903_v50 = vpop.f32.mrb[10].mxu0 }
 0x2c9   : > { %v3987_v24 = vpop.f32.mrb[10].mxu1  ;;  %v1941_v1 = vadd.f32 %v3903_v50, %v5300_v17  ;;  %v1878_v26 = vpop.f32.mrb[11].mxu0 }
 0x2ca   : > { %v3309_v25 = vadd.f32 %v3987_v24, %v5300_v17  ;;  %v3246_v47 = vpop.f32.mrb[11].mxu1  ;;  %v1940_v12 = vadd.f32 %v5300_v17, %v1878_v26 }
 0x2cb   : > { %v3308_v2 = vadd.f32 %v5300_v17, %v3246_v47  ;;  %v1995_v20 = vmul.f32 %v1941_v1, %v1941_v1  ;;  %2049 = vst.msk [vmem:[%s5307_s14 + $0x58] sm:$0xff] %vm875_vm6, %v1941_v1  ;;  %v1967_v39 = vsel %vm875_vm6, %v1941_v1, 0.0 }
 0x2cc   : > { %v3363_v27 = vmul.f32 %v3309_v25, %v3309_v25  ;;  %3709 = vst.msk [vmem:[%s5307_s14 + $0xd8] sm:$0xff] %vm875_vm6, %v3309_v25  ;;  %v1965_v42 = vsel %vm875_vm6, %v1940_v12, 0.0  ;;  %v1994_v28 = vmul.f32 %v1940_v12, %v1940_v12  ;;  %2048 = vst.msk [vmem:[%s5307_s14 + $0x50] sm:$0xff] %vm875_vm6, %v1940_v12  ;;  %v3335_v4 = vsel %vm875_vm6, %v3309_v25, 0.0 }
 0x2cd   : > { %v3333_v3 = vsel %vm875_vm6, %v3308_v2, 0.0  ;;  %v3362_v61 = vmul.f32 %v3308_v2, %v3308_v2  ;;  %3708 = vst.msk [vmem:[%s5307_s14 + $0xd0] sm:$0xff] %vm875_vm6, %v3308_v2  ;;  %v1966_v62 = vadd.f32 %v1965_v42, %v1964_v38  ;;  %v2021_v7 = vsel %vm875_vm6, %v1995_v20, 0.0 }
 0x2ce   : > { %v3334_v6 = vadd.f32 %v3333_v3, %v3332_v45  ;;  %v2019_v31 = vsel %vm875_vm6, %v1994_v28, 0.0  ;;  %v3389_v8 = vsel %vm875_vm6, %v3363_v27, 0.0 }
 0x2cf   : > { %v3387_v36 = vsel %vm875_vm6, %v3362_v61, 0.0  ;;  %v2020_v5 = vadd.f32 %v2019_v31, %v2018_v57  ;;  %v1968_v32 = vadd.f32 %v1967_v39, %v1966_v62 }
 0x2d0   : > { %v3388_v29 = vadd.f32 %v3387_v36, %v3386_v23  ;;  %v3336_v53 = vadd.f32 %v3335_v4, %v3334_v6 }
 0x2d1   : > { %v2022_v59 = vadd.f32 %v2021_v7, %v2020_v5 }
 0x2d2   : > { %v3390_v54 = vadd.f32 %v3389_v8, %v3388_v29 }
 0x2d8   : > { %v3906_v49 = vpop.f32.mrb[12].mxu0 }
 0x2d9   : > { %v3990_v40 = vpop.f32.mrb[12].mxu1  ;;  %v1943_v18 = vadd.f32 %v3906_v49, %v5300_v17  ;;  %v1888_v10 = vpop.f32.mrb[13].mxu0 }
 0x2da   : > { %v3311_v9 = vadd.f32 %v3990_v40, %v5300_v17  ;;  %v3256_v11 = vpop.f32.mrb[13].mxu1  ;;  %v1942_v33 = vadd.f32 %v5300_v17, %v1888_v10 }
 0x2db   : > { %v3310_v0 = vadd.f32 %v5300_v17, %v3256_v11  ;;  %v1997_v48 = vmul.f32 %v1943_v18, %v1943_v18  ;;  %2051 = vst.msk [vmem:[%s5307_s14 + $0x68] sm:$0xff] %vm875_vm6, %v1943_v18  ;;  %v1971_v14 = vsel %vm875_vm6, %v1943_v18, 0.0 }
 0x2dc   : > { %v3365_v51 = vmul.f32 %v3311_v9, %v3311_v9  ;;  %3711 = vst.msk [vmem:[%s5307_s14 + $0xe8] sm:$0xff] %vm875_vm6, %v3311_v9  ;;  %v1969_v37 = vsel %vm875_vm6, %v1942_v33, 0.0  ;;  %v1996_v34 = vmul.f32 %v1942_v33, %v1942_v33  ;;  %2050 = vst.msk [vmem:[%s5307_s14 + $0x60] sm:$0xff] %vm875_vm6, %v1942_v33  ;;  %v3339_v30 = vsel %vm875_vm6, %v3311_v9, 0.0 }
 0x2dd   : > { %v3337_v13 = vsel %vm875_vm6, %v3310_v0, 0.0  ;;  %v3364_v41 = vmul.f32 %v3310_v0, %v3310_v0  ;;  %3710 = vst.msk [vmem:[%s5307_s14 + $0xe0] sm:$0xff] %vm875_vm6, %v3310_v0  ;;  %v1970_v46 = vadd.f32 %v1969_v37, %v1968_v32  ;;  %v2025_v19 = vsel %vm875_vm6, %v1997_v48, 0.0 }
 0x2de   : > { %v3338_v55 = vadd.f32 %v3337_v13, %v3336_v53  ;;  %v2023_v16 = vsel %vm875_vm6, %v1996_v34, 0.0  ;;  %v3393_v22 = vsel %vm875_vm6, %v3365_v51, 0.0 }
 0x2df   : > { %v3391_v58 = vsel %vm875_vm6, %v3364_v41, 0.0  ;;  %v2024_v52 = vadd.f32 %v2023_v16, %v2022_v59  ;;  %v1972_v44 = vadd.f32 %v1971_v14, %v1970_v46 }
 0x2e0   : > { %v3392_v43 = vadd.f32 %v3391_v58, %v3390_v54  ;;  %v3340_v60 = vadd.f32 %v3339_v30, %v3338_v55 }
 0x2e1   : > { %v2026_v15 = vadd.f32 %v2025_v19, %v2024_v52 }
 0x2e2   : > { %v3394_v63 = vadd.f32 %v3393_v22, %v3392_v43 }
 0x2e8   : > { %v3909_v21 = vpop.f32.mrb[14].mxu0 }
 0x2e9   : > { %v3993_v38 = vpop.f32.mrb[14].mxu1  ;;  %v1945_v45 = vadd.f32 %v3909_v21, %v5300_v17  ;;  %v1898_v56 = vpop.f32.mrb[15].mxu0 }
 0x2ea   : > { %v3313_v35 = vadd.f32 %v3993_v38, %v5300_v17  ;;  %v3266_v57 = vpop.f32.mrb[15].mxu1  ;;  %v1944_v23 = vadd.f32 %v5300_v17, %v1898_v56 }
 0x2eb   : > { %v3312_v50 = vadd.f32 %v5300_v17, %v3266_v57  ;;  %v1999_v24 = vmul.f32 %v1945_v45, %v1945_v45  ;;  %2053 = vst.msk [vmem:[%s5307_s14 + $0x78] sm:$0xff] %vm875_vm6, %v1945_v45  ;;  %v1975_v17 = vsel %vm875_vm6, %v1945_v45, 0.0 }
 0x2ec   : > { %v3367_v1 = vmul.f32 %v3313_v35, %v3313_v35  ;;  %3713 = vst.msk [vmem:[%s5307_s14 + $0xf8] sm:$0xff] %vm875_vm6, %v3313_v35  ;;  %v1973_v25 = vsel %vm875_vm6, %v1944_v23, 0.0  ;;  %v1998_v26 = vmul.f32 %v1944_v23, %v1944_v23  ;;  %2052 = vst.msk [vmem:[%s5307_s14 + $0x70] sm:$0xff] %vm875_vm6, %v1944_v23  ;;  %v3343_v27 = vsel %vm875_vm6, %v3313_v35, 0.0 }
 0x2ed   : > { %v3341_v47 = vsel %vm875_vm6, %v3312_v50, 0.0  ;;  %v3366_v12 = vmul.f32 %v3312_v50, %v3312_v50  ;;  %3712 = vst.msk [vmem:[%s5307_s14 + $0xf0] sm:$0xff] %vm875_vm6, %v3312_v50  ;;  %v1974_v2 = vadd.f32 %v1973_v25, %v1972_v44  ;;  %v2029_v39 = vsel %vm875_vm6, %v1999_v24, 0.0 }
 0x2ee   : > { %v3342_v20 = vadd.f32 %v3341_v47, %v3340_v60  ;;  %v2027_v42 = vsel %vm875_vm6, %v1998_v26, 0.0  ;;  %v3397_v4 = vsel %vm875_vm6, %v3367_v1, 0.0 }
 0x2ef   : > { %v3395_v28 = vsel %vm875_vm6, %v3366_v12, 0.0  ;;  %v1976_v3 = vadd.f32 %v1975_v17, %v1974_v2  ;;  %v2028_v61 = vadd.f32 %v2027_v42, %v2026_v15 }
 0x2f0   : > { %v3344_v62 = vadd.f32 %v3343_v27, %v3342_v20  ;;  %v3396_v6 = vadd.f32 %v3395_v28, %v3394_v63 }
 0x2f1   : > { %v1977_v31 = vrot.slane %v1976_v3, 4  ;;  %v2030_v36 = vadd.f32 %v2029_v39, %v2028_v61 }
 0x2f2   : > { %v3345_v5 = vrot.slane %v3344_v62, 4  ;;  %v3398_v29 = vadd.f32 %v3397_v4, %v3396_v6 }
 0x2f3   : > { %v1978_v32 = vadd.f32 %v1977_v31, %v1976_v3  ;;  %v2031_v53 = vrot.slane %v2030_v36, 4 }
 0x2f4   : > { %v3346_v7 = vadd.f32 %v3345_v5, %v3344_v62  ;;  %v3399_v8 = vrot.slane %v3398_v29, 4 }
 0x2f5   : > { %v1979_v59 = vrot.slane %v1978_v32, 2  ;;  %v2032_v54 = vadd.f32 %v2031_v53, %v2030_v36 }
 0x2f6   : > { %v3347_v49 = vrot.slane %v3346_v7, 2  ;;  %v3400_v40 = vadd.f32 %v3399_v8, %v3398_v29 }
 0x2f7   : > { %v1980_v18 = vadd.f32 %v1979_v59, %v1978_v32  ;;  %v2033_v9 = vrot.slane %v2032_v54, 2 }
 0x2f8   : > { %v3348_v10 = vadd.f32 %v3347_v49, %v3346_v7  ;;  %v3401_v11 = vrot.slane %v3400_v40, 2 }
 0x2f9   : > { %v1981_v33 = vrot.slane %v1980_v18, 1  ;;  %v2034_v0 = vadd.f32 %v2033_v9, %v2032_v54 }
 0x2fa   : > { %v3349_v48 = vrot.slane %v3348_v10, 1  ;;  %v3402_v51 = vadd.f32 %v3401_v11, %v3400_v40 }
 0x2fb   : > { %v1982_v37 = vadd.f32 %v1981_v33, %v1980_v18  ;;  %v2035_v34 = vrot.slane %v2034_v0, 1 }
 0x2fc   : > { %v3350_v13 = vadd.f32 %v3349_v48, %v3348_v10  ;;  %v3403_v41 = vrot.slane %v3402_v51, 1 }
 0x2fd   : > { %v2036_v46 = vadd.f32 %v2035_v34, %v2034_v0 }
 0x2fe   : > { %v3351_v55 = vadd.f32 %v3350_v13, %v1982_v37  ;;  %v3404_v14 = vadd.f32 %v3403_v41, %v3402_v51 }
 0x300   : > { %v3405_v30 = vadd.f32 %v3404_v14, %v2036_v46 }
 0x302   : > { %v3423_v16 = vsel %vm505_vm2, %v3351_v55, %v3405_v30 }
 0x303   : > { %3425 = vst.msk [vmem:[%s321_s17] sm:$0x3] %vm3424_vm8, %v3423_v16 }
 0x304 PF: > { %s17_s23 = sadd.s32 1, %s4144_s23   ;;  %s5540_s21 = smov %s4140_s22 }
 0x305   : > { %p14_p5 = scmp.ge.s32.totalorder %s17_s23, 4   ;;  %s5541_s22 = smov %s5543_s24 }
 0x307   :  { %16 = sbr.rel (!%p14_p5) target bundleno = 2 (0x2), region = 97 }

// kernel: wide_basic_forward.5
= control target key start
LH: loop header
LB: loop body
LE: loop exit
PB: predicated region body
PF: predicated region fallthrough
CT: control target
= control target key end

     0   :  { %s4794_s27 = smov 0   ;;  %s4796_s28 = smov 0   ;;  %s6120_s0 = inlined_call_operand.vmem [shape: f32[1,8], index: 0, kind: input, shape index: {}]   ;;  %s6121_s1 = inlined_call_operand.vmem [shape: f32[1,8], index: 1, kind: input, shape index: {}]   ;;  %s6122_s2 = inlined_call_operand.vmem [shape: f32[3,24,8], index: 2, kind: input, shape index: {}]   ;;  %s6123_s3 = inlined_call_operand.vmem [shape: f32[1,8], index: 3, kind: input, shape index: {}]   ;;  %s6124_s4 = inlined_call_operand.vmem [shape: f32[2,16,16,8], index: 4, kind: input, shape index: {}]   ;;  %s6125_s5 = inlined_call_operand.vmem [shape: f32[2,16,16,4], index: 5, kind: input, shape index: {}]   ;;  %s6126_s6 = inlined_call_operand.vmem [shape: f32[4,8], index: 6, kind: input, shape index: {}]   ;;  %s6127_s7 = inlined_call_operand.vmem [shape: f32[1,8], index: 7, kind: input, shape index: {}]   ;;  %s6128_s8 = inlined_call_operand.vmem [shape: f32[2,16,16,8], index: 8, kind: output, shape index: {}]  }
   0x1   :  { %s4798_s29 = smov 0  }
   0x2 LB: > { %s30_s30 = sadd.s32 1, %s4740_s28  ;;  %p3971_p0 = scmp.ge.s32.totalorder %s4744_s29, 1  ;;  %s4744_s29 = sphi %s4798_s29, %s18_s29   ;;  %s4740_s28 = sphi %s4796_s28, %s6169_s28   ;;  %s4736_s27 = sphi %s4794_s27, %s6168_s27  }
   0x3   : > { %p32_p1 = scmp.ge.s32.totalorder %s30_s30, 2  ;;  %p320_p2 = scmp.lt.s32.totalorder %s4744_s29, 3 }
   0x5   : > { %s6171_s30 = smov (%p32_p1, %s30_s30), 0  ;;  %p321_p3 = pnand %p3971_p0, %p320_p2 }
   0x7   : > { %324 = sbr.rel (%p321_p3) target bundleno = 784 (0x310), region = 52 }
   0xe   : > { %p383_p4 = scmp.lt.s32.totalorder %s4736_s27, 1  ;;  %v4817_v0 = vld [vmem:[%s6120_s0] ss:$0 sm:$0xff]  ;;  %vm550_vm0 = vcmask 64512   ;;  %vm553_vm1 = vcmask 58368   ;;  %vm591_vm2 = vcmask 1040384  }
   0xf   : > { %v4828_v1 = vld [vmem:[%s6121_s1] ss:$0 sm:$0xff]  ;;  %s4746_s17 = smov 8   ;;  %s4747_s18 = smov 16   ;;  %vm961_vm3 = vcmask 130048   ;;  %vm1193_vm4 = vcmask 195584  }
  0x10   : > { %s6173_s27 = smov (!%p383_p4, %s4736_s27), 1  ;;  %vm2091_vm5 = vcmask 1043456   ;;  %vm2042_vm6 = vcmask 31744  }
  0x11   : > { %s4812_s9 = sshll.u32 %s6173_s27, 8 }
  0x12   : > { %s4823_s14 = scalar_lea.vmem %s6124_s4, %s4812_s9  ;;  %s5894_s25 = scalar_lea.vmem %s6125_s5, %s4812_s9 }
  0x13   : > { %v408_v2 = vld [vmem:[%s4823_s14] sm:$0xff]  ;;  %v409_v3 = vld [vmem:[%s4823_s14 + $0x8] sm:$0xff]  ;;  %v426_v9 = vld [vmem:[%s4823_s14 + $0x90] sm:$0xff] }
  0x14   : > { %v424_v4 = vld [vmem:[%s4823_s14 + $0x80] sm:$0xff]  ;;  %v447_v5 = vmul.f32 %v4817_v0, %v408_v2  ;;  %v448_v6 = vmul.f32 %v4817_v0, %v409_v3  ;;  %v425_v7 = vld [vmem:[%s4823_s14 + $0x88] sm:$0xff]  ;;  %v427_v10 = vld [vmem:[%s4823_s14 + $0x98] sm:$0xff]  ;;  %v465_v12 = vmul.f32 %v4817_v0, %v426_v9 }
  0x15   : > { %v463_v8 = vmul.f32 %v4817_v0, %v424_v4  ;;  %v464_v11 = vmul.f32 %v4817_v0, %v425_v7  ;;  %v466_v13 = vmul.f32 %v4817_v0, %v427_v10  ;;  %v410_v14 = vld [vmem:[%s4823_s14 + $0x10] sm:$0xff]  ;;  %v411_v15 = vld [vmem:[%s4823_s14 + $0x18] sm:$0xff]  ;;  %v428_v40 = vld [vmem:[%s4823_s14 + $0xa0] sm:$0xff] }
  0x16   : > { %v486_v16 = vadd.f32 %v4828_v1, %v447_v5  ;;  %v487_v17 = vadd.f32 %v4828_v1, %v448_v6  ;;  %v449_v19 = vmul.f32 %v4817_v0, %v410_v14  ;;  %v504_v21 = vadd.f32 %v4828_v1, %v465_v12  ;;  %v429_v41 = vld [vmem:[%s4823_s14 + $0xa8] sm:$0xff]  ;;  %v412_v46 = vld [vmem:[%s4823_s14 + $0x20] sm:$0xff]  ;;  %v430_v48 = vld [vmem:[%s4823_s14 + $0xb0] sm:$0xff] }
  0x17   : > { %v502_v18 = vadd.f32 %v4828_v1, %v463_v8  ;;  %v503_v20 = vadd.f32 %v4828_v1, %v464_v11  ;;  %v505_v22 = vadd.f32 %v4828_v1, %v466_v13  ;;  %v450_v23 = vmul.f32 %v4817_v0, %v411_v15  ;;  %v413_v47 = vld [vmem:[%s4823_s14 + $0x28] sm:$0xff]  ;;  %v431_v57 = vld [vmem:[%s4823_s14 + $0xb8] sm:$0xff]  ;;  %v414_v62 = vld [vmem:[%s4823_s14 + $0x30] sm:$0xff] }
  0x18   : > { %v518_v24 = vmax.f32 %v486_v16, 0.0  ;;  %v519_v25 = vmax.f32 %v487_v17, 0.0  ;;  %v488_v27 = vadd.f32 %v4828_v1, %v449_v19  ;;  %v536_v29 = vmax.f32 %v504_v21, 0.0  ;;  %v415_v63 = vld [vmem:[%s4823_s14 + $0x38] sm:$0xff]  ;;  %v432_v14 = vld [vmem:[%s4823_s14 + $0xc0] sm:$0xff]  ;;  %v433_v19 = vld [vmem:[%s4823_s14 + $0xc8] sm:$0xff] }
  0x19   : > { %v534_v26 = vmax.f32 %v502_v18, 0.0  ;;  %v535_v28 = vmax.f32 %v503_v20, 0.0  ;;  %v537_v30 = vmax.f32 %v505_v22, 0.0  ;;  %v489_v31 = vadd.f32 %v4828_v1, %v450_v23 }
  0x1a   : > { %v592_v32 = vrot.slane %v518_v24, 7  ;;  %v593_v33 = vrot.slane %v519_v25, 7  ;;  %v520_v35 = vmax.f32 %v488_v27, 0.0  ;;  %v619_v37 = vrot.slane %v536_v29, 7 }
  0x1b   : > { %v616_v34 = vrot.slane %v534_v26, 7  ;;  %v617_v36 = vrot.slane %v535_v28, 7  ;;  %v620_v38 = vrot.slane %v537_v30, 7  ;;  %v521_v39 = vmax.f32 %v489_v31, 0.0 }
  0x1c   : > { %v594_v42 = vsel %vm591_vm2, %v592_v32, %v593_v33  ;;  %v704_v43 = vsel %vm591_vm2, %v593_v33, 0.0  ;;  %v688_v44 = vsel %vm591_vm2, 0.0, %v592_v32  ;;  %v697_v52 = vsel %vm591_vm2, 0.0, %v619_v37 }
  0x1d   : > { %v696_v45 = vsel %vm591_vm2, 0.0, %v616_v34  ;;  %722 = vst.msk [vmem:[#allocation2 + $0x20] sm:$0xff] %vm550_vm0, %v594_v42  ;;  %721 = vst.msk [vmem:[#allocation2 + $0x18] sm:$0xff] %vm550_vm0, %v688_v44  ;;  %v618_v49 = vsel %vm591_vm2, %v616_v34, %v617_v36  ;;  %v712_v50 = vsel %vm591_vm2, %v617_v36, 0.0  ;;  %v621_v51 = vsel %vm591_vm2, %v619_v37, %v620_v38  ;;  %v416_v36 = vld [vmem:[%s4823_s14 + $0x40] sm:$0xff] }
  0x1e   : > { %723 = vst.msk [vmem:[#allocation2 + $0x28] sm:$0x3] %vm553_vm1, %v704_v43  ;;  %747 = vst.msk [vmem:[#allocation2 + $0xe8] sm:$0x3] %vm553_vm1, %v712_v50  ;;  %v595_v53 = vrot.slane %v520_v35, 7  ;;  %v596_v54 = vrot.slane %v521_v39, 7  ;;  %v467_v56 = vmul.f32 %v4817_v0, %v428_v40  ;;  %v468_v58 = vmul.f32 %v4817_v0, %v429_v41 }
  0x1f   : > { %745 = vst.msk [vmem:[#allocation2 + $0xd8] sm:$0xff] %vm550_vm0, %v696_v45  ;;  %746 = vst.msk [vmem:[#allocation2 + $0xe0] sm:$0xff] %vm550_vm0, %v618_v49  ;;  %v713_v55 = vsel %vm591_vm2, %v620_v38, 0.0  ;;  %v451_v59 = vmul.f32 %v4817_v0, %v412_v46  ;;  %v452_v60 = vmul.f32 %v4817_v0, %v413_v47  ;;  %v469_v61 = vmul.f32 %v4817_v0, %v430_v48  ;;  %v417_v41 = vld [vmem:[%s4823_s14 + $0x48] sm:$0xff]  ;;  %v434_v50 = vld [vmem:[%s4823_s14 + $0xd0] sm:$0xff] }
  0x20   : > { %748 = vst.msk [vmem:[#allocation2 + $0xf0] sm:$0xff] %vm550_vm0, %v697_v52  ;;  %749 = vst.msk [vmem:[#allocation2 + $0xf8] sm:$0xff] %vm550_vm0, %v621_v51  ;;  %v597_v2 = vsel %vm591_vm2, %v595_v53, %v596_v54  ;;  %v689_v3 = vsel %vm591_vm2, 0.0, %v595_v53  ;;  %v705_v4 = vsel %vm591_vm2, %v596_v54, 0.0  ;;  %v506_v5 = vadd.f32 %v4828_v1, %v467_v56  ;;  %v435_v51 = vld [vmem:[%s4823_s14 + $0xd8] sm:$0xff] }
  0x21   : > { %750 = vst.msk [vmem:[#allocation2 + $0x100] sm:$0x3] %vm553_vm1, %v713_v55  ;;  %726 = vst.msk [vmem:[#allocation2 + $0x40] sm:$0x3] %vm553_vm1, %v705_v4  ;;  %v507_v6 = vadd.f32 %v4828_v1, %v468_v58  ;;  %v490_v7 = vadd.f32 %v4828_v1, %v451_v59  ;;  %v491_v8 = vadd.f32 %v4828_v1, %v452_v60  ;;  %v418_v4 = vld [vmem:[%s4823_s14 + $0x50] sm:$0xff] }
  0x22   : > { %724 = vst.msk [vmem:[#allocation2 + $0x30] sm:$0xff] %vm550_vm0, %v689_v3  ;;  %725 = vst.msk [vmem:[#allocation2 + $0x38] sm:$0xff] %vm550_vm0, %v597_v2  ;;  %v470_v9 = vmul.f32 %v4817_v0, %v431_v57  ;;  %v538_v10 = vmax.f32 %v506_v5, 0.0  ;;  %v508_v11 = vadd.f32 %v4828_v1, %v469_v61  ;;  %v453_v12 = vmul.f32 %v4817_v0, %v414_v62 }
  0x23   : > { %v454_v13 = vmul.f32 %v4817_v0, %v415_v63  ;;  %v539_v15 = vmax.f32 %v507_v6, 0.0  ;;  %v522_v16 = vmax.f32 %v490_v7, 0.0  ;;  %v523_v17 = vmax.f32 %v491_v8, 0.0 }
  0x24   : > { %v509_v18 = vadd.f32 %v4828_v1, %v470_v9  ;;  %v4904_v21 = vld [vmem:[#allocation2 + $0x19] sm:$0xff]  ;;  %v622_v22 = vrot.slane %v538_v10, 7  ;;  %v540_v23 = vmax.f32 %v508_v11, 0.0  ;;  %v492_v24 = vadd.f32 %v4828_v1, %v453_v12 }
  0x25   : > { %v4902_v20 = vld [vmem:[#allocation2 + $0x21] sm:$0xff]  ;;  %v493_v25 = vadd.f32 %v4828_v1, %v454_v13  ;;  %1045 = vrot.lane.b32.xlu0 %v4904_v21, %s4746_s17  ;;  %v623_v26 = vrot.slane %v539_v15, 7  ;;  %v598_v27 = vrot.slane %v522_v16, 7  ;;  %v599_v28 = vrot.slane %v523_v17, 7  ;;  %v419_v9 = vld [vmem:[%s4823_s14 + $0x58] sm:$0xff] }
  0x26   : > { %1047 = vrot.lane.b32.xlu1 %v4902_v20, %s4746_s17  ;;  %v471_v29 = vmul.f32 %v4817_v0, %v432_v14  ;;  %v4913_v30 = vld [vmem:[#allocation2 + $0x1a] sm:$0xff]  ;;  %v698_v32 = vsel %vm591_vm2, 0.0, %v622_v22  ;;  %v541_v33 = vmax.f32 %v509_v18, 0.0  ;;  %v625_v34 = vrot.slane %v540_v23, 7  ;;  %v4966_v11 = vld [vmem:[#allocation2 + $0xe2] sm:$0xff] }
  0x27   : > { %v4915_v31 = vld [vmem:[#allocation2 + $0xd9] sm:$0xff]  ;;  %v472_v35 = vmul.f32 %v4817_v0, %v433_v19  ;;  %v624_v37 = vsel %vm591_vm2, %v622_v22, %v623_v26  ;;  %751 = vst.msk [vmem:[#allocation2 + $0x108] sm:$0xff] %vm550_vm0, %v698_v32  ;;  %v600_v38 = vsel %vm591_vm2, %v598_v27, %v599_v28  ;;  %v690_v39 = vsel %vm591_vm2, 0.0, %v598_v27  ;;  %v4945_v53 = vld [vmem:[#allocation2 + $0xe1] sm:$0xff] }
  0x28   : > { %v706_v40 = vsel %vm591_vm2, %v599_v28, 0.0  ;;  %752 = vst.msk [vmem:[#allocation2 + $0x110] sm:$0xff] %vm550_vm0, %v624_v37  ;;  %727 = vst.msk [vmem:[#allocation2 + $0x48] sm:$0xff] %vm550_vm0, %v690_v39  ;;  %v714_v42 = vsel %vm591_vm2, %v623_v26, 0.0  ;;  %v626_v43 = vrot.slane %v541_v33, 7  ;;  %v699_v44 = vsel %vm591_vm2, 0.0, %v625_v34 }
  0x29   : > { %728 = vst.msk [vmem:[#allocation2 + $0x50] sm:$0xff] %vm550_vm0, %v600_v38  ;;  %v510_v45 = vadd.f32 %v4828_v1, %v471_v29  ;;  %2572 = vrot.lane.b32.xlu0 %v4915_v31, %s4746_s17  ;;  %754 = vst.msk [vmem:[#allocation2 + $0x120] sm:$0xff] %vm550_vm0, %v699_v44  ;;  %v524_v46 = vmax.f32 %v492_v24, 0.0  ;;  %v525_v47 = vmax.f32 %v493_v25, 0.0  ;;  %v511_v48 = vadd.f32 %v4828_v1, %v472_v35  ;;  %v4943_v52 = vld [vmem:[#allocation2 + $0xda] sm:$0xff]  ;;  %v4968_v12 = vld [vmem:[#allocation2 + $0x22] sm:$0xff] }
  0x2a   : > { %729 = vst.msk [vmem:[#allocation2 + $0x58] sm:$0x3] %vm553_vm1, %v706_v40  ;;  %1109 = vrot.lane.b32.xlu1 %v4913_v30, %s4747_s18  ;;  %753 = vst.msk [vmem:[#allocation2 + $0x118] sm:$0x3] %vm553_vm1, %v714_v42  ;;  %v455_v49 = vmul.f32 %v4817_v0, %v416_v36  ;;  %v627_v54 = vsel %vm591_vm2, %v625_v34, %v626_v43  ;;  %v715_v55 = vsel %vm591_vm2, %v626_v43, 0.0  ;;  %v436_v10 = vld [vmem:[%s4823_s14 + $0xe0] sm:$0xff] }
  0x2b   : > { %v542_v56 = vmax.f32 %v510_v45, 0.0  ;;  %v456_v57 = vmul.f32 %v4817_v0, %v417_v41  ;;  %755 = vst.msk [vmem:[#allocation2 + $0x128] sm:$0xff] %vm550_vm0, %v627_v54  ;;  %v601_v58 = vrot.slane %v524_v46, 7  ;;  %v602_v59 = vrot.slane %v525_v47, 7  ;;  %v437_v17 = vld [vmem:[%s4823_s14 + $0xe8] sm:$0xff]  ;;  %v420_v34 = vld [vmem:[%s4823_s14 + $0x60] sm:$0xff] }
  0x2c   : > { %756 = vst.msk [vmem:[#allocation2 + $0x130] sm:$0x3] %vm553_vm1, %v715_v55  ;;  %v543_v60 = vmax.f32 %v511_v48, 0.0  ;;  %v494_v61 = vadd.f32 %v4828_v1, %v455_v49  ;;  %v473_v2 = vmul.f32 %v4817_v0, %v434_v50  ;;  %v474_v3 = vmul.f32 %v4817_v0, %v435_v51  ;;  %v421_v35 = vld [vmem:[%s4823_s14 + $0x68] sm:$0xff]  ;;  %v4993_v36 = vld [vmem:[#allocation2 + $0xf1] sm:$0xff] }
  0x2d   : > { %v628_v62 = vrot.slane %v542_v56, 7  ;;  %v495_v63 = vadd.f32 %v4828_v1, %v456_v57  ;;  %2574 = vrot.lane.b32.xlu0 %v4945_v53, %s4746_s17  ;;  %v603_v5 = vsel %vm591_vm2, %v601_v58, %v602_v59  ;;  %v691_v6 = vsel %vm591_vm2, 0.0, %v601_v58  ;;  %v4995_v37 = vld [vmem:[#allocation2 + $0x31] sm:$0xff] }
  0x2e   : > { %2636 = vrot.lane.b32.xlu1 %v4943_v52, %s4747_s18  ;;  %v707_v7 = vsel %vm591_vm2, %v602_v59, 0.0  ;;  %v629_v8 = vrot.slane %v543_v60, 7  ;;  %730 = vst.msk [vmem:[#allocation2 + $0x60] sm:$0xff] %vm550_vm0, %v691_v6  ;;  %731 = vst.msk [vmem:[#allocation2 + $0x68] sm:$0xff] %vm550_vm0, %v603_v5  ;;  %v526_v14 = vmax.f32 %v494_v61, 0.0  ;;  %v512_v16 = vadd.f32 %v4828_v1, %v473_v2  ;;  %v438_v50 = vld [vmem:[%s4823_s14 + $0xf0] sm:$0xff] }
  0x2f   : > { %732 = vst.msk [vmem:[#allocation2 + $0x70] sm:$0x3] %vm553_vm1, %v707_v7  ;;  %v700_v13 = vsel %vm591_vm2, 0.0, %v628_v62  ;;  %v527_v15 = vmax.f32 %v495_v63, 0.0  ;;  %v513_v22 = vadd.f32 %v4828_v1, %v474_v3  ;;  %v457_v23 = vmul.f32 %v4817_v0, %v418_v4  ;;  %v439_v51 = vld [vmem:[%s4823_s14 + $0xf8] sm:$0xff] }
  0x30   : > { %v630_v18 = vsel %vm591_vm2, %v628_v62, %v629_v8  ;;  %757 = vst.msk [vmem:[#allocation2 + $0x138] sm:$0xff] %vm550_vm0, %v700_v13  ;;  %v716_v19 = vsel %vm591_vm2, %v629_v8, 0.0  ;;  %v604_v24 = vrot.slane %v526_v14, 7  ;;  %v544_v26 = vmax.f32 %v512_v16, 0.0  ;;  %v5018_v58 = vld [vmem:[#allocation2 + $0x32] sm:$0xff] }
  0x31   : > { %758 = vst.msk [vmem:[#allocation2 + $0x140] sm:$0xff] %vm550_vm0, %v630_v18  ;;  %v605_v25 = vrot.slane %v527_v15, 7  ;;  %v458_v27 = vmul.f32 %v4817_v0, %v419_v9  ;;  %1111 = vrot.lane.b32.xlu0 %v4968_v12, %s4747_s18  ;;  %v545_v28 = vmax.f32 %v513_v22, 0.0  ;;  %v496_v29 = vadd.f32 %v4828_v1, %v457_v23  ;;  %v5020_v59 = vld [vmem:[#allocation2 + $0x39] sm:$0xff] }
  0x32   : > { %759 = vst.msk [vmem:[#allocation2 + $0x148] sm:$0x3] %vm553_vm1, %v716_v19  ;;  %2638 = vrot.lane.b32.xlu1 %v4966_v11, %s4747_s18  ;;  %v475_v32 = vmul.f32 %v4817_v0, %v436_v10  ;;  %v476_v33 = vmul.f32 %v4817_v0, %v437_v17  ;;  %v692_v39 = vsel %vm591_vm2, 0.0, %v604_v24  ;;  %v631_v41 = vrot.slane %v544_v26, 7  ;;  %v422_v10 = vld [vmem:[%s4823_s14 + $0x70] sm:$0xff]  ;;  %v423_v17 = vld [vmem:[%s4823_s14 + $0x78] sm:$0xff]  ;;  %s5983_s14 = scalar_lea.vmem %s6128_s8, %s4812_s9 }
  0x33   : > { %v606_v38 = vsel %vm591_vm2, %v604_v24, %v605_v25  ;;  %v708_v40 = vsel %vm591_vm2, %v605_v25, 0.0  ;;  %733 = vst.msk [vmem:[#allocation2 + $0x78] sm:$0xff] %vm550_vm0, %v692_v39  ;;  %v632_v42 = vrot.slane %v545_v28, 7  ;;  %v497_v43 = vadd.f32 %v4828_v1, %v458_v27  ;;  %v5040_v18 = vld [vmem:[#allocation2 + $0xf2] sm:$0xff] }
  0x34   : > { %734 = vst.msk [vmem:[#allocation2 + $0x80] sm:$0xff] %vm550_vm0, %v606_v38  ;;  %v528_v44 = vmax.f32 %v496_v29, 0.0  ;;  %v514_v45 = vadd.f32 %v4828_v1, %v475_v32  ;;  %v701_v46 = vsel %vm591_vm2, 0.0, %v631_v41  ;;  %v515_v47 = vadd.f32 %v4828_v1, %v476_v33  ;;  %v5042_v19 = vld [vmem:[#allocation2 + $0xf9] sm:$0xff] }
  0x35   : > { %735 = vst.msk [vmem:[#allocation2 + $0x88] sm:$0x3] %vm553_vm1, %v708_v40  ;;  %v459_v48 = vmul.f32 %v4817_v0, %v420_v34  ;;  %v460_v49 = vmul.f32 %v4817_v0, %v421_v35  ;;  %1049 = vrot.lane.b32.xlu0 %v4995_v37, %s4746_s17  ;;  %v633_v54 = vsel %vm591_vm2, %v631_v41, %v632_v42  ;;  %v529_v55 = vmax.f32 %v497_v43, 0.0  ;;  %v3980_v32 = vld [vmem:[%s6122_s2 + $0x18] sm:$0xff]  ;;  %v3981_v33 = vld [vmem:[%s6122_s2 + $0x20] sm:$0xff] }
  0x36   : > { %2576 = vrot.lane.b32.xlu1 %v4993_v36, %s4746_s17  ;;  %760 = vst.msk [vmem:[#allocation2 + $0x150] sm:$0xff] %vm550_vm0, %v701_v46  ;;  %v607_v56 = vrot.slane %v528_v44, 7  ;;  %v717_v57 = vsel %vm591_vm2, %v632_v42, 0.0  ;;  %761 = vst.msk [vmem:[#allocation2 + $0x158] sm:$0xff] %vm550_vm0, %v633_v54  ;;  %v546_v60 = vmax.f32 %v514_v45, 0.0  ;;  %v547_v61 = vmax.f32 %v515_v47, 0.0 }
  0x37   : > { %762 = vst.msk [vmem:[#allocation2 + $0x160] sm:$0x3] %vm553_vm1, %v717_v57  ;;  %v498_v62 = vadd.f32 %v4828_v1, %v459_v48  ;;  %v499_v63 = vadd.f32 %v4828_v1, %v460_v49  ;;  %v608_v2 = vrot.slane %v529_v55, 7  ;;  %v477_v4 = vmul.f32 %v4817_v0, %v438_v50  ;;  %v5071_v43 = vld [vmem:[#allocation2 + $0xfa] sm:$0xff]  ;;  %v5095_v55 = vld [vmem:[#allocation2 + $0x109] sm:$0xff] }
  0x38   : > { %v693_v3 = vsel %vm591_vm2, 0.0, %v607_v56  ;;  %v478_v5 = vmul.f32 %v4817_v0, %v439_v51  ;;  %v634_v6 = vrot.slane %v546_v60, 7  ;;  %v635_v7 = vrot.slane %v547_v61, 7  ;;  %v5073_v44 = vld [vmem:[#allocation2 + $0x3a] sm:$0xff]  ;;  %v3982_v51 = vld [vmem:[%s6122_s2 + $0x28] sm:$0xff] }
  0x39   : > { %736 = vst.msk [vmem:[#allocation2 + $0x90] sm:$0xff] %vm550_vm0, %v693_v3  ;;  %v530_v8 = vmax.f32 %v498_v62, 0.0  ;;  %v531_v9 = vmax.f32 %v499_v63, 0.0  ;;  %1051 = vrot.lane.b32.xlu0 %v5020_v59, %s4746_s17  ;;  %v609_v13 = vsel %vm591_vm2, %v607_v56, %v608_v2  ;;  %v709_v14 = vsel %vm591_vm2, %v608_v2, 0.0  ;;  %v5097_v56 = vld [vmem:[#allocation2 + $0x49] sm:$0xff]  ;;  %v5111_v2 = vld [vmem:[#allocation2 + $0x51] sm:$0xff] }
  0x3a   : > { %1113 = vrot.lane.b32.xlu1 %v5018_v58, %s4747_s18  ;;  %v516_v15 = vadd.f32 %v4828_v1, %v477_v4  ;;  %v517_v16 = vadd.f32 %v4828_v1, %v478_v5  ;;  %737 = vst.msk [vmem:[#allocation2 + $0x98] sm:$0xff] %vm550_vm0, %v609_v13  ;;  %v636_v22 = vsel %vm591_vm2, %v634_v6, %v635_v7  ;;  %v702_v23 = vsel %vm591_vm2, 0.0, %v634_v6  ;;  %v5109_v63 = vld [vmem:[#allocation2 + $0x4a] sm:$0xff]  ;;  %v5125_v5 = vld [vmem:[#allocation2 + $0x112] sm:$0xff]  ;;  %v5149_v13 = vld [vmem:[#allocation2 + $0x122] sm:$0xff] }
  0x3b   : > { %738 = vst.msk [vmem:[#allocation2 + $0xa0] sm:$0x3] %vm553_vm1, %v709_v14  ;;  %v610_v24 = vrot.slane %v530_v8, 7  ;;  %v611_v25 = vrot.slane %v531_v9, 7  ;;  %v718_v26 = vsel %vm591_vm2, %v635_v7, 0.0  ;;  %v461_v29 = vmul.f32 %v4817_v0, %v422_v10  ;;  %v5117_v3 = vld [vmem:[#allocation2 + $0x10a] sm:$0xff] }
  0x3c   : > { %763 = vst.msk [vmem:[#allocation2 + $0x168] sm:$0xff] %vm550_vm0, %v702_v23  ;;  %764 = vst.msk [vmem:[#allocation2 + $0x170] sm:$0xff] %vm550_vm0, %v636_v22  ;;  %v548_v27 = vmax.f32 %v516_v15, 0.0  ;;  %v549_v28 = vmax.f32 %v517_v16, 0.0  ;;  %v462_v39 = vmul.f32 %v4817_v0, %v423_v17  ;;  %v4543_v45 = vpack.c.bf16 %v3981_v33, %v3980_v32  ;;  %v5119_v4 = vld [vmem:[#allocation2 + $0x111] sm:$0xff]  ;;  %v5133_v7 = vld [vmem:[#allocation2 + $0x121] sm:$0xff] }
  0x3d   : > { %v612_v34 = vsel %vm591_vm2, %v610_v24, %v611_v25  ;;  %v694_v35 = vsel %vm591_vm2, 0.0, %v610_v24  ;;  %v710_v38 = vsel %vm591_vm2, %v611_v25, 0.0  ;;  %765 = vst.msk [vmem:[#allocation2 + $0x178] sm:$0x3] %vm553_vm1, %v718_v26  ;;  %2578 = vrot.lane.b32.xlu0 %v5042_v19, %s4746_s17  ;;  %v500_v42 = vadd.f32 %v4828_v1, %v461_v29  ;;  %v5127_v6 = vld [vmem:[#allocation2 + $0x52] sm:$0xff]  ;;  %v5135_v8 = vld [vmem:[#allocation2 + $0x61] sm:$0xff] }
  0x3e   : > { %2640 = vrot.lane.b32.xlu1 %v5040_v18, %s4747_s18  ;;  %739 = vst.msk [vmem:[#allocation2 + $0xa8] sm:$0xff] %vm550_vm0, %v694_v35  ;;  %740 = vst.msk [vmem:[#allocation2 + $0xb0] sm:$0xff] %vm550_vm0, %v612_v34  ;;  %v637_v40 = vrot.slane %v548_v27, 7  ;;  %v638_v41 = vrot.slane %v549_v28, 7  ;;  %v501_v0 = vadd.f32 %v4828_v1, %v462_v39  ;;  %v4748_v50 = vmov 0.0   ;;  %4544 = vmatprep.subr.bf16.mxu0 %v4543_v45  ;;  %v5141_v9 = vld [vmem:[#allocation2 + $0x62] sm:$0xff] }
  0x3f   : > { %741 = vst.msk [vmem:[#allocation2 + $0xb8] sm:$0x3] %vm553_vm1, %v710_v38  ;;  %v532_v48 = vmax.f32 %v500_v42, 0.0  ;;  %554 = vst.msk [vmem:[#allocation2 + $0x10] sm:$0x3] %vm553_vm1, %v4748_v50  ;;  %4556 = vmatprep.subr.bf16.mxu1 %v4543_v45  ;;  %4546 = vmatpush3.bf16.msra.mxu0 %v4543_v45  ;;  %v5143_v10 = vld [vmem:[#allocation2 + $0x69] sm:$0xff] }
  0x40   : > { %v639_v46 = vsel %vm591_vm2, %v637_v40, %v638_v41  ;;  %v703_v47 = vsel %vm591_vm2, 0.0, %v637_v40  ;;  %v719_v49 = vsel %vm591_vm2, %v638_v41, 0.0  ;;  %551 = vst.msk [vmem:[#allocation2] sm:$0xff] %vm550_vm0, %v4748_v50  ;;  %552 = vst.msk [vmem:[#allocation2 + $0x8] sm:$0xff] %vm550_vm0, %v4748_v50  ;;  %v533_v1 = vmax.f32 %v501_v0, 0.0  ;;  %4558 = vmatpush3.bf16.msra.mxu1 %v4543_v45  ;;  %4315 = vmatprep.subr.mxu0 %v3982_v51  ;;  %v5151_v14 = vld [vmem:[#allocation2 + $0x129] sm:$0xff] }
  0x41   : > { %556 = vst.msk [vmem:[#allocation2 + $0x198] sm:$0xff] %vm550_vm0, %v4748_v50  ;;  %557 = vst.msk [vmem:[#allocation2 + $0x1a0] sm:$0xff] %vm550_vm0, %v4748_v50  ;;  %1115 = vrot.lane.b32.xlu0 %v5073_v44, %s4747_s18  ;;  %v613_v54 = vrot.slane %v532_v48, 7  ;;  %4431 = vmatprep.subr.mxu1 %v3982_v51  ;;  %v5157_v15 = vld [vmem:[#allocation2 + $0x12a] sm:$0xff]  ;;  %v5165_v17 = vld [vmem:[#allocation2 + $0x139] sm:$0xff] }
  0x42   : > { %558 = vst.msk [vmem:[#allocation2 + $0x1a8] sm:$0x3] %vm553_vm1, %v4748_v50  ;;  %768 = vst.msk [vmem:[#allocation2 + $0x190] sm:$0x3] %vm553_vm1, %v719_v49  ;;  %2642 = vrot.lane.b32.xlu1 %v5071_v43, %s4747_s18  ;;  %v614_v57 = vrot.slane %v533_v1, 7  ;;  %v5159_v16 = vld [vmem:[#allocation2 + $0x6a] sm:$0xff] }
  0x43   : > { %766 = vst.msk [vmem:[#allocation2 + $0x180] sm:$0xff] %vm550_vm0, %v703_v47  ;;  %767 = vst.msk [vmem:[#allocation2 + $0x188] sm:$0xff] %vm550_vm0, %v639_v46  ;;  %v695_v60 = vsel %vm591_vm2, 0.0, %v613_v54  ;;  %4316 = vmatpush3.msra.mxu0 %v3982_v51  ;;  %v5167_v22 = vld [vmem:[#allocation2 + $0x79] sm:$0xff]  ;;  %v5175_v24 = vld [vmem:[#allocation2 + $0x81] sm:$0xff] }
  0x44   : > { %v615_v61 = vsel %vm591_vm2, %v613_v54, %v614_v57  ;;  %742 = vst.msk [vmem:[#allocation2 + $0xc0] sm:$0xff] %vm550_vm0, %v695_v60  ;;  %v711_v62 = vsel %vm591_vm2, %v614_v57, 0.0  ;;  %4432 = vmatpush3.msra.mxu1 %v3982_v51  ;;  %v5173_v23 = vld [vmem:[#allocation2 + $0x7a] sm:$0xff]  ;;  %v5189_v27 = vld [vmem:[#allocation2 + $0x142] sm:$0xff]  ;;  %v5197_v29 = vld [vmem:[#allocation2 + $0x151] sm:$0xff] }
  0x45   : > { %1053 = vrot.lane.b32.xlu0 %v5097_v56, %s4746_s17  ;;  %743 = vst.msk [vmem:[#allocation2 + $0xc8] sm:$0xff] %vm550_vm0, %v615_v61  ;;  %v5181_v25 = vld [vmem:[#allocation2 + $0x13a] sm:$0xff]  ;;  %v5191_v28 = vld [vmem:[#allocation2 + $0x82] sm:$0xff]  ;;  %v5199_v32 = vld [vmem:[#allocation2 + $0x91] sm:$0xff] }
  0x46   : > { %2580 = vrot.lane.b32.xlu1 %v5095_v55, %s4746_s17  ;;  %744 = vst.msk [vmem:[#allocation2 + $0xd0] sm:$0x3] %vm553_vm1, %v711_v62  ;;  %v5183_v26 = vld [vmem:[#allocation2 + $0x141] sm:$0xff]  ;;  %v5205_v33 = vld [vmem:[#allocation2 + $0x92] sm:$0xff]  ;;  %v5229_v41 = vld [vmem:[#allocation2 + $0x169] sm:$0xff] }
  0x47   : > { %v5207_v34 = vld [vmem:[#allocation2 + $0x99] sm:$0xff]  ;;  %6145 = vst [vmem:[#allocation6_spill] sm:$0xff] %v5229_v41  ;;  %v5231_v42 = vld [vmem:[#allocation2 + $0xa9] sm:$0xff]  ;;  %v5239_v45 = vld [vmem:[#allocation2 + $0xb1] sm:$0xff] }
  0x48   : > { %v5213_v35 = vld [vmem:[#allocation2 + $0x152] sm:$0xff]  ;;  %v5221_v39 = vld [vmem:[#allocation2 + $0x15a] sm:$0xff]  ;;  %6146 = vst [vmem:[#allocation7_spill] sm:$0xff] %v5231_v42  ;;  %v5237_v0 = vld [vmem:[#allocation2 + $0xaa] sm:$0xff] }
  0x49   : > { %1055 = vrot.lane.b32.xlu0 %v5111_v2, %s4746_s17  ;;  %v5215_v38 = vld [vmem:[#allocation2 + $0x159] sm:$0xff]  ;;  %6143 = vst [vmem:[#allocation4_spill] sm:$0xff] %v5221_v39  ;;  %6147 = vst [vmem:[#allocation8_spill] sm:$0xff] %v5237_v0  ;;  %v5245_v46 = vld [vmem:[#allocation2 + $0x16a] sm:$0xff] }
  0x4a   : > { %1117 = vrot.lane.b32.xlu1 %v5109_v63, %s4747_s18  ;;  %6142 = vst [vmem:[#allocation3_spill] sm:$0xff] %v5215_v38  ;;  %v5223_v40 = vld [vmem:[#allocation2 + $0x9a] sm:$0xff]  ;;  %6148 = vst [vmem:[#allocation9_spill] sm:$0xff] %v5239_v45  ;;  %v5247_v47 = vld [vmem:[#allocation2 + $0x171] sm:$0xff] }
  0x4b   : > { %6144 = vst [vmem:[#allocation5_spill] sm:$0xff] %v5223_v40  ;;  %6149 = vst [vmem:[#allocation10_spill] sm:$0xff] %v5245_v46  ;;  %v5253_v48 = vld [vmem:[#allocation2 + $0x172] sm:$0xff]  ;;  %v2538_v50 = vld [vmem:[#allocation2 + $0x181] sm:$0xff] }
  0x4c   : > { %6150 = vst [vmem:[#allocation11_spill] sm:$0xff] %v5247_v47  ;;  %6151 = vst [vmem:[#allocation12_spill] sm:$0xff] %v5253_v48  ;;  %v5255_v49 = vld [vmem:[#allocation2 + $0xb2] sm:$0xff]  ;;  %v1011_v1 = vld [vmem:[#allocation2 + $0xc1] sm:$0xff] }
  0x4d   : > { %2582 = vrot.lane.b32.xlu0 %v5119_v4, %s4746_s17  ;;  %6152 = vst [vmem:[#allocation13_spill] sm:$0xff] %v5255_v49  ;;  %v5263_v51 = vld [vmem:[#allocation2 + $0xc2] sm:$0xff]  ;;  %v5267_v61 = vld [vmem:[#allocation2 + $0x18] sm:$0xff] }
  0x4e   : > { %2644 = vrot.lane.b32.xlu1 %v5117_v3, %s4747_s18  ;;  %v5265_v54 = vld [vmem:[#allocation2 + $0xc9] sm:$0xff]  ;;  %6153 = vst [vmem:[#allocation14_spill] sm:$0xff] %v5267_v61 }
  0x4f   : > { %v2554_v62 = vld [vmem:[#allocation2 + $0x182] sm:$0xff] }
  0x51   : > { %1119 = vrot.lane.b32.xlu0 %v5127_v6, %s4747_s18 }
  0x52   : > { %2646 = vrot.lane.b32.xlu1 %v5125_v5, %s4747_s18 }
  0x55   : > { %1057 = vrot.lane.b32.xlu0 %v5135_v8, %s4746_s17 }
  0x56   : > { %2584 = vrot.lane.b32.xlu1 %v5133_v7, %s4746_s17 }
  0x59   : > { %1059 = vrot.lane.b32.xlu0 %v5143_v10, %s4746_s17 }
  0x5a   : > { %1121 = vrot.lane.b32.xlu1 %v5141_v9, %s4747_s18 }
  0x5d   : > { %2586 = vrot.lane.b32.xlu0 %v5151_v14, %s4746_s17 }
  0x5e   : > { %2648 = vrot.lane.b32.xlu1 %v5149_v13, %s4747_s18 }
  0x61   : > { %1123 = vrot.lane.b32.xlu0 %v5159_v16, %s4747_s18 }
  0x62   : > { %2650 = vrot.lane.b32.xlu1 %v5157_v15, %s4747_s18 }
  0x65   : > { %1061 = vrot.lane.b32.xlu0 %v5167_v22, %s4746_s17 }
  0x66   : > { %2588 = vrot.lane.b32.xlu1 %v5165_v17, %s4746_s17 }
  0x69   : > { %1063 = vrot.lane.b32.xlu0 %v5175_v24, %s4746_s17 }
  0x6a   : > { %1125 = vrot.lane.b32.xlu1 %v5173_v23, %s4747_s18 }
  0x6d   : > { %2590 = vrot.lane.b32.xlu0 %v5183_v26, %s4746_s17 }
  0x6e   : > { %2652 = vrot.lane.b32.xlu1 %v5181_v25, %s4747_s18 }
  0x71   : > { %1127 = vrot.lane.b32.xlu0 %v5191_v28, %s4747_s18 }
  0x72   : > { %2654 = vrot.lane.b32.xlu1 %v5189_v27, %s4747_s18 }
  0x75   : > { %1065 = vrot.lane.b32.xlu0 %v5199_v32, %s4746_s17 }
  0x76   : > { %2592 = vrot.lane.b32.xlu1 %v5197_v29, %s4746_s17 }
  0x79   : > { %1067 = vrot.lane.b32.xlu0 %v5207_v34, %s4746_s17 }
  0x7a   : > { %1129 = vrot.lane.b32.xlu1 %v5205_v33, %s4747_s18 }
  0x7d   : > { %2594 = vrot.lane.b32.xlu0 %v5215_v38, %s4746_s17 }
  0x7e   : > { %2656 = vrot.lane.b32.xlu1 %v5213_v35, %s4747_s18 }
  0x81   : > { %1131 = vrot.lane.b32.xlu0 %v5223_v40, %s4747_s18  ;;  %v5289_v40 = vld [vmem:[#allocation2 + $0x20] sm:$0xff] }
  0x82   : > { %2658 = vrot.lane.b32.xlu1 %v5221_v39, %s4747_s18 }
  0x85   : > { %1069 = vrot.lane.b32.xlu0 %v5231_v42, %s4746_s17  ;;  %v979_v42 = vld [vmem:[%s6122_s2 + $0x8] sm:$0xff] }
  0x86   : > { %2596 = vrot.lane.b32.xlu1 %v5229_v41, %s4746_s17 }
  0x89   : > { %1071 = vrot.lane.b32.xlu0 %v5239_v45, %s4746_s17 }
  0x8a   : > { %1133 = vrot.lane.b32.xlu1 %v5237_v0, %s4747_s18  ;;  %v978_v0 = vld [vmem:[%s6122_s2] sm:$0xff] }
  0x8b   : > { %v4547_v41 = vpack.c.bf16 %v979_v42, %v978_v0  ;;  %v785_v42 = vld [vmem:[#allocation2 + $0x1] sm:$0xff] }
  0x8d   : > { %2598 = vrot.lane.b32.xlu0 %v5247_v47, %s4746_s17  ;;  %4548 = vmatprep.subr.bf16.mxu0 %v4547_v41 }
  0x8e   : > { %2660 = vrot.lane.b32.xlu1 %v5245_v46, %s4747_s18  ;;  %v5275_v46 = vld [vmem:[#allocation2 + $0xd8] sm:$0xff]  ;;  %4560 = vmatprep.subr.bf16.mxu1 %v4547_v41 }
  0x8f   : > { %6154 = vst [vmem:[#allocation15_spill] sm:$0xff] %v5275_v46 }
  0x91   : > { %1135 = vrot.lane.b32.xlu0 %v5255_v49, %s4747_s18  ;;  %v2539_v49 = vld [vmem:[#allocation2 + $0x189] sm:$0xff] }
  0x92   : > { %2662 = vrot.lane.b32.xlu1 %v5253_v48, %s4747_s18 }
  0x95   : > { %1073 = vrot.lane.b32.xlu0 %v1011_v1, %s4746_s17 }
  0x96   : > { %2600 = vrot.lane.b32.xlu1 %v2538_v50, %s4746_s17 }
  0x97   : > { %v1046_v60 = vpop.permute.xlu0 %1045 }
  0x98   : > { %v1048_v57 = vpop.permute.xlu1 %1047  ;;  %v1157_v50 = vsel %vm550_vm0, %v5267_v61, %v1046_v60  ;;  %v2555_v60 = vld [vmem:[#allocation2 + $0x18a] sm:$0xff] }
  0x99   : > { %1075 = vrot.lane.b32.xlu0 %v5265_v54, %s4746_s17  ;;  %v1028_v61 = vld [vmem:[#allocation2 + $0xca] sm:$0xff]  ;;  %v1158_v0 = vsel %vm550_vm0, %v5289_v40, %v1048_v57  ;;  %v801_v57 = vld [vmem:[#allocation2 + $0x2] sm:$0xff] }
  0x9a   : > { %1137 = vrot.lane.b32.xlu1 %v5263_v51, %s4747_s18 }
  0x9b   : > { %v2573_v47 = vpop.permute.xlu0 %2572 }
  0x9c   : > { %v1110_v48 = vpop.permute.xlu1 %1109 }
  0x9d   : > { %v1173_v45 = vsel %vm961_vm3, %v1157_v50, %v1110_v48  ;;  %2602 = vrot.lane.b32.xlu0 %v2539_v49, %s4746_s17  ;;  %v2684_v48 = vsel %vm550_vm0, %v5275_v46, %v2573_v47  ;;  %v5291_v49 = vld [vmem:[#allocation2 + $0xe0] sm:$0xff] }
  0x9e   : > { %2664 = vrot.lane.b32.xlu1 %v2554_v62, %s4747_s18  ;;  %4317 = vmatprep.mubr.msk.f32.mxu0 %vm1193_vm4, %v1173_v45 }
  0x9f   : > { %v2575_v62 = vpop.permute.xlu0 %2574 }
  0xa0   : > { %v2637_v50 = vpop.permute.xlu1 %2636  ;;  %v2685_v45 = vsel %vm550_vm0, %v5291_v49, %v2575_v62 }
  0xa1   : > { %v2700_v39 = vsel %vm961_vm3, %v2684_v48, %v2637_v50  ;;  %1139 = vrot.lane.b32.xlu0 %v1028_v61, %s4747_s18 }
  0xa2   : > { %2666 = vrot.lane.b32.xlu1 %v2555_v60, %s4747_s18  ;;  %4433 = vmatprep.mubr.msk.f32.mxu1 %vm1193_vm4, %v2700_v39  ;;  %v2506_v39 = vld [vmem:[%s6122_s2 + $0x10] sm:$0xff] }
  0xa3   : > { %v1112_v46 = vpop.permute.xlu0 %1111  ;;  %v786_v60 = vld [vmem:[#allocation2 + $0x9] sm:$0xff] }
  0xa4   : > { %v2639_v47 = vpop.permute.xlu1 %2638  ;;  %v1174_v48 = vsel %vm961_vm3, %v1158_v0, %v1112_v46 }
  0xa5   : > { %v2701_v38 = vsel %vm961_vm3, %v2685_v45, %v2639_v47  ;;  %833 = vrot.lane.b32.xlu0 %v785_v42, %s4746_s17  ;;  %4318 = vmatmul.mubr.msk.f32.vlgmr.msra.gmra.mrb[0].mxu0 %vm1193_vm4, %v1174_v48  ;;  %v5310_v45 = vld [vmem:[#allocation2 + $0x30] sm:$0xff] }
  0xa6   : > { %2360 = vrot.lane.b32.xlu1 %v1011_v1, %s4746_s17  ;;  %4434 = vmatmul.mubr.msk.f32.vlgmr.msra.gmra.mrb[0].mxu1 %vm1193_vm4, %v2701_v38  ;;  %v5316_v38 = vld [vmem:[#allocation2 + $0xf0] sm:$0xff] }
  0xa7   : > { %v1050_v62 = vpop.permute.xlu0 %1049  ;;  %4550 = vmatpush3.bf16.msra.mxu0 %v4547_v41  ;;  %4562 = vmatpush3.bf16.msra.mxu1 %v4547_v41  ;;  %v802_v41 = vld [vmem:[#allocation2 + $0xa] sm:$0xff] }
  0xa8   : > { %v2577_v50 = vpop.permute.xlu1 %2576  ;;  %4461 = vmatprep.subr.mxu1 %v2506_v39  ;;  %4345 = vmatprep.subr.mxu0 %v2506_v39  ;;  %v1159_v46 = vsel %vm550_vm0, %v5310_v45, %v1050_v62  ;;  %v5329_v62 = vld [vmem:[#allocation2 + $0xf8] sm:$0xff] }
  0xa9   : > { %835 = vrot.lane.b32.xlu0 %v786_v60, %s4746_s17  ;;  %v2686_v47 = vsel %vm550_vm0, %v5316_v38, %v2577_v50  ;;  %v5326_v60 = vld [vmem:[#allocation2 + $0x38] sm:$0xff] }
  0xaa   : > { %897 = vrot.lane.b32.xlu1 %v801_v57, %s4747_s18 }
  0xab   : > { %v1052_v42 = vpop.permute.xlu0 %1051  ;;  %4346 = vmatpush3.msra.mxu0 %v2506_v39  ;;  %4462 = vmatpush3.msra.mxu1 %v2506_v39 }
  0xac   : > { %v1114_v1 = vpop.permute.xlu1 %1113 }
  0xad   : > { %v1175_v0 = vsel %vm961_vm3, %v1159_v46, %v1114_v1  ;;  %2362 = vrot.lane.b32.xlu0 %v5265_v54, %s4746_s17 }
  0xae   : > { %2424 = vrot.lane.b32.xlu1 %v5263_v51, %s4747_s18  ;;  %4320 = vmatprep.mubr.msk.f32.mxu0 %vm1193_vm4, %v1175_v0  ;;  %v1160_v51 = vsel %vm550_vm0, %v5326_v60, %v1052_v42 }
  0xaf   : > { %v2579_v57 = vpop.permute.xlu0 %2578 }
  0xb0   : > { %v2641_v48 = vpop.permute.xlu1 %2640  ;;  %v2687_v54 = vsel %vm550_vm0, %v5329_v62, %v2579_v57  ;;  %v5354_v57 = vld [vmem:[#allocation2 + $0x108] sm:$0xff] }
  0xb1   : > { %v2702_v39 = vsel %vm961_vm3, %v2686_v47, %v2641_v48  ;;  %899 = vrot.lane.b32.xlu0 %v802_v41, %s4747_s18  ;;  %v5346_v41 = vld [vmem:[#allocation2 + $0x48] sm:$0xff] }
  0xb2   : > { %2426 = vrot.lane.b32.xlu1 %v1028_v61, %s4747_s18  ;;  %4436 = vmatprep.mubr.msk.f32.mxu1 %vm1193_vm4, %v2702_v39 }
  0xb3   : > { %v1116_v46 = vpop.permute.xlu0 %1115 }
  0xb4   : > { %v2643_v50 = vpop.permute.xlu1 %2642  ;;  %v1176_v0 = vsel %vm961_vm3, %v1160_v51, %v1116_v46  ;;  %v5364_v51 = vld [vmem:[#allocation2 + $0x50] sm:$0xff] }
  0xb5   : > { %v2703_v1 = vsel %vm961_vm3, %v2687_v54, %v2643_v50  ;;  %4321 = vmatmul.mubr.msk.f32.gmra.mrb[2].mxu0 %vm1193_vm4, %v1176_v0  ;;  %837 = vrot.lane.b32.xlu0 %v4904_v21, %s4746_s17  ;;  %v5367_v50 = vld [vmem:[#allocation2 + $0x110] sm:$0xff] }
  0xb6   : > { %2364 = vrot.lane.b32.xlu1 %v4915_v31, %s4746_s17  ;;  %4437 = vmatmul.mubr.msk.f32.gmra.mrb[2].mxu1 %vm1193_vm4, %v2703_v1 }
  0xb7   : > { %v1054_v42 = vpop.permute.xlu0 %1053 }
  0xb8   : > { %v2581_v61 = vpop.permute.xlu1 %2580  ;;  %v1161_v31 = vsel %vm550_vm0, %v5346_v41, %v1054_v42  ;;  %v5386_v42 = vld [vmem:[#allocation2 + $0x60] sm:$0xff] }
  0xb9   : > { %839 = vrot.lane.b32.xlu0 %v4902_v20, %s4746_s17  ;;  %v2688_v20 = vsel %vm550_vm0, %v5354_v57, %v2581_v61 }
  0xba   : > { %901 = vrot.lane.b32.xlu1 %v4913_v30, %s4747_s18 }
  0xbb   : > { %v1056_v48 = vpop.permute.xlu0 %1055 }
  0xbc   : > { %v1118_v47 = vpop.permute.xlu1 %1117 }
  0xbd   : > { %v1177_v39 = vsel %vm961_vm3, %v1161_v31, %v1118_v47  ;;  %2366 = vrot.lane.b32.xlu0 %v4945_v53, %s4746_s17 }
  0xbe   : > { %4323 = vmatprep.mubr.msk.f32.mxu0 %vm1193_vm4, %v1177_v39  ;;  %2428 = vrot.lane.b32.xlu1 %v4943_v52, %s4747_s18  ;;  %v1162_v52 = vsel %vm550_vm0, %v5364_v51, %v1056_v48  ;;  %v5394_v39 = vld [vmem:[#allocation2 + $0x120] sm:$0xff] }
  0xbf   : > { %v2583_v30 = vpop.permute.xlu0 %2582 }
  0xc0   : > { %v2645_v21 = vpop.permute.xlu1 %2644  ;;  %v2689_v53 = vsel %vm550_vm0, %v5367_v50, %v2583_v30  ;;  %v5407_v30 = vld [vmem:[#allocation2 + $0x128] sm:$0xff] }
  0xc1   : > { %v2704_v54 = vsel %vm961_vm3, %v2688_v20, %v2645_v21  ;;  %903 = vrot.lane.b32.xlu0 %v4968_v12, %s4747_s18  ;;  %v5404_v20 = vld [vmem:[#allocation2 + $0x68] sm:$0xff] }
  0xc2   : > { %4439 = vmatprep.mubr.msk.f32.mxu1 %vm1193_vm4, %v2704_v54  ;;  %2430 = vrot.lane.b32.xlu1 %v4966_v11, %s4747_s18 }
  0xc3   : > { %v1120_v1 = vpop.permute.xlu0 %1119 }
  0xc4   : > { %v2647_v46 = vpop.permute.xlu1 %2646  ;;  %v1178_v61 = vsel %vm961_vm3, %v1162_v52, %v1120_v1  ;;  %v5426_v1 = vld [vmem:[#allocation2 + $0x78] sm:$0xff] }
  0xc5   : > { %v2705_v0 = vsel %vm961_vm3, %v2689_v53, %v2647_v46  ;;  %4324 = vmatmul.mubr.msk.f32.gmra.mrb[4].mxu0 %vm1193_vm4, %v1178_v61  ;;  %841 = vrot.lane.b32.xlu0 %v4995_v37, %s4746_s17 }
  0xc6   : > { %4440 = vmatmul.mubr.msk.f32.gmra.mrb[4].mxu1 %vm1193_vm4, %v2705_v0  ;;  %2368 = vrot.lane.b32.xlu1 %v4993_v36, %s4746_s17 }
  0xc7   : > { %v1058_v12 = vpop.permute.xlu0 %1057 }
  0xc8   : > { %v2585_v11 = vpop.permute.xlu1 %2584  ;;  %v1163_v31 = vsel %vm550_vm0, %v5386_v42, %v1058_v12  ;;  %v5434_v12 = vld [vmem:[#allocation2 + $0x138] sm:$0xff] }
  0xc9   : > { %843 = vrot.lane.b32.xlu0 %v5020_v59, %s4746_s17  ;;  %v2690_v37 = vsel %vm550_vm0, %v5394_v39, %v2585_v11 }
  0xca   : > { %905 = vrot.lane.b32.xlu1 %v5018_v58, %s4747_s18 }
  0xcb   : > { %v1060_v48 = vpop.permute.xlu0 %1059 }
  0xcc   : > { %v1122_v47 = vpop.permute.xlu1 %1121 }
  0xcd   : > { %v1179_v36 = vsel %vm961_vm3, %v1163_v31, %v1122_v47  ;;  %2370 = vrot.lane.b32.xlu0 %v5042_v19, %s4746_s17  ;;  %v5444_v31 = vld [vmem:[#allocation2 + $0x80] sm:$0xff] }
  0xce   : > { %4326 = vmatprep.mubr.msk.f32.mxu0 %vm1193_vm4, %v1179_v36  ;;  %2432 = vrot.lane.b32.xlu1 %v5040_v18, %s4747_s18  ;;  %v1164_v18 = vsel %vm550_vm0, %v5404_v20, %v1060_v48  ;;  %v5447_v48 = vld [vmem:[#allocation2 + $0x140] sm:$0xff] }
  0xcf   : > { %v2587_v59 = vpop.permute.xlu0 %2586 }
  0xd0   : > { %v2649_v58 = vpop.permute.xlu1 %2648  ;;  %v2691_v19 = vsel %vm550_vm0, %v5407_v30, %v2587_v59 }
  0xd1   : > { %v2706_v21 = vsel %vm961_vm3, %v2690_v37, %v2649_v58  ;;  %907 = vrot.lane.b32.xlu0 %v5073_v44, %s4747_s18 }
  0xd2   : > { %4442 = vmatprep.mubr.msk.f32.mxu1 %vm1193_vm4, %v2706_v21  ;;  %2434 = vrot.lane.b32.xlu1 %v5071_v43, %s4747_s18  ;;  %v5466_v21 = vld [vmem:[#allocation2 + $0x90] sm:$0xff] }
  0xd3   : > { %v1124_v52 = vpop.permute.xlu0 %1123 }
  0xd4   : > { %v2651_v54 = vpop.permute.xlu1 %2650  ;;  %v1180_v46 = vsel %vm961_vm3, %v1164_v18, %v1124_v52  ;;  %v5474_v52 = vld [vmem:[#allocation2 + $0x150] sm:$0xff] }
  0xd5   : > { %v2707_v53 = vsel %vm961_vm3, %v2691_v19, %v2651_v54  ;;  %4327 = vmatmul.mubr.msk.f32.gmra.mrb[6].mxu0 %vm1193_vm4, %v1180_v46  ;;  %845 = vrot.lane.b32.xlu0 %v5097_v56, %s4746_s17 }
  0xd6   : > { %4443 = vmatmul.mubr.msk.f32.gmra.mrb[6].mxu1 %vm1193_vm4, %v2707_v53  ;;  %2372 = vrot.lane.b32.xlu1 %v5095_v55, %s4746_s17  ;;  %v5484_v53 = vld [vmem:[#allocation2 + $0x98] sm:$0xff] }
  0xd7   : > { %v1062_v44 = vpop.permute.xlu0 %1061 }
  0xd8   : > { %v2589_v43 = vpop.permute.xlu1 %2588  ;;  %v1165_v0 = vsel %vm550_vm0, %v5426_v1, %v1062_v44 }
  0xd9   : > { %847 = vrot.lane.b32.xlu0 %v5111_v2, %s4746_s17  ;;  %v2692_v56 = vsel %vm550_vm0, %v5434_v12, %v2589_v43  ;;  %v5487_v43 = vld [vmem:[#allocation2 + $0x158] sm:$0xff] }
  0xda   : > { %909 = vrot.lane.b32.xlu1 %v5109_v63, %s4747_s18 }
  0xdb   : > { %v1064_v11 = vpop.permute.xlu0 %1063 }
  0xdc   : > { %v1126_v61 = vpop.permute.xlu1 %1125 }
  0xdd   : > { %v1181_v55 = vsel %vm961_vm3, %v1165_v0, %v1126_v61  ;;  %2374 = vrot.lane.b32.xlu0 %v5119_v4, %s4746_s17 }
  0xde   : > { %4329 = vmatprep.mubr.msk.f32.mxu0 %vm1193_vm4, %v1181_v55  ;;  %2436 = vrot.lane.b32.xlu1 %v5117_v3, %s4747_s18  ;;  %v1166_v3 = vsel %vm550_vm0, %v5444_v31, %v1064_v11  ;;  %v5506_v55 = vld [vmem:[#allocation2 + $0xa8] sm:$0xff] }
  0xdf   : > { %v2591_v2 = vpop.permute.xlu0 %2590 }
  0xe0   : > { %v2653_v63 = vpop.permute.xlu1 %2652  ;;  %v2693_v4 = vsel %vm550_vm0, %v5447_v48, %v2591_v2 }
  0xe1   : > { %v2708_v47 = vsel %vm961_vm3, %v2692_v56, %v2653_v63  ;;  %911 = vrot.lane.b32.xlu0 %v5127_v6, %s4747_s18 }
  0xe2   : > { %4445 = vmatprep.mubr.msk.f32.mxu1 %vm1193_vm4, %v2708_v47  ;;  %2438 = vrot.lane.b32.xlu1 %v5125_v5, %s4747_s18  ;;  %v5514_v47 = vld [vmem:[#allocation2 + $0x168] sm:$0xff] }
  0xe3   : > { %v1128_v37 = vpop.permute.xlu0 %1127 }
  0xe4   : > { %v2655_v36 = vpop.permute.xlu1 %2654  ;;  %v1182_v59 = vsel %vm961_vm3, %v1166_v3, %v1128_v37  ;;  %v5524_v3 = vld [vmem:[#allocation2 + $0xb0] sm:$0xff] }
  0xe5   : > { %v2709_v58 = vsel %vm961_vm3, %v2693_v4, %v2655_v36  ;;  %4330 = vmatmul.mubr.msk.f32.gmra.mrb[8].mxu0 %vm1193_vm4, %v1182_v59  ;;  %849 = vrot.lane.b32.xlu0 %v5135_v8, %s4746_s17  ;;  %v5527_v36 = vld [vmem:[#allocation2 + $0x170] sm:$0xff] }
  0xe6   : > { %4446 = vmatmul.mubr.msk.f32.gmra.mrb[8].mxu1 %vm1193_vm4, %v2709_v58  ;;  %2376 = vrot.lane.b32.xlu1 %v5133_v7, %s4746_s17 }
  0xe7   : > { %v1066_v6 = vpop.permute.xlu0 %1065 }
  0xe8   : > { %v2593_v5 = vpop.permute.xlu1 %2592  ;;  %v1167_v18 = vsel %vm550_vm0, %v5466_v21, %v1066_v6  ;;  %v995_v6 = vld [vmem:[#allocation2 + $0xc0] sm:$0xff] }
  0xe9   : > { %851 = vrot.lane.b32.xlu0 %v5143_v10, %s4746_s17  ;;  %v2694_v8 = vsel %vm550_vm0, %v5474_v52, %v2593_v5 }
  0xea   : > { %913 = vrot.lane.b32.xlu1 %v5141_v9, %s4747_s18 }
  0xeb   : > { %v1068_v54 = vpop.permute.xlu0 %1067 }
  0xec   : > { %v1130_v19 = vpop.permute.xlu1 %1129 }
  0xed   : > { %v1183_v7 = vsel %vm961_vm3, %v1167_v18, %v1130_v19  ;;  %2378 = vrot.lane.b32.xlu0 %v5151_v14, %s4746_s17 }
  0xee   : > { %4332 = vmatprep.mubr.msk.f32.mxu0 %vm1193_vm4, %v1183_v7  ;;  %2440 = vrot.lane.b32.xlu1 %v5149_v13, %s4747_s18  ;;  %v1168_v13 = vsel %vm550_vm0, %v5484_v53, %v1068_v54  ;;  %v2522_v7 = vld [vmem:[#allocation2 + $0x180] sm:$0xff] }
  0xef   : > { %v2595_v10 = vpop.permute.xlu0 %2594 }
  0xf0   : > { %v2657_v9 = vpop.permute.xlu1 %2656  ;;  %v2695_v14 = vsel %vm550_vm0, %v5487_v43, %v2595_v10 }
  0xf1   : > { %v2710_v46 = vsel %vm961_vm3, %v2694_v8, %v2657_v9  ;;  %915 = vrot.lane.b32.xlu0 %v5159_v16, %s4747_s18 }
  0xf2   : > { %4448 = vmatprep.mubr.msk.f32.mxu1 %vm1193_vm4, %v2710_v46  ;;  %2442 = vrot.lane.b32.xlu1 %v5157_v15, %s4747_s18  ;;  %v2523_v46 = vld [vmem:[#allocation2 + $0x188] sm:$0xff] }
  0xf3   : > { %v1132_v0 = vpop.permute.xlu0 %1131 }
  0xf4   : > { %v2659_v44 = vpop.permute.xlu1 %2658  ;;  %v1184_v11 = vsel %vm961_vm3, %v1168_v13, %v1132_v0  ;;  %v6156_v13 = vld [vmem:[#allocation4_spill] sm:$0xff] }
  0xf5   : > { %v2711_v61 = vsel %vm961_vm3, %v2695_v14, %v2659_v44  ;;  %4333 = vmatmul.mubr.msk.f32.gmra.mrb[10].mxu0 %vm1193_vm4, %v1184_v11  ;;  %853 = vrot.lane.b32.xlu0 %v5167_v22, %s4746_s17  ;;  %v6157_v14 = vld [vmem:[#allocation5_spill] sm:$0xff] }
  0xf6   : > { %4449 = vmatmul.mubr.msk.f32.gmra.mrb[10].mxu1 %vm1193_vm4, %v2711_v61  ;;  %2380 = vrot.lane.b32.xlu1 %v5165_v17, %s4746_s17 }
  0xf7   : > { %v1070_v16 = vpop.permute.xlu0 %1069 }
  0xf8   : > { %v2597_v15 = vpop.permute.xlu1 %2596  ;;  %v1169_v56 = vsel %vm550_vm0, %v5506_v55, %v1070_v16  ;;  %v6158_v16 = vld [vmem:[#allocation6_spill] sm:$0xff] }
  0xf9   : > { %855 = vrot.lane.b32.xlu0 %v5175_v24, %s4746_s17  ;;  %v2696_v22 = vsel %vm550_vm0, %v5514_v47, %v2597_v15 }
  0xfa   : > { %917 = vrot.lane.b32.xlu1 %v5173_v23, %s4747_s18 }
  0xfb   : > { %v1072_v2 = vpop.permute.xlu0 %1071 }
  0xfc   : > { %v1134_v63 = vpop.permute.xlu1 %1133 }
  0xfd   : > { %v1185_v17 = vsel %vm961_vm3, %v1169_v56, %v1134_v63  ;;  %2382 = vrot.lane.b32.xlu0 %v5183_v26, %s4746_s17  ;;  %v6159_v56 = vld [vmem:[#allocation7_spill] sm:$0xff] }
  0xfe   : > { %4335 = vmatprep.mubr.msk.f32.mxu0 %vm1193_vm4, %v1185_v17  ;;  %2444 = vrot.lane.b32.xlu1 %v5181_v25, %s4747_s18  ;;  %v1170_v25 = vsel %vm550_vm0, %v5524_v3, %v1072_v2  ;;  %v769_v17 = vld [vmem:[#allocation2] sm:$0xff] }
  0xff   : > { %v2599_v24 = vpop.permute.xlu0 %2598 }
 0x100   : > { %v2661_v23 = vpop.permute.xlu1 %2660  ;;  %v2697_v26 = vsel %vm550_vm0, %v5527_v36, %v2599_v24 }
 0x101   : > { %v2712_v4 = vsel %vm961_vm3, %v2696_v22, %v2661_v23  ;;  %919 = vrot.lane.b32.xlu0 %v5191_v28, %s4747_s18  ;;  %v6160_v22 = vld [vmem:[#allocation8_spill] sm:$0xff]  ;;  %v6161_v23 = vld [vmem:[#allocation9_spill] sm:$0xff] }
 0x102   : > { %4451 = vmatprep.mubr.msk.f32.mxu1 %vm1193_vm4, %v2712_v4  ;;  %2446 = vrot.lane.b32.xlu1 %v5189_v27, %s4747_s18 }
 0x103   : > { %v1136_v58 = vpop.permute.xlu0 %1135 }
 0x104   : > { %v2663_v37 = vpop.permute.xlu1 %2662  ;;  %v1186_v5 = vsel %vm961_vm3, %v1170_v25, %v1136_v58  ;;  %v6163_v58 = vld [vmem:[#allocation11_spill] sm:$0xff] }
 0x105   : > { %v2713_v59 = vsel %vm961_vm3, %v2697_v26, %v2663_v37  ;;  %4336 = vmatmul.mubr.msk.f32.gmra.mrb[12].mxu0 %vm1193_vm4, %v1186_v5  ;;  %857 = vrot.lane.b32.xlu0 %v5199_v32, %s4746_s17  ;;  %v6162_v37 = vld [vmem:[#allocation10_spill] sm:$0xff]  ;;  %v4016_v5 = vld [vmem:[%s6122_s2 + $0x38] sm:$0xff] }
 0x106   : > { %4452 = vmatmul.mubr.msk.f32.gmra.mrb[12].mxu1 %vm1193_vm4, %v2713_v59  ;;  %2384 = vrot.lane.b32.xlu1 %v5197_v29, %s4746_s17  ;;  %v6155_v29 = vld [vmem:[#allocation3_spill] sm:$0xff] }
 0x107   : > { %v1074_v28 = vpop.permute.xlu0 %1073  ;;  %v4015_v59 = vld [vmem:[%s6122_s2 + $0x30] sm:$0xff] }
 0x108   : > { %v2601_v27 = vpop.permute.xlu1 %2600  ;;  %v1171_v18 = vsel %vm550_vm0, %v995_v6, %v1074_v28 }
 0x109   : > { %859 = vrot.lane.b32.xlu0 %v5207_v34, %s4746_s17  ;;  %v2698_v32 = vsel %vm550_vm0, %v2522_v7, %v2601_v27  ;;  %v996_v34 = vld [vmem:[#allocation2 + $0xc8] sm:$0xff] }
 0x10a   : > { %921 = vrot.lane.b32.xlu1 %v5205_v33, %s4747_s18 }
 0x10b   : > { %v1076_v54 = vpop.permute.xlu0 %1075 }
 0x10c   : > { %v1138_v19 = vpop.permute.xlu1 %1137 }
 0x10d   : > { %v1187_v8 = vsel %vm961_vm3, %v1171_v18, %v1138_v19  ;;  %2386 = vrot.lane.b32.xlu0 %v6155_v29, %s4746_s17  ;;  %v4551_v19 = vpack.c.bf16 %v4016_v5, %v4015_v59  ;;  %v6165_v29 = vld [vmem:[#allocation13_spill] sm:$0xff]  ;;  %v3124_v5 = vld [vmem:[#allocation2 + $0x109] sm:$0xff] }
 0x10e   : > { %4338 = vmatprep.mubr.msk.f32.mxu0 %vm1193_vm4, %v1187_v8  ;;  %2448 = vrot.lane.b32.xlu1 %v5213_v35, %s4747_s18  ;;  %v1172_v35 = vsel %vm550_vm0, %v996_v34, %v1076_v54  ;;  %v770_v54 = vld [vmem:[#allocation2 + $0x8] sm:$0xff]  ;;  %v6164_v8 = vld [vmem:[#allocation12_spill] sm:$0xff] }
 0x10f   : > { %v2603_v9 = vpop.permute.xlu0 %2602  ;;  %4552 = vmatprep.subr.bf16.mxu0 %v4551_v19  ;;  %4564 = vmatprep.subr.bf16.mxu1 %v4551_v19 }
 0x110   : > { %v2665_v33 = vpop.permute.xlu1 %2664  ;;  %v2699_v44 = vsel %vm550_vm0, %v2523_v46, %v2603_v9  ;;  %v1597_v46 = vld [vmem:[#allocation2 + $0x31] sm:$0xff] }
 0x111   : > { %v2714_v10 = vsel %vm961_vm3, %v2698_v32, %v2665_v33  ;;  %923 = vrot.lane.b32.xlu0 %v6157_v14, %s4747_s18 }
 0x112   : > { %4454 = vmatprep.mubr.msk.f32.mxu1 %vm1193_vm4, %v2714_v10  ;;  %2450 = vrot.lane.b32.xlu1 %v6156_v13, %s4747_s18  ;;  %v3122_v10 = vld [vmem:[#allocation2 + $0xf1] sm:$0xff] }
 0x113   : > { %v1140_v61 = vpop.permute.xlu0 %1139 }
 0x114   : > { %v2667_v0 = vpop.permute.xlu1 %2666  ;;  %v1188_v15 = vsel %vm961_vm3, %v1172_v35, %v1140_v61  ;;  %v4017_v35 = vld [vmem:[%s6122_s2 + $0x40] sm:$0xff] }
 0x115   : > { %v2715_v11 = vsel %vm961_vm3, %v2699_v44, %v2667_v0  ;;  %4339 = vmatmul.mubr.msk.f32.gmra.mrb[14].mxu0 %vm1193_vm4, %v1188_v15  ;;  %861 = vrot.lane.b32.xlu0 %v6159_v56, %s4746_s17  ;;  %v1613_v44 = vld [vmem:[#allocation2 + $0x32] sm:$0xff] }
 0x116   : > { %4455 = vmatmul.mubr.msk.f32.gmra.mrb[14].mxu1 %vm1193_vm4, %v2715_v11  ;;  %2388 = vrot.lane.b32.xlu1 %v6158_v16, %s4746_s17  ;;  %v1598_v0 = vld [vmem:[#allocation2 + $0x39] sm:$0xff]  ;;  %v6166_v11 = vld [vmem:[#allocation14_spill] sm:$0xff] }
 0x117   : > { %v834_v2 = vpop.permute.xlu0 %833  ;;  %v3138_v56 = vld [vmem:[#allocation2 + $0xf2] sm:$0xff] }
 0x118   : > { %v2361_v63 = vpop.permute.xlu1 %2360  ;;  %v945_v24 = vsel %vm550_vm0, %v769_v17, %v834_v2 }
 0x119   : > { %863 = vrot.lane.b32.xlu0 %v6161_v23, %s4746_s17  ;;  %v2472_v27 = vsel %vm550_vm0, %v995_v6, %v2361_v63  ;;  %v3123_v63 = vld [vmem:[#allocation2 + $0xf9] sm:$0xff] }
 0x11a   : > { %925 = vrot.lane.b32.xlu1 %v6160_v22, %s4747_s18  ;;  %v6167_v22 = vld [vmem:[#allocation15_spill] sm:$0xff] }
 0x11b   : > { %v836_v25 = vpop.permute.xlu0 %835 }
 0x11c   : > { %v898_v4 = vpop.permute.xlu1 %897  ;;  %v946_v32 = vsel %vm550_vm0, %v770_v54, %v836_v25  ;;  %v1614_v25 = vld [vmem:[#allocation2 + $0x3a] sm:$0xff] }
 0x11d   : > { %v962_v26 = vsel %vm961_vm3, %v945_v24, %v898_v4  ;;  %2390 = vrot.lane.b32.xlu0 %v6163_v58, %s4746_s17  ;;  %v3139_v4 = vld [vmem:[#allocation2 + $0xfa] sm:$0xff] }
 0x11e   : > { %4347 = vmatprep.mubr.msk.f32.mxu0 %vm1193_vm4, %v962_v26  ;;  %2452 = vrot.lane.b32.xlu1 %v6162_v37, %s4747_s18 }
 0x11f   : > { %v2363_v18 = vpop.permute.xlu0 %2362 }
 0x120   : > { %v2425_v28 = vpop.permute.xlu1 %2424  ;;  %v2473_v33 = vsel %vm550_vm0, %v996_v34, %v2363_v18 }
 0x121   : > { %v2488_v7 = vsel %vm961_vm3, %v2472_v27, %v2425_v28  ;;  %927 = vrot.lane.b32.xlu0 %v6165_v29, %s4747_s18  ;;  %v1599_v27 = vld [vmem:[#allocation2 + $0x49] sm:$0xff] }
 0x122   : > { %4463 = vmatprep.mubr.msk.f32.mxu1 %vm1193_vm4, %v2488_v7  ;;  %2454 = vrot.lane.b32.xlu1 %v6164_v8, %s4747_s18  ;;  %v1600_v7 = vld [vmem:[#allocation2 + $0x51] sm:$0xff] }
 0x123   : > { %v900_v9 = vpop.permute.xlu0 %899 }
 0x124   : > { %v2427_v6 = vpop.permute.xlu1 %2426  ;;  %v963_v14 = vsel %vm961_vm3, %v946_v32, %v900_v9  ;;  %v3125_v32 = vld [vmem:[#allocation2 + $0x111] sm:$0xff] }
 0x125   : > { %v2489_v13 = vsel %vm961_vm3, %v2473_v33, %v2427_v6  ;;  %4348 = vmatmul.mubr.msk.f32.vlgmr.msra.gmra.mrb[0].mxu0 %vm1193_vm4, %v963_v14  ;;  %1645 = vrot.lane.b32.xlu0 %v1597_v46, %s4746_s17  ;;  %v3141_v46 = vld [vmem:[#allocation2 + $0x112] sm:$0xff] }
 0x126   : > { %4464 = vmatmul.mubr.msk.f32.vlgmr.msra.gmra.mrb[0].mxu1 %vm1193_vm4, %v2489_v13  ;;  %3170 = vrot.lane.b32.xlu1 %v3122_v10, %s4746_s17  ;;  %v1616_v13 = vld [vmem:[#allocation2 + $0x52] sm:$0xff] }
 0x127   : > { %4554 = vmatpush3.bf16.msra.mxu0 %v4551_v19  ;;  %4566 = vmatpush3.bf16.msra.mxu1 %v4551_v19  ;;  %v838_v61 = vpop.permute.xlu0 %837 }
 0x128   : > { %v2365_v34 = vpop.permute.xlu1 %2364  ;;  %4375 = vmatprep.subr.mxu0 %v4017_v35  ;;  %4491 = vmatprep.subr.mxu1 %v4017_v35  ;;  %v947_v15 = vsel %vm550_vm0, %v6166_v11, %v838_v61 }
 0x129   : > { %1647 = vrot.lane.b32.xlu0 %v1598_v0, %s4746_s17  ;;  %v2474_v23 = vsel %vm550_vm0, %v6167_v22, %v2365_v34  ;;  %v1601_v0 = vld [vmem:[#allocation2 + $0x61] sm:$0xff]  ;;  %v3127_v22 = vld [vmem:[#allocation2 + $0x129] sm:$0xff] }
 0x12a   : > { %1709 = vrot.lane.b32.xlu1 %v1613_v44, %s4747_s18 }
 0x12b   : > { %4376 = vmatpush3.msra.mxu0 %v4017_v35  ;;  %4492 = vmatpush3.msra.mxu1 %v4017_v35  ;;  %v840_v17 = vpop.permute.xlu0 %839 }
 0x12c   : > { %v902_v16 = vpop.permute.xlu1 %901  ;;  %v948_v28 = vsel %vm550_vm0, %v5289_v40, %v840_v17  ;;  %v3140_v40 = vld [vmem:[#allocation2 + $0x10a] sm:$0xff] }
 0x12d   : > { %v964_v2 = vsel %vm961_vm3, %v947_v15, %v902_v16  ;;  %3172 = vrot.lane.b32.xlu0 %v3123_v63, %s4746_s17  ;;  %v1617_v63 = vld [vmem:[#allocation2 + $0x62] sm:$0xff] }
 0x12e   : > { %4350 = vmatprep.mubr.msk.f32.mxu0 %vm1193_vm4, %v964_v2  ;;  %3234 = vrot.lane.b32.xlu1 %v3138_v56, %s4747_s18  ;;  %v1602_v2 = vld [vmem:[#allocation2 + $0x69] sm:$0xff] }
 0x12f   : > { %v2367_v37 = vpop.permute.xlu0 %2366 }
 0x130   : > { %v2429_v24 = vpop.permute.xlu1 %2428  ;;  %v2475_v58 = vsel %vm550_vm0, %v5291_v49, %v2367_v37  ;;  %v1615_v49 = vld [vmem:[#allocation2 + $0x4a] sm:$0xff] }
 0x131   : > { %v2490_v26 = vsel %vm961_vm3, %v2474_v23, %v2429_v24  ;;  %1711 = vrot.lane.b32.xlu0 %v1614_v25, %s4747_s18  ;;  %v1618_v37 = vld [vmem:[#allocation2 + $0x6a] sm:$0xff] }
 0x132   : > { %4466 = vmatprep.mubr.msk.f32.mxu1 %vm1193_vm4, %v2490_v26  ;;  %3236 = vrot.lane.b32.xlu1 %v3139_v4, %s4747_s18  ;;  %v3143_v26 = vld [vmem:[#allocation2 + $0x12a] sm:$0xff] }
 0x133   : > { %v904_v19 = vpop.permute.xlu0 %903 }
 0x134   : > { %v2431_v59 = vpop.permute.xlu1 %2430  ;;  %v965_v54 = vsel %vm961_vm3, %v948_v28, %v904_v19  ;;  %v1603_v28 = vld [vmem:[#allocation2 + $0x79] sm:$0xff] }
 0x135   : > { %v2491_v18 = vsel %vm961_vm3, %v2475_v58, %v2431_v59  ;;  %1649 = vrot.lane.b32.xlu0 %v1599_v27, %s4746_s17  ;;  %4351 = vmatmul.mubr.msk.f32.gmra.mrb[2].mxu0 %vm1193_vm4, %v965_v54 }
 0x136   : > { %4467 = vmatmul.mubr.msk.f32.gmra.mrb[2].mxu1 %vm1193_vm4, %v2491_v18  ;;  %3174 = vrot.lane.b32.xlu1 %v3124_v5, %s4746_s17 }
 0x137   : > { %v842_v29 = vpop.permute.xlu0 %841 }
 0x138   : > { %v2369_v8 = vpop.permute.xlu1 %2368  ;;  %v949_v33 = vsel %vm550_vm0, %v5310_v45, %v842_v29  ;;  %v3126_v45 = vld [vmem:[#allocation2 + $0x121] sm:$0xff] }
 0x139   : > { %1651 = vrot.lane.b32.xlu0 %v1600_v7, %s4746_s17  ;;  %v2476_v14 = vsel %vm550_vm0, %v5316_v38, %v2369_v8  ;;  %v1619_v8 = vld [vmem:[#allocation2 + $0x7a] sm:$0xff] }
 0x13a   : > { %1713 = vrot.lane.b32.xlu1 %v1615_v49, %s4747_s18  ;;  %v1604_v29 = vld [vmem:[#allocation2 + $0x81] sm:$0xff] }
 0x13b   : > { %v844_v9 = vpop.permute.xlu0 %843 }
 0x13c   : > { %v906_v6 = vpop.permute.xlu1 %905  ;;  %v950_v61 = vsel %vm550_vm0, %v5326_v60, %v844_v9 }
 0x13d   : > { %v966_v10 = vsel %vm961_vm3, %v949_v33, %v906_v6  ;;  %3176 = vrot.lane.b32.xlu0 %v3125_v32, %s4746_s17  ;;  %v3129_v32 = vld [vmem:[#allocation2 + $0x141] sm:$0xff] }
 0x13e   : > { %3238 = vrot.lane.b32.xlu1 %v3140_v40, %s4747_s18  ;;  %4353 = vmatprep.mubr.msk.f32.mxu0 %vm1193_vm4, %v966_v10 }
 0x13f   : > { %v2371_v34 = vpop.permute.xlu0 %2370 }
 0x140   : > { %v2433_v35 = vpop.permute.xlu1 %2432  ;;  %v2477_v11 = vsel %vm550_vm0, %v5329_v62, %v2371_v34  ;;  %v3142_v62 = vld [vmem:[#allocation2 + $0x122] sm:$0xff] }
 0x141   : > { %v2492_v44 = vsel %vm961_vm3, %v2476_v14, %v2433_v35  ;;  %1715 = vrot.lane.b32.xlu0 %v1616_v13, %s4747_s18  ;;  %v1620_v13 = vld [vmem:[#allocation2 + $0x82] sm:$0xff] }
 0x142   : > { %3240 = vrot.lane.b32.xlu1 %v3141_v46, %s4747_s18  ;;  %4469 = vmatprep.mubr.msk.f32.mxu1 %vm1193_vm4, %v2492_v44  ;;  %v3145_v46 = vld [vmem:[#allocation2 + $0x142] sm:$0xff] }
 0x143   : > { %v908_v38 = vpop.permute.xlu0 %907 }
 0x144   : > { %v2435_v15 = vpop.permute.xlu1 %2434  ;;  %v967_v56 = vsel %vm961_vm3, %v950_v61, %v908_v38 }
 0x145   : > { %v2493_v16 = vsel %vm961_vm3, %v2477_v11, %v2435_v15  ;;  %1653 = vrot.lane.b32.xlu0 %v1601_v0, %s4746_s17  ;;  %4354 = vmatmul.mubr.msk.f32.gmra.mrb[4].mxu0 %vm1193_vm4, %v967_v56  ;;  %v1606_v56 = vld [vmem:[#allocation2 + $0x99] sm:$0xff] }
 0x146   : > { %3178 = vrot.lane.b32.xlu1 %v3126_v45, %s4746_s17  ;;  %4470 = vmatmul.mubr.msk.f32.gmra.mrb[4].mxu1 %vm1193_vm4, %v2493_v16  ;;  %v1605_v45 = vld [vmem:[#allocation2 + $0x91] sm:$0xff] }
 0x147   : > { %v846_v17 = vpop.permute.xlu0 %845  ;;  %v1621_v16 = vld [vmem:[#allocation2 + $0x92] sm:$0xff] }
 0x148   : > { %v2373_v60 = vpop.permute.xlu1 %2372  ;;  %v951_v23 = vsel %vm550_vm0, %v5346_v41, %v846_v17  ;;  %v3128_v41 = vld [vmem:[#allocation2 + $0x139] sm:$0xff] }
 0x149   : > { %1655 = vrot.lane.b32.xlu0 %v1602_v2, %s4746_s17  ;;  %v2478_v58 = vsel %vm550_vm0, %v5354_v57, %v2373_v60  ;;  %v3131_v2 = vld [vmem:[#allocation2 + $0x159] sm:$0xff] }
 0x14a   : > { %1717 = vrot.lane.b32.xlu1 %v1617_v63, %s4747_s18 }
 0x14b   : > { %v848_v4 = vpop.permute.xlu0 %847 }
 0x14c   : > { %v910_v24 = vpop.permute.xlu1 %909  ;;  %v952_v18 = vsel %vm550_vm0, %v5364_v51, %v848_v4 }
 0x14d   : > { %v968_v25 = vsel %vm961_vm3, %v951_v23, %v910_v24  ;;  %3180 = vrot.lane.b32.xlu0 %v3127_v22, %s4746_s17  ;;  %v3147_v23 = vld [vmem:[#allocation2 + $0x15a] sm:$0xff] }
 0x14e   : > { %3242 = vrot.lane.b32.xlu1 %v3142_v62, %s4747_s18  ;;  %4356 = vmatprep.mubr.msk.f32.mxu0 %vm1193_vm4, %v968_v25  ;;  %v1622_v24 = vld [vmem:[#allocation2 + $0x9a] sm:$0xff] }
 0x14f   : > { %v2375_v5 = vpop.permute.xlu0 %2374 }
 0x150   : > { %v2437_v59 = vpop.permute.xlu1 %2436  ;;  %v2479_v19 = vsel %vm550_vm0, %v5367_v50, %v2375_v5  ;;  %v3144_v50 = vld [vmem:[#allocation2 + $0x13a] sm:$0xff] }
 0x151   : > { %v2494_v27 = vsel %vm961_vm3, %v2478_v58, %v2437_v59  ;;  %1719 = vrot.lane.b32.xlu0 %v1618_v37, %s4747_s18  ;;  %v1607_v58 = vld [vmem:[#allocation2 + $0xa9] sm:$0xff] }
 0x152   : > { %3244 = vrot.lane.b32.xlu1 %v3143_v26, %s4747_s18  ;;  %4472 = vmatprep.mubr.msk.f32.mxu1 %vm1193_vm4, %v2494_v27 }
 0x153   : > { %v912_v57 = vpop.permute.xlu0 %911 }
 0x154   : > { %v2439_v54 = vpop.permute.xlu1 %2438  ;;  %v969_v7 = vsel %vm961_vm3, %v952_v18, %v912_v57  ;;  %v1623_v18 = vld [vmem:[#allocation2 + $0xaa] sm:$0xff]  ;;  %v5737_v57 = vld [vmem:[%s6126_s6] sm:$0xf] }
 0x155   : > { %v2495_v49 = vsel %vm961_vm3, %v2479_v19, %v2439_v54  ;;  %1657 = vrot.lane.b32.xlu0 %v1603_v28, %s4746_s17  ;;  %4357 = vmatmul.mubr.msk.f32.gmra.mrb[6].mxu0 %vm1193_vm4, %v969_v7  ;;  %v1608_v19 = vld [vmem:[#allocation2 + $0xb1] sm:$0xff] }
 0x156   : > { %3182 = vrot.lane.b32.xlu1 %v3128_v41, %s4746_s17  ;;  %4473 = vmatmul.mubr.msk.f32.gmra.mrb[6].mxu1 %vm1193_vm4, %v2495_v49  ;;  %v3148_v49 = vld [vmem:[#allocation2 + $0x16a] sm:$0xff] }
 0x157   : > { %v850_v40 = vpop.permute.xlu0 %849  ;;  %v3133_v7 = vld [vmem:[#allocation2 + $0x171] sm:$0xff]  ;;  %4517 = vmatprep.subr.msk.mxu1 %vm2091_vm5, %v5737_v57 }
 0x158   : > { %v2377_v51 = vpop.permute.xlu1 %2376  ;;  %v953_v33 = vsel %vm550_vm0, %v5386_v42, %v850_v40  ;;  %v3130_v42 = vld [vmem:[#allocation2 + $0x151] sm:$0xff] }
 0x159   : > { %1659 = vrot.lane.b32.xlu0 %v1604_v29, %s4746_s17  ;;  %v2480_v14 = vsel %vm550_vm0, %v5394_v39, %v2377_v51 }
 0x15a   : > { %1721 = vrot.lane.b32.xlu1 %v1619_v8, %s4747_s18 }
 0x15b   : > { %v852_v9 = vpop.permute.xlu0 %851 }
 0x15c   : > { %v914_v6 = vpop.permute.xlu1 %913  ;;  %v954_v0 = vsel %vm550_vm0, %v5404_v20, %v852_v9 }
 0x15d   : > { %v970_v10 = vsel %vm961_vm3, %v953_v33, %v914_v6  ;;  %3184 = vrot.lane.b32.xlu0 %v3129_v32, %s4746_s17  ;;  %v1624_v32 = vld [vmem:[#allocation2 + $0xb2] sm:$0xff] }
 0x15e   : > { %3246 = vrot.lane.b32.xlu1 %v3144_v50, %s4747_s18  ;;  %4359 = vmatprep.mubr.msk.f32.mxu0 %vm1193_vm4, %v970_v10  ;;  %v3149_v50 = vld [vmem:[#allocation2 + $0x172] sm:$0xff] }
 0x15f   : > { %v2379_v34 = vpop.permute.xlu0 %2378 }
 0x160   : > { %v2441_v35 = vpop.permute.xlu1 %2440  ;;  %v2481_v61 = vsel %vm550_vm0, %v5407_v30, %v2379_v34  ;;  %v3146_v30 = vld [vmem:[#allocation2 + $0x152] sm:$0xff] }
 0x161   : > { %v2496_v44 = vsel %vm961_vm3, %v2480_v14, %v2441_v35  ;;  %1723 = vrot.lane.b32.xlu0 %v1620_v13, %s4747_s18 }
 0x162   : > { %3248 = vrot.lane.b32.xlu1 %v3145_v46, %s4747_s18  ;;  %4475 = vmatprep.mubr.msk.f32.mxu1 %vm1193_vm4, %v2496_v44  ;;  %v1609_v46 = vld [vmem:[#allocation2 + $0xc1] sm:$0xff] }
 0x163   : > { %v916_v39 = vpop.permute.xlu0 %915 }
 0x164   : > { %v2443_v11 = vpop.permute.xlu1 %2442  ;;  %v971_v38 = vsel %vm961_vm3, %v954_v0, %v916_v39 }
 0x165   : > { %v2497_v15 = vsel %vm961_vm3, %v2481_v61, %v2443_v11  ;;  %1661 = vrot.lane.b32.xlu0 %v1605_v45, %s4746_s17  ;;  %4360 = vmatmul.mubr.msk.f32.gmra.mrb[8].mxu0 %vm1193_vm4, %v971_v38  ;;  %v1610_v45 = vld [vmem:[#allocation2 + $0xc9] sm:$0xff] }
 0x166   : > { %3186 = vrot.lane.b32.xlu1 %v3130_v42, %s4746_s17  ;;  %4476 = vmatmul.mubr.msk.f32.gmra.mrb[8].mxu1 %vm1193_vm4, %v2497_v15  ;;  %v1625_v42 = vld [vmem:[#allocation2 + $0xc2] sm:$0xff] }
 0x167   : > { %v854_v63 = vpop.permute.xlu0 %853  ;;  %v3135_v61 = vld [vmem:[#allocation2 + $0x189] sm:$0xff] }
 0x168   : > { %v2381_v20 = vpop.permute.xlu1 %2380  ;;  %v955_v60 = vsel %vm550_vm0, %v5426_v1, %v854_v63  ;;  %v3132_v1 = vld [vmem:[#allocation2 + $0x169] sm:$0xff] }
 0x169   : > { %1663 = vrot.lane.b32.xlu0 %v1606_v56, %s4746_s17  ;;  %v2482_v4 = vsel %vm550_vm0, %v5434_v12, %v2381_v20  ;;  %v1626_v56 = vld [vmem:[#allocation2 + $0xca] sm:$0xff] }
 0x16a   : > { %1725 = vrot.lane.b32.xlu1 %v1621_v16, %s4747_s18  ;;  %v3151_v16 = vld [vmem:[#allocation2 + $0x18a] sm:$0xff] }
 0x16b   : > { %v856_v62 = vpop.permute.xlu0 %855 }
 0x16c   : > { %v918_v17 = vpop.permute.xlu1 %917  ;;  %v956_v59 = vsel %vm550_vm0, %v5444_v31, %v856_v62 }
 0x16d   : > { %v972_v22 = vsel %vm961_vm3, %v955_v60, %v918_v17  ;;  %3188 = vrot.lane.b32.xlu0 %v3131_v2, %s4746_s17  ;;  %v1611_v60 = vld [vmem:[#allocation2 + $0xd9] sm:$0xff] }
 0x16e   : > { %3250 = vrot.lane.b32.xlu1 %v3146_v30, %s4747_s18  ;;  %4362 = vmatprep.mubr.msk.f32.mxu0 %vm1193_vm4, %v972_v22 }
 0x16f   : > { %v2383_v26 = vpop.permute.xlu0 %2382 }
 0x170   : > { %v2445_v25 = vpop.permute.xlu1 %2444  ;;  %v2483_v5 = vsel %vm550_vm0, %v5447_v48, %v2383_v26  ;;  %v5732_v48 = vld [vmem:[%s6126_s6] sm:$0xf] }
 0x171   : > { %v2498_v37 = vsel %vm961_vm3, %v2482_v4, %v2445_v25  ;;  %1727 = vrot.lane.b32.xlu0 %v1622_v24, %s4747_s18  ;;  %4401 = vmatprep.subr.msk.mxu0 %vm2091_vm5, %v5732_v48  ;;  %v1627_v4 = vld [vmem:[#allocation2 + $0xda] sm:$0xff] }
 0x172   : > { %3252 = vrot.lane.b32.xlu1 %v3147_v23, %s4747_s18  ;;  %4478 = vmatprep.mubr.msk.f32.mxu1 %vm1193_vm4, %v2498_v37  ;;  %v1612_v25 = vld [vmem:[#allocation2 + $0xe1] sm:$0xff]  ;;  %v1581_v37 = vld [vmem:[#allocation2 + $0x30] sm:$0xff] }
 0x173   : > { %v920_v12 = vpop.permute.xlu0 %919 }
 0x174   : > { %v2447_v27 = vpop.permute.xlu1 %2446  ;;  %v973_v28 = vsel %vm961_vm3, %v956_v59, %v920_v12 }
 0x175   : > { %v2499_v41 = vsel %vm961_vm3, %v2483_v5, %v2447_v27  ;;  %1665 = vrot.lane.b32.xlu0 %v1607_v58, %s4746_s17  ;;  %4363 = vmatmul.mubr.msk.f32.gmra.mrb[10].mxu0 %vm1193_vm4, %v973_v28  ;;  %v3106_v27 = vld [vmem:[#allocation2 + $0xf0] sm:$0xff]  ;;  %v1628_v28 = vld [vmem:[#allocation2 + $0xe2] sm:$0xff] }
 0x176   : > { %3190 = vrot.lane.b32.xlu1 %v3132_v1, %s4746_s17  ;;  %4479 = vmatmul.mubr.msk.f32.gmra.mrb[10].mxu1 %vm1193_vm4, %v2499_v41  ;;  %v3137_v1 = vld [vmem:[#allocation2 + $0x1a1] sm:$0xff] }
 0x177   : > { %v858_v54 = vpop.permute.xlu0 %857  ;;  %v3153_v41 = vld [vmem:[#allocation2 + $0x1a2] sm:$0xff] }
 0x178   : > { %v2385_v31 = vpop.permute.xlu1 %2384  ;;  %v957_v8 = vsel %vm550_vm0, %v5466_v21, %v858_v54  ;;  %v3134_v21 = vld [vmem:[#allocation2 + $0x181] sm:$0xff]  ;;  %v1582_v54 = vld [vmem:[#allocation2 + $0x38] sm:$0xff] }
 0x179   : > { %1667 = vrot.lane.b32.xlu0 %v1608_v19, %s4746_s17  ;;  %v2484_v33 = vsel %vm550_vm0, %v5474_v52, %v2385_v31 }
 0x17a   : > { %1729 = vrot.lane.b32.xlu1 %v1623_v18, %s4747_s18 }
 0x17b   : > { %v860_v51 = vpop.permute.xlu0 %859 }
 0x17c   : > { %v922_v29 = vpop.permute.xlu1 %921  ;;  %v958_v13 = vsel %vm550_vm0, %v5484_v53, %v860_v51 }
 0x17d   : > { %v974_v40 = vsel %vm961_vm3, %v957_v8, %v922_v29  ;;  %3192 = vrot.lane.b32.xlu0 %v3133_v7, %s4746_s17  ;;  %v3107_v7 = vld [vmem:[#allocation2 + $0xf8] sm:$0xff] }
 0x17e   : > { %3254 = vrot.lane.b32.xlu1 %v3148_v49, %s4747_s18  ;;  %4365 = vmatprep.mubr.msk.f32.mxu0 %vm1193_vm4, %v974_v40 }
 0x17f   : > { %v2387_v9 = vpop.permute.xlu0 %2386 }
 0x180   : > { %v2449_v6 = vpop.permute.xlu1 %2448  ;;  %v2485_v14 = vsel %vm550_vm0, %v5487_v43, %v2387_v9  ;;  %v3150_v43 = vld [vmem:[#allocation2 + $0x182] sm:$0xff] }
 0x181   : > { %v2500_v10 = vsel %vm961_vm3, %v2484_v33, %v2449_v6  ;;  %1731 = vrot.lane.b32.xlu0 %v1624_v32, %s4747_s18  ;;  %v1583_v9 = vld [vmem:[#allocation2 + $0x48] sm:$0xff] }
 0x182   : > { %3256 = vrot.lane.b32.xlu1 %v3149_v50, %s4747_s18  ;;  %4481 = vmatprep.mubr.msk.f32.mxu1 %vm1193_vm4, %v2500_v10 }
 0x183   : > { %v924_v52 = vpop.permute.xlu0 %923 }
 0x184   : > { %v2451_v35 = vpop.permute.xlu1 %2450  ;;  %v975_v44 = vsel %vm961_vm3, %v958_v13, %v924_v52  ;;  %v3108_v13 = vld [vmem:[#allocation2 + $0x108] sm:$0xff] }
 0x185   : > { %v2501_v34 = vsel %vm961_vm3, %v2485_v14, %v2451_v35  ;;  %1669 = vrot.lane.b32.xlu0 %v1609_v46, %s4746_s17  ;;  %4366 = vmatmul.mubr.msk.f32.gmra.mrb[12].mxu0 %vm1193_vm4, %v975_v44 }
 0x186   : > { %3194 = vrot.lane.b32.xlu1 %v3134_v21, %s4746_s17  ;;  %4482 = vmatmul.mubr.msk.f32.gmra.mrb[12].mxu1 %vm1193_vm4, %v2501_v34 }
 0x187   : > { %v862_v0 = vpop.permute.xlu0 %861 }
 0x188   : > { %v2389_v53 = vpop.permute.xlu1 %2388  ;;  %v959_v11 = vsel %vm550_vm0, %v5506_v55, %v862_v0  ;;  %v3136_v55 = vld [vmem:[#allocation2 + $0x199] sm:$0xff] }
 0x189   : > { %1671 = vrot.lane.b32.xlu0 %v1610_v45, %s4746_s17  ;;  %v2486_v20 = vsel %vm550_vm0, %v5514_v47, %v2389_v53 }
 0x18a   : > { %1733 = vrot.lane.b32.xlu1 %v1625_v42, %s4747_s18 }
 0x18b   : > { %v864_v15 = vpop.permute.xlu0 %863 }
 0x18c   : > { %v926_v39 = vpop.permute.xlu1 %925  ;;  %v960_v17 = vsel %vm550_vm0, %v5524_v3, %v864_v15  ;;  %v1585_v15 = vld [vmem:[#allocation2 + $0x60] sm:$0xff] }
 0x18d   : > { %v976_v38 = vsel %vm961_vm3, %v959_v11, %v926_v39  ;;  %3196 = vrot.lane.b32.xlu0 %v3135_v61, %s4746_s17 }
 0x18e   : > { %3258 = vrot.lane.b32.xlu1 %v3150_v43, %s4747_s18  ;;  %4368 = vmatprep.mubr.msk.f32.mxu0 %vm1193_vm4, %v976_v38 }
 0x18f   : > { %v2391_v30 = vpop.permute.xlu0 %2390 }
 0x190   : > { %v2453_v63 = vpop.permute.xlu1 %2452  ;;  %v2487_v62 = vsel %vm550_vm0, %v5527_v36, %v2391_v30  ;;  %v3152_v36 = vld [vmem:[#allocation2 + $0x19a] sm:$0xff] }
 0x191   : > { %v2502_v2 = vsel %vm961_vm3, %v2486_v20, %v2453_v63  ;;  %1735 = vrot.lane.b32.xlu0 %v1626_v56, %s4747_s18  ;;  %v3110_v20 = vld [vmem:[#allocation2 + $0x120] sm:$0xff] }
 0x192   : > { %3260 = vrot.lane.b32.xlu1 %v3151_v16, %s4747_s18  ;;  %4484 = vmatprep.mubr.msk.f32.mxu1 %vm1193_vm4, %v2502_v2 }
 0x193   : > { %v928_v47 = vpop.permute.xlu0 %927 }
 0x194   : > { %v2455_v22 = vpop.permute.xlu1 %2454  ;;  %v977_v24 = vsel %vm961_vm3, %v960_v17, %v928_v47 }
 0x195   : > { %v2503_v23 = vsel %vm961_vm3, %v2487_v62, %v2455_v22  ;;  %1673 = vrot.lane.b32.xlu0 %v1611_v60, %s4746_s17  ;;  %4369 = vmatmul.mubr.msk.f32.gmra.mrb[14].mxu0 %vm1193_vm4, %v977_v24  ;;  %v1586_v60 = vld [vmem:[#allocation2 + $0x68] sm:$0xff] }
 0x196   : > { %3198 = vrot.lane.b32.xlu1 %v3136_v55, %s4746_s17  ;;  %4485 = vmatmul.mubr.msk.f32.gmra.mrb[14].mxu1 %vm1193_vm4, %v2503_v23  ;;  %v3111_v62 = vld [vmem:[#allocation2 + $0x128] sm:$0xff] }
 0x197   : > { %v1646_v26 = vpop.permute.xlu0 %1645 }
 0x198   : > { %v3171_v3 = vpop.permute.xlu1 %3170  ;;  %v1757_v58 = vsel %vm550_vm0, %v1581_v37, %v1646_v26  ;;  %v1587_v37 = vld [vmem:[#allocation2 + $0x78] sm:$0xff] }
 0x199   : > { %1675 = vrot.lane.b32.xlu0 %v1612_v25, %s4746_s17  ;;  %v3282_v18 = vsel %vm550_vm0, %v3106_v27, %v3171_v3 }
 0x19a   : > { %1737 = vrot.lane.b32.xlu1 %v1627_v4, %s4747_s18 }
 0x19b   : > { %v1648_v5 = vpop.permute.xlu0 %1647 }
 0x19c   : > { %v1710_v59 = vpop.permute.xlu1 %1709  ;;  %v1758_v8 = vsel %vm550_vm0, %v1582_v54, %v1648_v5 }
 0x19d   : > { %v1773_v12 = vsel %vm961_vm3, %v1757_v58, %v1710_v59  ;;  %3200 = vrot.lane.b32.xlu0 %v3137_v1, %s4746_s17  ;;  %v3112_v59 = vld [vmem:[#allocation2 + $0x138] sm:$0xff] }
 0x19e   : > { %3262 = vrot.lane.b32.xlu1 %v3152_v36, %s4747_s18  ;;  %4377 = vmatprep.mubr.msk.f32.mxu0 %vm1193_vm4, %v1773_v12 }
 0x19f   : > { %v3173_v31 = vpop.permute.xlu0 %3172 }
 0x1a0   : > { %v3235_v19 = vpop.permute.xlu1 %3234  ;;  %v3283_v29 = vsel %vm550_vm0, %v3107_v7, %v3173_v31 }
 0x1a1   : > { %v3298_v49 = vsel %vm961_vm3, %v3282_v18, %v3235_v19  ;;  %1739 = vrot.lane.b32.xlu0 %v1628_v28, %s4747_s18  ;;  %v1588_v28 = vld [vmem:[#allocation2 + $0x80] sm:$0xff] }
 0x1a2   : > { %3264 = vrot.lane.b32.xlu1 %v3153_v41, %s4747_s18  ;;  %4493 = vmatprep.mubr.msk.f32.mxu1 %vm1193_vm4, %v3298_v49  ;;  %v3113_v19 = vld [vmem:[#allocation2 + $0x140] sm:$0xff] }
 0x1a3   : > { %v1712_v40 = vpop.permute.xlu0 %1711 }
 0x1a4   : > { %v3237_v51 = vpop.permute.xlu1 %3236  ;;  %v1774_v32 = vsel %vm961_vm3, %v1758_v8, %v1712_v40 }
 0x1a5   : > { %v3299_v50 = vsel %vm961_vm3, %v3283_v29, %v3237_v51  ;;  %4378 = vmatmul.mubr.msk.f32.vlgmr.msra.gmra.mrb[0].mxu0 %vm1193_vm4, %v1774_v32 }
 0x1a6   : > { %4494 = vmatmul.mubr.msk.f32.vlgmr.msra.gmra.mrb[0].mxu1 %vm1193_vm4, %v3299_v50  ;;  %4402 = vmatpush3.msk.msra.mxu0 %vm2091_vm5, %v5732_v48  ;;  %v1584_v48 = vld [vmem:[#allocation2 + $0x50] sm:$0xff] }
 0x1a7   : > { %4518 = vmatpush3.msk.msra.mxu1 %vm2091_vm5, %v5737_v57  ;;  %v1650_v6 = vpop.permute.xlu0 %1649  ;;  %v3109_v57 = vld [vmem:[#allocation2 + $0x110] sm:$0xff] }
 0x1a8   : > { %v3175_v33 = vpop.permute.xlu1 %3174  ;;  %v1759_v10 = vsel %vm550_vm0, %v1583_v9, %v1650_v6  ;;  %v1589_v50 = vld [vmem:[#allocation2 + $0x90] sm:$0xff] }
 0x1a9   : > { %v3284_v35 = vsel %vm550_vm0, %v3108_v13, %v3175_v33  ;;  %v3114_v9 = vld [vmem:[#allocation2 + $0x150] sm:$0xff] }
 0x1ab   : > { %v1652_v46 = vpop.permute.xlu0 %1651 }
 0x1ac   : > { %v1714_v21 = vpop.permute.xlu1 %1713  ;;  %v1760_v42 = vsel %vm550_vm0, %v1584_v48, %v1652_v46 }
 0x1ad   : > { %v1775_v14 = vsel %vm961_vm3, %v1759_v10, %v1714_v21 }
 0x1ae   : > { %4380 = vmatprep.mubr.msk.f32.mxu0 %vm1193_vm4, %v1775_v14  ;;  %v1590_v14 = vld [vmem:[#allocation2 + $0x98] sm:$0xff] }
 0x1af   : > { %v3177_v34 = vpop.permute.xlu0 %3176 }
 0x1b0   : > { %v3239_v52 = vpop.permute.xlu1 %3238  ;;  %v3285_v45 = vsel %vm550_vm0, %v3109_v57, %v3177_v34 }
 0x1b1   : > { %v3300_v44 = vsel %vm961_vm3, %v3284_v35, %v3239_v52  ;;  %v3115_v52 = vld [vmem:[#allocation2 + $0x158] sm:$0xff] }
 0x1b2   : > { %4496 = vmatprep.mubr.msk.f32.mxu1 %vm1193_vm4, %v3300_v44 }
 0x1b3   : > { %v1716_v0 = vpop.permute.xlu0 %1715 }
 0x1b4   : > { %v3241_v53 = vpop.permute.xlu1 %3240  ;;  %v1776_v61 = vsel %vm961_vm3, %v1760_v42, %v1716_v0 }
 0x1b5   : > { %v3301_v43 = vsel %vm961_vm3, %v3285_v45, %v3241_v53  ;;  %4381 = vmatmul.mubr.msk.f32.gmra.mrb[2].mxu0 %vm1193_vm4, %v1776_v61 }
 0x1b6   : > { %4497 = vmatmul.mubr.msk.f32.gmra.mrb[2].mxu1 %vm1193_vm4, %v3301_v43  ;;  %v1591_v43 = vld [vmem:[#allocation2 + $0xa8] sm:$0xff] }
 0x1b7   : > { %v1654_v39 = vpop.permute.xlu0 %1653 }
 0x1b8   : > { %v3179_v11 = vpop.permute.xlu1 %3178  ;;  %v1761_v38 = vsel %vm550_vm0, %v1585_v15, %v1654_v39  ;;  %v3116_v15 = vld [vmem:[#allocation2 + $0x168] sm:$0xff] }
 0x1b9   : > { %v3286_v30 = vsel %vm550_vm0, %v3110_v20, %v3179_v11 }
 0x1bb   : > { %v1656_v56 = vpop.permute.xlu0 %1655 }
 0x1bc   : > { %v1718_v16 = vpop.permute.xlu1 %1717  ;;  %v1762_v22 = vsel %vm550_vm0, %v1586_v60, %v1656_v56 }
 0x1bd   : > { %v1777_v63 = vsel %vm961_vm3, %v1761_v38, %v1718_v16 }
 0x1be   : > { %4383 = vmatprep.mubr.msk.f32.mxu0 %vm1193_vm4, %v1777_v63  ;;  %v1592_v63 = vld [vmem:[#allocation2 + $0xb0] sm:$0xff] }
 0x1bf   : > { %v3181_v55 = vpop.permute.xlu0 %3180 }
 0x1c0   : > { %v3243_v2 = vpop.permute.xlu1 %3242  ;;  %v3287_v47 = vsel %vm550_vm0, %v3111_v62, %v3181_v55 }
 0x1c1   : > { %v3302_v17 = vsel %vm961_vm3, %v3286_v30, %v3243_v2  ;;  %v3117_v2 = vld [vmem:[#allocation2 + $0x170] sm:$0xff] }
 0x1c2   : > { %4499 = vmatprep.mubr.msk.f32.mxu1 %vm1193_vm4, %v3302_v17 }
 0x1c3   : > { %v1720_v24 = vpop.permute.xlu0 %1719 }
 0x1c4   : > { %v3245_v23 = vpop.permute.xlu1 %3244  ;;  %v1778_v25 = vsel %vm961_vm3, %v1762_v22, %v1720_v24 }
 0x1c5   : > { %v3303_v4 = vsel %vm961_vm3, %v3287_v47, %v3245_v23  ;;  %4384 = vmatmul.mubr.msk.f32.gmra.mrb[4].mxu0 %vm1193_vm4, %v1778_v25 }
 0x1c6   : > { %4500 = vmatmul.mubr.msk.f32.gmra.mrb[4].mxu1 %vm1193_vm4, %v3303_v4  ;;  %v1593_v4 = vld [vmem:[#allocation2 + $0xc0] sm:$0xff] }
 0x1c7   : > { %v1658_v26 = vpop.permute.xlu0 %1657 }
 0x1c8   : > { %v3183_v3 = vpop.permute.xlu1 %3182  ;;  %v1763_v36 = vsel %vm550_vm0, %v1587_v37, %v1658_v26  ;;  %v3118_v37 = vld [vmem:[#allocation2 + $0x180] sm:$0xff] }
 0x1c9   : > { %v3288_v27 = vsel %vm550_vm0, %v3112_v59, %v3183_v3 }
 0x1cb   : > { %v1660_v58 = vpop.permute.xlu0 %1659 }
 0x1cc   : > { %v1722_v1 = vpop.permute.xlu1 %1721  ;;  %v1764_v31 = vsel %vm550_vm0, %v1588_v28, %v1660_v58 }
 0x1cd   : > { %v1779_v5 = vsel %vm961_vm3, %v1763_v36, %v1722_v1 }
 0x1ce   : > { %4386 = vmatprep.mubr.msk.f32.mxu0 %vm1193_vm4, %v1779_v5  ;;  %v1594_v5 = vld [vmem:[#allocation2 + $0xc8] sm:$0xff] }
 0x1cf   : > { %v3185_v41 = vpop.permute.xlu0 %3184 }
 0x1d0   : > { %v3247_v12 = vpop.permute.xlu1 %3246  ;;  %v3289_v54 = vsel %vm550_vm0, %v3113_v19, %v3185_v41 }
 0x1d1   : > { %v3304_v18 = vsel %vm961_vm3, %v3288_v27, %v3247_v12  ;;  %v3119_v12 = vld [vmem:[#allocation2 + $0x188] sm:$0xff] }
 0x1d2   : > { %4502 = vmatprep.mubr.msk.f32.mxu1 %vm1193_vm4, %v3304_v18 }
 0x1d3   : > { %v1724_v7 = vpop.permute.xlu0 %1723 }
 0x1d4   : > { %v3249_v49 = vpop.permute.xlu1 %3248  ;;  %v1780_v29 = vsel %vm961_vm3, %v1764_v31, %v1724_v7 }
 0x1d5   : > { %v3305_v8 = vsel %vm961_vm3, %v3289_v54, %v3249_v49  ;;  %4387 = vmatmul.mubr.msk.f32.gmra.mrb[6].mxu0 %vm1193_vm4, %v1780_v29 }
 0x1d6   : > { %4503 = vmatmul.mubr.msk.f32.gmra.mrb[6].mxu1 %vm1193_vm4, %v3305_v8  ;;  %v1595_v8 = vld [vmem:[#allocation2 + $0xd8] sm:$0xff] }
 0x1d7   : > { %v1662_v40 = vpop.permute.xlu0 %1661 }
 0x1d8   : > { %v3187_v51 = vpop.permute.xlu1 %3186  ;;  %v1765_v32 = vsel %vm550_vm0, %v1589_v50, %v1662_v40  ;;  %v3120_v50 = vld [vmem:[#allocation2 + $0x198] sm:$0xff] }
 0x1d9   : > { %v3290_v21 = vsel %vm550_vm0, %v3114_v9, %v3187_v51 }
 0x1db   : > { %v1664_v6 = vpop.permute.xlu0 %1663 }
 0x1dc   : > { %v1726_v33 = vpop.permute.xlu1 %1725  ;;  %v1766_v34 = vsel %vm550_vm0, %v1590_v14, %v1664_v6 }
 0x1dd   : > { %v1781_v10 = vsel %vm961_vm3, %v1765_v32, %v1726_v33 }
 0x1de   : > { %4389 = vmatprep.mubr.msk.f32.mxu0 %vm1193_vm4, %v1781_v10  ;;  %v1596_v10 = vld [vmem:[#allocation2 + $0xe0] sm:$0xff] }
 0x1df   : > { %v3189_v13 = vpop.permute.xlu0 %3188 }
 0x1e0   : > { %v3251_v46 = vpop.permute.xlu1 %3250  ;;  %v3291_v48 = vsel %vm550_vm0, %v3115_v52, %v3189_v13 }
 0x1e1   : > { %v3306_v35 = vsel %vm961_vm3, %v3290_v21, %v3251_v46  ;;  %v3121_v46 = vld [vmem:[#allocation2 + $0x1a0] sm:$0xff] }
 0x1e2   : > { %4505 = vmatprep.mubr.msk.f32.mxu1 %vm1193_vm4, %v3306_v35 }
 0x1e3   : > { %v1728_v57 = vpop.permute.xlu0 %1727 }
 0x1e4   : > { %v3253_v44 = vpop.permute.xlu1 %3252  ;;  %v1782_v45 = vsel %vm961_vm3, %v1766_v34, %v1728_v57  ;;  %v2025_v34 = vld [vmem:[%s5894_s25] sm:$0xff] }
 0x1e5   : > { %v3307_v42 = vsel %vm961_vm3, %v3291_v48, %v3253_v44  ;;  %4390 = vmatmul.mubr.msk.f32.gmra.mrb[8].mxu0 %vm1193_vm4, %v1782_v45  ;;  %v4108_v48 = vld [vmem:[%s5894_s25 + $0x80] sm:$0xff]  ;;  %v4109_v45 = vld [vmem:[%s5894_s25 + $0x88] sm:$0xff] }
 0x1e6   : > { %4506 = vmatmul.mubr.msk.f32.gmra.mrb[8].mxu1 %vm1193_vm4, %v3307_v42  ;;  %v2026_v42 = vld [vmem:[%s5894_s25 + $0x8] sm:$0xff] }
 0x1e7   : > { %v1666_v0 = vpop.permute.xlu0 %1665 }
 0x1e8   : > { %v3191_v53 = vpop.permute.xlu1 %3190  ;;  %v1767_v61 = vsel %vm550_vm0, %v1591_v43, %v1666_v0  ;;  %v4110_v0 = vld [vmem:[%s5894_s25 + $0x90] sm:$0xff]  ;;  %v2028_v43 = vld [vmem:[%s5894_s25 + $0x18] sm:$0xff] }
 0x1e9   : > { %v3292_v16 = vsel %vm550_vm0, %v3116_v15, %v3191_v53  ;;  %v2027_v53 = vld [vmem:[%s5894_s25 + $0x10] sm:$0xff]  ;;  %v2030_v15 = vld [vmem:[%s5894_s25 + $0x28] sm:$0xff] }
 0x1eb   : > { %v1668_v39 = vpop.permute.xlu0 %1667 }
 0x1ec   : > { %v1730_v11 = vpop.permute.xlu1 %1729  ;;  %v1768_v55 = vsel %vm550_vm0, %v1592_v63, %v1668_v39  ;;  %v4112_v39 = vld [vmem:[%s5894_s25 + $0xa0] sm:$0xff]  ;;  %v4115_v63 = vld [vmem:[%s5894_s25 + $0xb8] sm:$0xff] }
 0x1ed   : > { %v1783_v38 = vsel %vm961_vm3, %v1767_v61, %v1730_v11  ;;  %v4111_v61 = vld [vmem:[%s5894_s25 + $0x98] sm:$0xff]  ;;  %v2029_v11 = vld [vmem:[%s5894_s25 + $0x20] sm:$0xff] }
 0x1ee   : > { %4392 = vmatprep.mubr.msk.f32.mxu0 %vm1193_vm4, %v1783_v38  ;;  %v4113_v38 = vld [vmem:[%s5894_s25 + $0xa8] sm:$0xff] }
 0x1ef   : > { %v3193_v20 = vpop.permute.xlu0 %3192 }
 0x1f0   : > { %v3255_v56 = vpop.permute.xlu1 %3254  ;;  %v3293_v60 = vsel %vm550_vm0, %v3117_v2, %v3193_v20  ;;  %v2032_v20 = vld [vmem:[%s5894_s25 + $0x38] sm:$0xff]  ;;  %v4116_v2 = vld [vmem:[%s5894_s25 + $0xc0] sm:$0xff] }
 0x1f1   : > { %v3308_v30 = vsel %vm961_vm3, %v3292_v16, %v3255_v56  ;;  %v2031_v16 = vld [vmem:[%s5894_s25 + $0x30] sm:$0xff] }
 0x1f2   : > { %4508 = vmatprep.mubr.msk.f32.mxu1 %vm1193_vm4, %v3308_v30  ;;  %v4114_v56 = vld [vmem:[%s5894_s25 + $0xb0] sm:$0xff]  ;;  %v2033_v30 = vld [vmem:[%s5894_s25 + $0x40] sm:$0xff] }
 0x1f3   : > { %v1732_v62 = vpop.permute.xlu0 %1731 }
 0x1f4   : > { %v3257_v17 = vpop.permute.xlu1 %3256  ;;  %v1784_v47 = vsel %vm961_vm3, %v1768_v55, %v1732_v62  ;;  %v2034_v55 = vld [vmem:[%s5894_s25 + $0x48] sm:$0xff]  ;;  %v4118_v62 = vld [vmem:[%s5894_s25 + $0xd0] sm:$0xff] }
 0x1f5   : > { %v3309_v22 = vsel %vm961_vm3, %v3293_v60, %v3257_v17  ;;  %4393 = vmatmul.mubr.msk.f32.gmra.mrb[10].mxu0 %vm1193_vm4, %v1784_v47  ;;  %v4117_v60 = vld [vmem:[%s5894_s25 + $0xc8] sm:$0xff]  ;;  %v2035_v17 = vld [vmem:[%s5894_s25 + $0x50] sm:$0xff]  ;;  %v4119_v47 = vld [vmem:[%s5894_s25 + $0xd8] sm:$0xff] }
 0x1f6   : > { %4509 = vmatmul.mubr.msk.f32.gmra.mrb[10].mxu1 %vm1193_vm4, %v3309_v22  ;;  %v2036_v22 = vld [vmem:[%s5894_s25 + $0x58] sm:$0xff] }
 0x1f7   : > { %v1670_v24 = vpop.permute.xlu0 %1669 }
 0x1f8   : > { %v3195_v23 = vpop.permute.xlu1 %3194  ;;  %v1769_v25 = vsel %vm550_vm0, %v1593_v4, %v1670_v24  ;;  %v4120_v24 = vld [vmem:[%s5894_s25 + $0xe0] sm:$0xff]  ;;  %v2038_v4 = vld [vmem:[%s5894_s25 + $0x68] sm:$0xff] }
 0x1f9   : > { %v3294_v1 = vsel %vm550_vm0, %v3118_v37, %v3195_v23  ;;  %v2037_v23 = vld [vmem:[%s5894_s25 + $0x60] sm:$0xff]  ;;  %v2040_v37 = vld [vmem:[%s5894_s25 + $0x78] sm:$0xff] }
 0x1fb   : > { %v1672_v26 = vpop.permute.xlu0 %1671 }
 0x1fc   : > { %v1734_v3 = vpop.permute.xlu1 %1733  ;;  %v1770_v41 = vsel %vm550_vm0, %v1594_v5, %v1672_v26  ;;  %v4122_v26 = vld [vmem:[%s5894_s25 + $0xf0] sm:$0xff] }
 0x1fd   : > { %v1785_v36 = vsel %vm961_vm3, %v1769_v25, %v1734_v3  ;;  %v4121_v25 = vld [vmem:[%s5894_s25 + $0xe8] sm:$0xff]  ;;  %v2039_v3 = vld [vmem:[%s5894_s25 + $0x70] sm:$0xff] }
 0x1fe   : > { %4395 = vmatprep.mubr.msk.f32.mxu0 %vm1193_vm4, %v1785_v36  ;;  %v4123_v36 = vld [vmem:[%s5894_s25 + $0xf8] sm:$0xff] }
 0x1ff   : > { %v3197_v59 = vpop.permute.xlu0 %3196 }
 0x200   : > { %v3259_v58 = vpop.permute.xlu1 %3258  ;;  %v3295_v28 = vsel %vm550_vm0, %v3119_v12, %v3197_v59  ;;  %v5975_v59 = vld [vmem:[%s6127_s7] ss:$0 sm:$0xff] }
 0x201   : > { %v3310_v27 = vsel %vm961_vm3, %v3294_v1, %v3259_v58  ;;  %v5970_v1 = vld [vmem:[%s6123_s3] ss:$0 sm:$0xff] }
 0x202   : > { %4511 = vmatprep.mubr.msk.f32.mxu1 %vm1193_vm4, %v3310_v27 }
 0x203   : > { %v1736_v19 = vpop.permute.xlu0 %1735 }
 0x204   : > { %v3261_v18 = vpop.permute.xlu1 %3260  ;;  %v1786_v54 = vsel %vm961_vm3, %v1770_v41, %v1736_v19 }
 0x205   : > { %v3311_v31 = vsel %vm961_vm3, %v3295_v28, %v3261_v18  ;;  %4396 = vmatmul.mubr.msk.f32.gmra.mrb[12].mxu0 %vm1193_vm4, %v1786_v54 }
 0x206   : > { %4512 = vmatmul.mubr.msk.f32.gmra.mrb[12].mxu1 %vm1193_vm4, %v3311_v31 }
 0x207   : > { %v1674_v7 = vpop.permute.xlu0 %1673 }
 0x208   : > { %v3199_v49 = vpop.permute.xlu1 %3198  ;;  %v1771_v29 = vsel %vm550_vm0, %v1595_v8, %v1674_v7 }
 0x209   : > { %v3296_v33 = vsel %vm550_vm0, %v3120_v50, %v3199_v49 }
 0x20b   : > { %v1676_v40 = vpop.permute.xlu0 %1675 }
 0x20c   : > { %v1738_v51 = vpop.permute.xlu1 %1737  ;;  %v1772_v13 = vsel %vm550_vm0, %v1596_v10, %v1676_v40 }
 0x20d   : > { %v1787_v32 = vsel %vm961_vm3, %v1771_v29, %v1738_v51 }
 0x20e   : > { %4398 = vmatprep.mubr.msk.f32.mxu0 %vm1193_vm4, %v1787_v32 }
 0x20f   : > { %v3201_v9 = vpop.permute.xlu0 %3200 }
 0x210   : > { %v3263_v6 = vpop.permute.xlu1 %3262  ;;  %v3297_v14 = vsel %vm550_vm0, %v3121_v46, %v3201_v9 }
 0x211   : > { %v3312_v21 = vsel %vm961_vm3, %v3296_v33, %v3263_v6 }
 0x212   : > { %4514 = vmatprep.mubr.msk.f32.mxu1 %vm1193_vm4, %v3312_v21 }
 0x213   : > { %v1740_v52 = vpop.permute.xlu0 %1739 }
 0x214   : > { %v3265_v35 = vpop.permute.xlu1 %3264  ;;  %v1788_v57 = vsel %vm961_vm3, %v1772_v13, %v1740_v52 }
 0x215   : > { %v3313_v44 = vsel %vm961_vm3, %v3297_v14, %v3265_v35  ;;  %4399 = vmatmul.mubr.msk.f32.gmra.mrb[14].mxu0 %vm1193_vm4, %v1788_v57 }
 0x216   : > { %4515 = vmatmul.mubr.msk.f32.gmra.mrb[14].mxu1 %vm1193_vm4, %v3313_v44  ;;  %4403 = vmatprep.mubr.msk.f32.mxu0 %vm2042_vm6, %v2025_v34 }
 0x217   : > { %4519 = vmatprep.mubr.msk.f32.mxu1 %vm2042_vm6, %v4108_v48 }
 0x219   : > { %4404 = vmatmul.mubr.msk.f32.vlgmr.msra.gmra.mrb[0].mxu0 %vm2042_vm6, %v2026_v42 }
 0x21a   : > { %4520 = vmatmul.mubr.msk.f32.vlgmr.msra.gmra.mrb[0].mxu1 %vm2042_vm6, %v4109_v45  ;;  %4406 = vmatprep.mubr.msk.f32.mxu0 %vm2042_vm6, %v2027_v53 }
 0x21b   : > { %4522 = vmatprep.mubr.msk.f32.mxu1 %vm2042_vm6, %v4110_v0 }
 0x21d   : > { %4407 = vmatmul.mubr.msk.f32.gmra.mrb[2].mxu0 %vm2042_vm6, %v2028_v43 }
 0x21e   : > { %4523 = vmatmul.mubr.msk.f32.gmra.mrb[2].mxu1 %vm2042_vm6, %v4111_v61  ;;  %4409 = vmatprep.mubr.msk.f32.mxu0 %vm2042_vm6, %v2029_v11 }
 0x21f   : > { %4525 = vmatprep.mubr.msk.f32.mxu1 %vm2042_vm6, %v4112_v39 }
 0x221   : > { %4410 = vmatmul.mubr.msk.f32.gmra.mrb[4].mxu0 %vm2042_vm6, %v2030_v15 }
 0x222   : > { %4526 = vmatmul.mubr.msk.f32.gmra.mrb[4].mxu1 %vm2042_vm6, %v4113_v38  ;;  %4412 = vmatprep.mubr.msk.f32.mxu0 %vm2042_vm6, %v2031_v16 }
 0x223   : > { %4528 = vmatprep.mubr.msk.f32.mxu1 %vm2042_vm6, %v4114_v56 }
 0x225   : > { %4413 = vmatmul.mubr.msk.f32.gmra.mrb[6].mxu0 %vm2042_vm6, %v2032_v20 }
 0x226   : > { %4529 = vmatmul.mubr.msk.f32.gmra.mrb[6].mxu1 %vm2042_vm6, %v4115_v63  ;;  %4415 = vmatprep.mubr.msk.f32.mxu0 %vm2042_vm6, %v2033_v30 }
 0x227   : > { %4531 = vmatprep.mubr.msk.f32.mxu1 %vm2042_vm6, %v4116_v2 }
 0x229   : > { %4416 = vmatmul.mubr.msk.f32.gmra.mrb[8].mxu0 %vm2042_vm6, %v2034_v55 }
 0x22a   : > { %4532 = vmatmul.mubr.msk.f32.gmra.mrb[8].mxu1 %vm2042_vm6, %v4117_v60  ;;  %4418 = vmatprep.mubr.msk.f32.mxu0 %vm2042_vm6, %v2035_v17 }
 0x22b   : > { %4534 = vmatprep.mubr.msk.f32.mxu1 %vm2042_vm6, %v4118_v62 }
 0x22d   : > { %4419 = vmatmul.mubr.msk.f32.gmra.mrb[10].mxu0 %vm2042_vm6, %v2036_v22 }
 0x22e   : > { %4535 = vmatmul.mubr.msk.f32.gmra.mrb[10].mxu1 %vm2042_vm6, %v4119_v47  ;;  %4421 = vmatprep.mubr.msk.f32.mxu0 %vm2042_vm6, %v2037_v23 }
 0x22f   : > { %4537 = vmatprep.mubr.msk.f32.mxu1 %vm2042_vm6, %v4120_v24 }
 0x231   : > { %4422 = vmatmul.mubr.msk.f32.gmra.mrb[12].mxu0 %vm2042_vm6, %v2038_v4 }
 0x232   : > { %4538 = vmatmul.mubr.msk.f32.gmra.mrb[12].mxu1 %vm2042_vm6, %v4121_v25  ;;  %4424 = vmatprep.mubr.msk.f32.mxu0 %vm2042_vm6, %v2039_v3 }
 0x233   : > { %4540 = vmatprep.mubr.msk.f32.mxu1 %vm2042_vm6, %v4122_v26 }
 0x235   : > { %4425 = vmatmul.mubr.msk.f32.gmra.mrb[14].mxu0 %vm2042_vm6, %v2040_v37 }
 0x236   : > { %4541 = vmatmul.mubr.msk.f32.gmra.mrb[14].mxu1 %vm2042_vm6, %v4123_v36 }
 0x2ec   : > { %v4405_v58 = vpop.f32.mrb[0].mxu0 }
 0x2ed   : > { %v4521_v5 = vpop.f32.mrb[0].mxu1  ;;  %v4567_v27 = vadd.f32 %v4405_v58, %v5970_v1  ;;  %v2161_v41 = vpop.f32.mrb[1].mxu0 }
 0x2ee   : > { %v4583_v12 = vadd.f32 %v4521_v5, %v5970_v1  ;;  %v3684_v28 = vpop.f32.mrb[1].mxu1  ;;  %v4568_v18 = vadd.f32 %v5970_v1, %v2161_v41 }
 0x2ef   : > { %v4584_v19 = vadd.f32 %v5970_v1, %v3684_v28  ;;  %v2264_v31 = vadd.f32 %v4567_v27, %v5975_v59 }
 0x2f0   : > { %v3787_v54 = vadd.f32 %v4583_v12, %v5975_v59  ;;  %v2263_v49 = vadd.f32 %v4568_v18, %v5975_v59  ;;  %v4408_v8 = vpop.f32.mrb[2].mxu0 }
 0x2f1   : > { %v3786_v7 = vadd.f32 %v4584_v19, %v5975_v59  ;;  %v4524_v29 = vpop.f32.mrb[2].mxu1  ;;  %2280 = vst.msk [vmem:[%s5983_s14 + $0x8] sm:$0xff] %vm550_vm0, %v2264_v31  ;;  %v4569_v51 = vadd.f32 %v4408_v8, %v5970_v1  ;;  %v2171_v50 = vpop.f32.mrb[3].mxu0 }
 0x2f2   : > { %4143 = vst.msk [vmem:[%s5983_s14 + $0x88] sm:$0xff] %vm550_vm0, %v3787_v54  ;;  %v4585_v40 = vadd.f32 %v4524_v29, %v5970_v1  ;;  %v3694_v32 = vpop.f32.mrb[3].mxu1  ;;  %2279 = vst.msk [vmem:[%s5983_s14] sm:$0xff] %vm550_vm0, %v2263_v49  ;;  %v4570_v33 = vadd.f32 %v5970_v1, %v2171_v50 }
 0x2f3   : > { %4142 = vst.msk [vmem:[%s5983_s14 + $0x80] sm:$0xff] %vm550_vm0, %v3786_v7  ;;  %v4586_v6 = vadd.f32 %v5970_v1, %v3694_v32  ;;  %v2266_v9 = vadd.f32 %v4569_v51, %v5975_v59 }
 0x2f4   : > { %v3789_v10 = vadd.f32 %v4585_v40, %v5975_v59  ;;  %v2265_v21 = vadd.f32 %v4570_v33, %v5975_v59  ;;  %v4411_v13 = vpop.f32.mrb[4].mxu0 }
 0x2f5   : > { %v3788_v46 = vadd.f32 %v4586_v6, %v5975_v59  ;;  %v4527_v14 = vpop.f32.mrb[4].mxu1  ;;  %2282 = vst.msk [vmem:[%s5983_s14 + $0x18] sm:$0xff] %vm550_vm0, %v2266_v9  ;;  %v4571_v35 = vadd.f32 %v4411_v13, %v5970_v1  ;;  %v2181_v34 = vpop.f32.mrb[5].mxu0 }
 0x2f6   : > { %4145 = vst.msk [vmem:[%s5983_s14 + $0x98] sm:$0xff] %vm550_vm0, %v3789_v10  ;;  %v4587_v52 = vadd.f32 %v4527_v14, %v5970_v1  ;;  %v3704_v48 = vpop.f32.mrb[5].mxu1  ;;  %2281 = vst.msk [vmem:[%s5983_s14 + $0x10] sm:$0xff] %vm550_vm0, %v2265_v21  ;;  %v4572_v44 = vadd.f32 %v5970_v1, %v2181_v34 }
 0x2f7   : > { %4144 = vst.msk [vmem:[%s5983_s14 + $0x90] sm:$0xff] %vm550_vm0, %v3788_v46  ;;  %v4588_v57 = vadd.f32 %v5970_v1, %v3704_v48  ;;  %v2268_v42 = vadd.f32 %v4571_v35, %v5975_v59 }
 0x2f8   : > { %v3791_v45 = vadd.f32 %v4587_v52, %v5975_v59  ;;  %v2267_v53 = vadd.f32 %v4572_v44, %v5975_v59  ;;  %v4414_v43 = vpop.f32.mrb[6].mxu0 }
 0x2f9   : > { %v3790_v0 = vadd.f32 %v4588_v57, %v5975_v59  ;;  %v4530_v61 = vpop.f32.mrb[6].mxu1  ;;  %2284 = vst.msk [vmem:[%s5983_s14 + $0x28] sm:$0xff] %vm550_vm0, %v2268_v42  ;;  %v4573_v11 = vadd.f32 %v4414_v43, %v5970_v1  ;;  %v2191_v15 = vpop.f32.mrb[7].mxu0 }
 0x2fa   : > { %4147 = vst.msk [vmem:[%s5983_s14 + $0xa8] sm:$0xff] %vm550_vm0, %v3791_v45  ;;  %v4589_v39 = vadd.f32 %v4530_v61, %v5970_v1  ;;  %v3714_v38 = vpop.f32.mrb[7].mxu1  ;;  %2283 = vst.msk [vmem:[%s5983_s14 + $0x20] sm:$0xff] %vm550_vm0, %v2267_v53  ;;  %v4574_v16 = vadd.f32 %v5970_v1, %v2191_v15 }
 0x2fb   : > { %4146 = vst.msk [vmem:[%s5983_s14 + $0xa0] sm:$0xff] %vm550_vm0, %v3790_v0  ;;  %v4590_v56 = vadd.f32 %v5970_v1, %v3714_v38  ;;  %v2270_v20 = vadd.f32 %v4573_v11, %v5975_v59 }
 0x2fc   : > { %v3793_v63 = vadd.f32 %v4589_v39, %v5975_v59  ;;  %v2269_v30 = vadd.f32 %v4574_v16, %v5975_v59  ;;  %v4417_v55 = vpop.f32.mrb[8].mxu0 }
 0x2fd   : > { %v3792_v2 = vadd.f32 %v4590_v56, %v5975_v59  ;;  %v4533_v60 = vpop.f32.mrb[8].mxu1  ;;  %2286 = vst.msk [vmem:[%s5983_s14 + $0x38] sm:$0xff] %vm550_vm0, %v2270_v20  ;;  %v4575_v17 = vadd.f32 %v4417_v55, %v5970_v1  ;;  %v2201_v22 = vpop.f32.mrb[9].mxu0 }
 0x2fe   : > { %4149 = vst.msk [vmem:[%s5983_s14 + $0xb8] sm:$0xff] %vm550_vm0, %v3793_v63  ;;  %v4591_v62 = vadd.f32 %v4533_v60, %v5970_v1  ;;  %v3724_v47 = vpop.f32.mrb[9].mxu1  ;;  %2285 = vst.msk [vmem:[%s5983_s14 + $0x30] sm:$0xff] %vm550_vm0, %v2269_v30  ;;  %v4576_v23 = vadd.f32 %v5970_v1, %v2201_v22 }
 0x2ff   : > { %4148 = vst.msk [vmem:[%s5983_s14 + $0xb0] sm:$0xff] %vm550_vm0, %v3792_v2  ;;  %v4592_v24 = vadd.f32 %v5970_v1, %v3724_v47  ;;  %v2272_v4 = vadd.f32 %v4575_v17, %v5975_v59 }
 0x300   : > { %v3795_v25 = vadd.f32 %v4591_v62, %v5975_v59  ;;  %v2271_v3 = vadd.f32 %v4576_v23, %v5975_v59  ;;  %v4420_v37 = vpop.f32.mrb[10].mxu0 }
 0x301   : > { %v3794_v26 = vadd.f32 %v4592_v24, %v5975_v59  ;;  %v4536_v36 = vpop.f32.mrb[10].mxu1  ;;  %2288 = vst.msk [vmem:[%s5983_s14 + $0x48] sm:$0xff] %vm550_vm0, %v2272_v4  ;;  %v4577_v58 = vadd.f32 %v4420_v37, %v5970_v1  ;;  %v2211_v27 = vpop.f32.mrb[11].mxu0 }
 0x302   : > { %4151 = vst.msk [vmem:[%s5983_s14 + $0xc8] sm:$0xff] %vm550_vm0, %v3795_v25  ;;  %v4593_v5 = vadd.f32 %v4536_v36, %v5970_v1  ;;  %v3734_v12 = vpop.f32.mrb[11].mxu1  ;;  %2287 = vst.msk [vmem:[%s5983_s14 + $0x40] sm:$0xff] %vm550_vm0, %v2271_v3  ;;  %v4578_v41 = vadd.f32 %v5970_v1, %v2211_v27 }
 0x303   : > { %4150 = vst.msk [vmem:[%s5983_s14 + $0xc0] sm:$0xff] %vm550_vm0, %v3794_v26  ;;  %v4594_v28 = vadd.f32 %v5970_v1, %v3734_v12  ;;  %v2274_v18 = vadd.f32 %v4577_v58, %v5975_v59 }
 0x304   : > { %v3797_v19 = vadd.f32 %v4593_v5, %v5975_v59  ;;  %v2273_v31 = vadd.f32 %v4578_v41, %v5975_v59  ;;  %v4423_v49 = vpop.f32.mrb[12].mxu0 }
 0x305   : > { %v3796_v54 = vadd.f32 %v4594_v28, %v5975_v59  ;;  %v4539_v7 = vpop.f32.mrb[12].mxu1  ;;  %2290 = vst.msk [vmem:[%s5983_s14 + $0x58] sm:$0xff] %vm550_vm0, %v2274_v18  ;;  %v4579_v8 = vadd.f32 %v4423_v49, %v5970_v1  ;;  %v2221_v51 = vpop.f32.mrb[13].mxu0 }
 0x306   : > { %4153 = vst.msk [vmem:[%s5983_s14 + $0xd8] sm:$0xff] %vm550_vm0, %v3797_v19  ;;  %v4595_v29 = vadd.f32 %v4539_v7, %v5970_v1  ;;  %v3744_v40 = vpop.f32.mrb[13].mxu1  ;;  %2289 = vst.msk [vmem:[%s5983_s14 + $0x50] sm:$0xff] %vm550_vm0, %v2273_v31  ;;  %v4580_v50 = vadd.f32 %v5970_v1, %v2221_v51 }
 0x307   : > { %4152 = vst.msk [vmem:[%s5983_s14 + $0xd0] sm:$0xff] %vm550_vm0, %v3796_v54  ;;  %v4596_v32 = vadd.f32 %v5970_v1, %v3744_v40  ;;  %v2276_v33 = vadd.f32 %v4579_v8, %v5975_v59 }
 0x308   : > { %v3799_v6 = vadd.f32 %v4595_v29, %v5975_v59  ;;  %v2275_v9 = vadd.f32 %v4580_v50, %v5975_v59  ;;  %v4426_v21 = vpop.f32.mrb[14].mxu0 }
 0x309   : > { %v3798_v10 = vadd.f32 %v4596_v32, %v5975_v59  ;;  %v4542_v46 = vpop.f32.mrb[14].mxu1  ;;  %2292 = vst.msk [vmem:[%s5983_s14 + $0x68] sm:$0xff] %vm550_vm0, %v2276_v33  ;;  %v4581_v13 = vadd.f32 %v4426_v21, %v5970_v1  ;;  %v2231_v35 = vpop.f32.mrb[15].mxu0 }
 0x30a   : > { %4155 = vst.msk [vmem:[%s5983_s14 + $0xe8] sm:$0xff] %vm550_vm0, %v3799_v6  ;;  %v4597_v14 = vadd.f32 %v4542_v46, %v5970_v1  ;;  %v3754_v52 = vpop.f32.mrb[15].mxu1  ;;  %2291 = vst.msk [vmem:[%s5983_s14 + $0x60] sm:$0xff] %vm550_vm0, %v2275_v9  ;;  %v4582_v34 = vadd.f32 %v5970_v1, %v2231_v35 }
 0x30b   : > { %4154 = vst.msk [vmem:[%s5983_s14 + $0xe0] sm:$0xff] %vm550_vm0, %v3798_v10  ;;  %v4598_v48 = vadd.f32 %v5970_v1, %v3754_v52  ;;  %v2278_v44 = vadd.f32 %v4581_v13, %v5975_v59 }
 0x30c   : > { %v3801_v57 = vadd.f32 %v4597_v14, %v5975_v59  ;;  %v2277_v42 = vadd.f32 %v4582_v34, %v5975_v59 }
 0x30d   : > { %v3800_v45 = vadd.f32 %v4598_v48, %v5975_v59  ;;  %2294 = vst.msk [vmem:[%s5983_s14 + $0x78] sm:$0xff] %vm550_vm0, %v2278_v44 }
 0x30e   : > { %4157 = vst.msk [vmem:[%s5983_s14 + $0xf8] sm:$0xff] %vm550_vm0, %v3801_v57  ;;  %2293 = vst.msk [vmem:[%s5983_s14 + $0x70] sm:$0xff] %vm550_vm0, %v2277_v42 }
 0x30f   : > { %4156 = vst.msk [vmem:[%s5983_s14 + $0xf0] sm:$0xff] %vm550_vm0, %v3800_v45 }
 0x310 PF: > { %s18_s29 = sadd.s32 1, %s4744_s29   ;;  %s6168_s27 = smov %s4740_s28 }
 0x311   : > { %p15_p5 = scmp.ge.s32.totalorder %s18_s29, 4   ;;  %s6169_s28 = smov %s6171_s30 }
 0x313   :  { %17 = sbr.rel (!%p15_p5) target bundleno = 2 (0x2), region = 107 }

</bundles_post_ra>
